<compile_context>
chip_gen: v6e
topology: v6e:2x2x1
jax: 0.10.0
libtpu: 0.0.40
codegen_flags: <defaults>
</compile_context>

<pallas_src>
import numpy as np
import jax
import jax.numpy as jnp
from jax import lax
from jax.experimental import pallas as pl
from jax.experimental.pallas import tpu as pltpu

# ---------------- module config (mirrors PillarEncoder.__init__) -------------
VOXEL_SIZE = [0.4, 0.4, 4.0]
PC_RANGE = [0.0, 0.0, -3.0, 6.4, 6.4, 1.0]
MAX_NUM_POINTS = 8            # points per pillar
MAX_VOXELS = 20000
IN_CHANNELS = 9
OUT_CHANNELS = 64

X_L = int(round((PC_RANGE[3] - PC_RANGE[0]) / VOXEL_SIZE[0]))   # 16
Y_L = int(round((PC_RANGE[4] - PC_RANGE[1]) / VOXEL_SIZE[1]))   # 16
Z_L = int(round((PC_RANGE[5] - PC_RANGE[2]) / VOXEL_SIZE[2]))   # 1
DX, DY = VOXEL_SIZE[0], VOXEL_SIZE[1]
X_OFFSET = VOXEL_SIZE[0] / 2.0 + PC_RANGE[0]
Y_OFFSET = VOXEL_SIZE[1] / 2.0 + PC_RANGE[1]
BN_EPS = 1e-5

W_LANES = 128                 # lane replication width of the weight block
P_TILE = 128                  # pillars per grid step (lane dimension)
P_PAD = 256                   # padded pillar capacity -> 2 even "parallel" steps

N_EFF_CH = 7                  # effective input channels after folding duplicates


# ------------------------------ Pallas kernel --------------------------------
def pillar_encoder_kernel(pts_ref, aux_ref, wb_ref, out_ref):
    """One tile of P_TILE pillars; pillar index lives on the lane dimension.

    pts_ref : (4, N, T)   point channels [x, y, z, r]
    aux_ref : (8, T)      row 0: points-per-pillar (f32), row 1: ix, row 2: iy
    wb_ref  : (8, C, 128) rows 0..6: BN-folded weights, row 7: BN-folded bias
                          (lane-replicated to 128 = T, constant across grid)
    out_ref : (C, T)      pooled pillar features (lane-dense store)
    """
    n_pts = pts_ref.shape[1]                    # N = 8 (static)

    # per-channel point slabs: each (N, T) f32 = exactly one vreg
    x = pts_ref[0]
    y = pts_ref[1]
    z = pts_ref[2]
    r = pts_ref[3]

    aux = aux_ref[...]                          # (8, T), one vreg
    npts = aux[0:1, :]                          # (1, T)
    cx = aux[1:2, :]
    cy = aux[2:3, :]

    inv_n = 1.0 / jnp.maximum(npts, 1.0)        # exact (once per tile)
    pill_cx = cx * DX + X_OFFSET                # geometric pillar centers
    pill_cy = cy * DY + Y_OFFSET

    # arithmetic mean of the (zero-padded) points in each pillar
    mean_x = jnp.sum(x, axis=0, keepdims=True) * inv_n     # (1, T)
    mean_y = jnp.sum(y, axis=0, keepdims=True) * inv_n
    mean_z = jnp.sum(z, axis=0, keepdims=True) * inv_n

    # point-validity mask, applied ONCE to the 7 one-vreg feature slabs
    pid = lax.broadcasted_iota(jnp.int32, x.shape, 0).astype(jnp.float32)
    mask = (pid < npts).astype(jnp.float32)     # (N, T)

    # effective feature channels (torch order [x_off, y_off, z, r, ocx, ocy,
    # ocz, x_off, y_off] -- duplicated x_off/y_off already folded into weights)
    feats = ((x - pill_cx) * mask,
             (y - pill_cy) * mask,
             z * mask,
             r * mask,
             (x - mean_x) * mask,
             (y - mean_y) * mask,
             (z - mean_z) * mask)

    def point_term(n):
        # pre-bias activation of point n: (C, T) via 7 VPU broadcast FMAs.
        # Weights are re-read per use (small vld) to keep register pressure low.
        a = feats[0][n:n + 1, :] * wb_ref[0]
        for c in range(1, N_EFF_CH):
            a = a + feats[c][n:n + 1, :] * wb_ref[c]
        return a

    # running max over points: only one (C, T) accumulator (8 vregs) stays live
    m = point_term(0)
    for n in range(1, n_pts):
        m = jnp.maximum(m, point_term(n))

    # bias add + ReLU hoisted out of the point loop (exact: ReLU is monotone,
    # bias is constant per channel). Invalid points contributed 0 pre-bias,
    # matching the reference's relu(bias) floor.
    out_ref[...] = jnp.maximum(m + wb_ref[N_EFF_CH], 0.0)


def pillar_encoder_forward(pillars, npoints, coors, W, gamma, beta, mean, var, bs):
    """pillars: (P, N, 4) f32; npoints: (P,) i32; coors: (P, 4) i32 as
    (batch, ix, iy, iz). Returns NCHW canvas (bs, C_out, Y_L, X_L)."""
    P, N, _ = pillars.shape
    assert P % P_TILE == 0
    assert P_TILE == W_LANES  # see TODO at top for larger production tiles

    # --- fold BatchNorm (eval mode) into the 1x1 conv weight / bias ----------
    scale = gamma * lax.rsqrt(var + BN_EPS)              # (1, C)
    Wf = W * scale                                       # (9, C)
    bf = (beta - mean * scale).reshape(OUT_CHANNELS)     # (C,)
    # fold duplicated channels: feature order is
    # [x_off, y_off, z, r, ocx, ocy, ocz, x_off, y_off]; pack bias as row 7
    Weff = jnp.stack([Wf[0] + Wf[7], Wf[1] + Wf[8],
                      Wf[2], Wf[3], Wf[4], Wf[5], Wf[6], bf], axis=0)  # (8, C)
    # lane-replicate to 128 only (does NOT scale with P_TILE / pillar count)
    wb = jnp.broadcast_to(Weff[:, :, None],
                          (N_EFF_CH + 1, OUT_CHANNELS, W_LANES))

    # --- layout plumbing: pillar index on the lane dimension -----------------
    pts_t = jnp.transpose(pillars, (2, 1, 0))            # (4, N, P)
    aux = jnp.concatenate([
        npoints.astype(jnp.float32)[None, :],
        coors[:, 1].astype(jnp.float32)[None, :],
        coors[:, 2].astype(jnp.float32)[None, :],
        jnp.zeros((5, P), jnp.float32)], axis=0)         # (8, P)

    pooled_t = pl.pallas_call(
        pillar_encoder_kernel,
        out_shape=jax.ShapeDtypeStruct((OUT_CHANNELS, P), jnp.float32),
        grid=(P // P_TILE,),
        in_specs=[
            pl.BlockSpec((4, N, P_TILE), lambda i: (0, 0, i)),
            pl.BlockSpec((N_EFF_CH + 1, P_TILE), lambda i: (0, i)),
            pl.BlockSpec((N_EFF_CH + 1, OUT_CHANNELS, W_LANES),
                         lambda i: (0, 0, 0)),
        ],
        out_specs=pl.BlockSpec((OUT_CHANNELS, P_TILE), lambda i: (0, i)),
        compiler_params=pltpu.CompilerParams(dimension_semantics=("parallel",)),
    )(pts_t, aux, wb)

    pooled = pooled_t.T                                   # (P, C)

    # Scatter pooled pillar features onto per-batch BEV canvases (XLA glue).
    # NOTE: padding pillars carry relu(bias) != 0 in `pooled`; this is safe
    # only because the scatter drops them (b_idx pushed out of bounds).
    valid = npoints > 0
    b_idx = jnp.where(valid, coors[:, 0], bs)             # invalid -> OOB -> dropped
    ix = coors[:, 1]
    iy = coors[:, 2]
    canvas = jnp.zeros((bs, X_L, Y_L, OUT_CHANNELS), jnp.float32)
    canvas = canvas.at[b_idx, ix, iy].set(pooled, mode="drop")
    # torch: canvas (x_l, y_l, C).permute(2, 1, 0) -> (C, y_l, x_l); stack -> NCHW
    return jnp.transpose(canvas, (0, 3, 2, 1))


# --------------------------- pure-JAX reference -------------------------------
def reference_forward(pillars, npoints, coors, W, gamma, beta, mean, var, bs):
    npts = jnp.maximum(npoints.astype(jnp.float32), 1.0)
    off_center = pillars[:, :, :3] - (
        jnp.sum(pillars[:, :, :3], axis=1, keepdims=True) / npts[:, None, None])
    x_off = pillars[:, :, 0:1] - (coors[:, None, 1:2].astype(jnp.float32) * DX + X_OFFSET)
    y_off = pillars[:, :, 1:2] - (coors[:, None, 2:3].astype(jnp.float32) * DY + Y_OFFSET)
    features = jnp.concatenate([pillars, off_center, x_off, y_off], axis=-1)
    features = features.at[:, :, 0:1].set(x_off)
    features = features.at[:, :, 1:2].set(y_off)
    ids = jnp.arange(pillars.shape[1])
    mask = (ids[None, :] < npoints[:, None]).astype(jnp.float32)
    features = features * mask[:, :, None]
    y = jnp.einsum("pnc,co->pno", features, W)
    y = (y - mean[0]) / jnp.sqrt(var[0] + BN_EPS) * gamma[0] + beta[0]
    y = jnp.maximum(y, 0.0)
    pooled = jnp.max(y, axis=1)
    valid = npoints > 0
    b_idx = jnp.where(valid, coors[:, 0], bs)
    canvas = jnp.zeros((bs, X_L, Y_L, OUT_CHANNELS), jnp.float32)
    canvas = canvas.at[b_idx, coors[:, 1], coors[:, 2]].set(pooled, mode="drop")
    return jnp.transpose(canvas, (0, 3, 2, 1))


# --------------------------- host-side voxelizer -------------------------------
def voxelize_numpy(points, voxel_size, pc_range, max_num_points, max_voxels):
    """Hard voxelization (first-come-first-served), numpy glue."""
    coords_to_idx = {}
    pillars, coors, npoints = [], [], []
    for p in points:
        ix = int(np.floor((p[0] - pc_range[0]) / voxel_size[0]))
        iy = int(np.floor((p[1] - pc_range[1]) / voxel_size[1]))
        iz = int(np.floor((p[2] - pc_range[2]) / voxel_size[2]))
        if not (0 <= ix < X_L and 0 <= iy < Y_L and 0 <= iz < Z_L):
            continue
        key = (ix, iy, iz)
        if key not in coords_to_idx:
            if len(pillars) >= max_voxels:
                continue
            coords_to_idx[key] = len(pillars)
            pillars.append(np.zeros((max_num_points, points.shape[1]), np.float32))
            coors.append([ix, iy, iz])
            npoints.append(0)
        v = coords_to_idx[key]
        if npoints[v] < max_num_points:
            pillars[v][npoints[v]] = p
            npoints[v] += 1
    return (np.stack(pillars).astype(np.float32),
            np.array(coors, np.int32),
            np.array(npoints, np.int32))


# ------------------------------------ main -------------------------------------
if __name__ == "__main__":
    key = jax.random.PRNGKey(0)
    bs = 2
    pts_per_cloud = 100
    keys = jax.random.split(key, bs + 4)

    # deterministic synthetic point clouds (x, y, z, reflectance)
    batched_pts = []
    for i in range(bs):
        kxy, kz, kr = jax.random.split(keys[i], 3)
        xy = jax.random.uniform(kxy, (pts_per_cloud, 2), minval=0.05, maxval=6.35)
        z = jax.random.uniform(kz, (pts_per_cloud, 1), minval=-2.5, maxval=0.5)
        r = jax.random.uniform(kr, (pts_per_cloud, 1))
        batched_pts.append(np.asarray(jnp.concatenate([xy, z, r], axis=-1),
                                      dtype=np.float32))

    # Voxelizer (host glue) + batch-index padding of coors, then pad to P_PAD.
    all_pillars, all_coors, all_npoints = [], [], []
    for i, pts in enumerate(batched_pts):
        pil, co, npv = voxelize_numpy(pts, VOXEL_SIZE, PC_RANGE,
                                      MAX_NUM_POINTS, MAX_VOXELS)
        all_pillars.append(pil)
        all_coors.append(np.concatenate(
            [np.full((co.shape[0], 1), i, np.int32), co], axis=1))
        all_npoints.append(npv)
    pillars_np = np.concatenate(all_pillars, 0)
    coors_np = np.concatenate(all_coors, 0)
    npoints_np = np.concatenate(all_npoints, 0)
    P = pillars_np.shape[0]
    assert P <= P_PAD
    pad = P_PAD - P
    pillars_np = np.concatenate(
        [pillars_np, np.zeros((pad, MAX_NUM_POINTS, 4), np.float32)], 0)
    coors_np = np.concatenate([coors_np, np.zeros((pad, 4), np.int32)], 0)
    npoints_np = np.concatenate([npoints_np, np.zeros((pad,), np.int32)], 0)

    pillars = jnp.asarray(pillars_np)
    coors = jnp.asarray(coors_np)
    npoints = jnp.asarray(npoints_np)

    # Deterministic parameters: Conv1d(9, 64, k=1, bias=False) weight as (9, 64),
    # BatchNorm1d(64) gamma/beta/running_mean/running_var (eval-mode).
    kw, kg, kb, km = keys[bs], keys[bs + 1], keys[bs + 2], keys[bs + 3]
    W = 0.1 * jax.random.normal(kw, (IN_CHANNELS, OUT_CHANNELS), jnp.float32)
    gamma = 1.0 + 0.1 * jax.random.normal(kg, (1, OUT_CHANNELS), jnp.float32)
    beta = 0.1 * jax.random.normal(kb, (1, OUT_CHANNELS), jnp.float32)
    run_mean = 0.05 * jax.random.normal(km, (1, OUT_CHANNELS), jnp.float32)
    run_var = jnp.ones((1, OUT_CHANNELS), jnp.float32)

    out = pillar_encoder_forward(pillars, npoints, coors, W, gamma, beta,
                                 run_mean, run_var, bs)
    out = jax.block_until_ready(out)

    ref = jax.block_until_ready(
        reference_forward(pillars, npoints, coors, W, gamma, beta,
                          run_mean, run_var, bs))

    assert out.shape == (bs, OUT_CHANNELS, Y_L, X_L)
    np.testing.assert_allclose(np.asarray(out), np.asarray(ref),
                               atol=1e-3, rtol=1e-3)
    print("KERNEL_OK")
</pallas_src>

<mosaic_0001>
module attributes {stable_mosaic.version = 11 : i64} {
  func.func @pillar_encoder_kernel(%arg0: i32, %arg1: memref<4x8x128xf32, #tpu.memory_space<vmem>>, %arg2: memref<8x128xf32, #tpu.memory_space<vmem>>, %arg3: memref<8x64x128xf32, #tpu.memory_space<vmem>>, %arg4: memref<64x128xf32, #tpu.memory_space<vmem>>) attributes {dimension_semantics = [#tpu.dimension_semantics<parallel>], iteration_bounds = array<i64: 2>, scalar_prefetch = 0 : i64, scratch_operands = 0 : i64, tpu.core_type = #tpu.core_type<tc>, window_params = [{transform_indices = @transform_0, window_bounds = array<i64: 4, 8, 128>}, {transform_indices = @transform_1, window_bounds = array<i64: 8, 128>}, {pipeline_mode = #tpu.pipeline_mode<synchronous>, transform_indices = @transform_2, window_bounds = array<i64: 8, 64, 128>}, {transform_indices = @transform_3, window_bounds = array<i64: 64, 128>}]} {
    %c0 = arith.constant 0 : index
    %c0_0 = arith.constant 0 : index
    %c0_1 = arith.constant 0 : index
    %0 = vector.load %arg1[%c0, %c0_0, %c0_1] : memref<4x8x128xf32, #tpu.memory_space<vmem>>, vector<1x8x128xf32>
    %1 = vector.shape_cast %0 : vector<1x8x128xf32> to vector<8x128xf32>
    %c1 = arith.constant 1 : index
    %c0_2 = arith.constant 0 : index
    %c0_3 = arith.constant 0 : index
    %2 = vector.load %arg1[%c1, %c0_2, %c0_3] : memref<4x8x128xf32, #tpu.memory_space<vmem>>, vector<1x8x128xf32>
    %3 = vector.shape_cast %2 : vector<1x8x128xf32> to vector<8x128xf32>
    %c2 = arith.constant 2 : index
    %c0_4 = arith.constant 0 : index
    %c0_5 = arith.constant 0 : index
    %4 = vector.load %arg1[%c2, %c0_4, %c0_5] : memref<4x8x128xf32, #tpu.memory_space<vmem>>, vector<1x8x128xf32>
    %5 = vector.shape_cast %4 : vector<1x8x128xf32> to vector<8x128xf32>
    %c3 = arith.constant 3 : index
    %c0_6 = arith.constant 0 : index
    %c0_7 = arith.constant 0 : index
    %6 = vector.load %arg1[%c3, %c0_6, %c0_7] : memref<4x8x128xf32, #tpu.memory_space<vmem>>, vector<1x8x128xf32>
    %7 = vector.shape_cast %6 : vector<1x8x128xf32> to vector<8x128xf32>
    %c0_8 = arith.constant 0 : index
    %c0_9 = arith.constant 0 : index
    %8 = vector.load %arg2[%c0_8, %c0_9] : memref<8x128xf32, #tpu.memory_space<vmem>>, vector<8x128xf32>
    %9 = vector.extract_strided_slice %8 {offsets = [0, 0], sizes = [1, 128], strides = [1, 1]} : vector<8x128xf32> to vector<1x128xf32>
    %10 = vector.extract_strided_slice %8 {offsets = [1, 0], sizes = [1, 128], strides = [1, 1]} : vector<8x128xf32> to vector<1x128xf32>
    %11 = vector.extract_strided_slice %8 {offsets = [2, 0], sizes = [1, 128], strides = [1, 1]} : vector<8x128xf32> to vector<1x128xf32>
    %cst = arith.constant 1.000000e+00 : f32
    %12 = vector.broadcast %cst : f32 to vector<1x128xf32>
    %13 = arith.maximumf %9, %12 : vector<1x128xf32>
    %cst_10 = arith.constant 1.000000e+00 : f32
    %14 = vector.broadcast %cst_10 : f32 to vector<1x128xf32>
    %15 = arith.divf %14, %13 : vector<1x128xf32>
    %cst_11 = arith.constant 4.000000e-01 : f32
    %16 = vector.broadcast %cst_11 : f32 to vector<1x128xf32>
    %17 = arith.mulf %10, %16 : vector<1x128xf32>
    %cst_12 = arith.constant 2.000000e-01 : f32
    %18 = vector.broadcast %cst_12 : f32 to vector<1x128xf32>
    %19 = arith.addf %17, %18 : vector<1x128xf32>
    %cst_13 = arith.constant 4.000000e-01 : f32
    %20 = vector.broadcast %cst_13 : f32 to vector<1x128xf32>
    %21 = arith.mulf %11, %20 : vector<1x128xf32>
    %cst_14 = arith.constant 2.000000e-01 : f32
    %22 = vector.broadcast %cst_14 : f32 to vector<1x128xf32>
    %23 = arith.addf %21, %22 : vector<1x128xf32>
    %cst_15 = arith.constant dense<0.000000e+00> : vector<128xf32>
    %24 = vector.multi_reduction <add>, %1, %cst_15 [0] : vector<8x128xf32> to vector<128xf32>
    %25 = vector.shape_cast %24 : vector<128xf32> to vector<1x128xf32>
    %26 = arith.mulf %25, %15 : vector<1x128xf32>
    %cst_16 = arith.constant dense<0.000000e+00> : vector<128xf32>
    %27 = vector.multi_reduction <add>, %3, %cst_16 [0] : vector<8x128xf32> to vector<128xf32>
    %28 = vector.shape_cast %27 : vector<128xf32> to vector<1x128xf32>
    %29 = arith.mulf %28, %15 : vector<1x128xf32>
    %cst_17 = arith.constant dense<0.000000e+00> : vector<128xf32>
    %30 = vector.multi_reduction <add>, %5, %cst_17 [0] : vector<8x128xf32> to vector<128xf32>
    %31 = vector.shape_cast %30 : vector<128xf32> to vector<1x128xf32>
    %32 = arith.mulf %31, %15 : vector<1x128xf32>
    %33 = tpu.iota {dimensions = array<i32: 0>} : vector<8x128xi32>
    %34 = arith.sitofp %33 : vector<8x128xi32> to vector<8x128xf32>
    %35 = vector.broadcast %9 : vector<1x128xf32> to vector<8x128xf32>
    %36 = arith.cmpf olt, %34, %35 : vector<8x128xf32>
    %37 = arith.extui %36 : vector<8x128xi1> to vector<8x128xi32>
    %38 = arith.sitofp %37 : vector<8x128xi32> to vector<8x128xf32>
    %39 = vector.broadcast %19 : vector<1x128xf32> to vector<8x128xf32>
    %40 = arith.subf %1, %39 : vector<8x128xf32>
    %41 = arith.mulf %40, %38 : vector<8x128xf32>
    %42 = vector.broadcast %23 : vector<1x128xf32> to vector<8x128xf32>
    %43 = arith.subf %3, %42 : vector<8x128xf32>
    %44 = arith.mulf %43, %38 : vector<8x128xf32>
    %45 = arith.mulf %5, %38 : vector<8x128xf32>
    %46 = arith.mulf %7, %38 : vector<8x128xf32>
    %47 = vector.broadcast %26 : vector<1x128xf32> to vector<8x128xf32>
    %48 = arith.subf %1, %47 : vector<8x128xf32>
    %49 = arith.mulf %48, %38 : vector<8x128xf32>
    %50 = vector.broadcast %29 : vector<1x128xf32> to vector<8x128xf32>
    %51 = arith.subf %3, %50 : vector<8x128xf32>
    %52 = arith.mulf %51, %38 : vector<8x128xf32>
    %53 = vector.broadcast %32 : vector<1x128xf32> to vector<8x128xf32>
    %54 = arith.subf %5, %53 : vector<8x128xf32>
    %55 = arith.mulf %54, %38 : vector<8x128xf32>
    %56 = vector.extract_strided_slice %41 {offsets = [0, 0], sizes = [1, 128], strides = [1, 1]} : vector<8x128xf32> to vector<1x128xf32>
    %c0_18 = arith.constant 0 : index
    %c0_19 = arith.constant 0 : index
    %c0_20 = arith.constant 0 : index
    %57 = vector.load %arg3[%c0_18, %c0_19, %c0_20] : memref<8x64x128xf32, #tpu.memory_space<vmem>>, vector<1x64x128xf32>
    %58 = vector.shape_cast %57 : vector<1x64x128xf32> to vector<64x128xf32>
    %59 = vector.broadcast %56 : vector<1x128xf32> to vector<64x128xf32>
    %60 = arith.mulf %59, %58 : vector<64x128xf32>
    %61 = vector.extract_strided_slice %44 {offsets = [0, 0], sizes = [1, 128], strides = [1, 1]} : vector<8x128xf32> to vector<1x128xf32>
    %c1_21 = arith.constant 1 : index
    %c0_22 = arith.constant 0 : index
    %c0_23 = arith.constant 0 : index
    %62 = vector.load %arg3[%c1_21, %c0_22, %c0_23] : memref<8x64x128xf32, #tpu.memory_space<vmem>>, vector<1x64x128xf32>
    %63 = vector.shape_cast %62 : vector<1x64x128xf32> to vector<64x128xf32>
    %64 = vector.broadcast %61 : vector<1x128xf32> to vector<64x128xf32>
    %65 = arith.mulf %64, %63 : vector<64x128xf32>
    %66 = arith.addf %60, %65 : vector<64x128xf32>
    %67 = vector.extract_strided_slice %45 {offsets = [0, 0], sizes = [1, 128], strides = [1, 1]} : vector<8x128xf32> to vector<1x128xf32>
    %c2_24 = arith.constant 2 : index
    %c0_25 = arith.constant 0 : index
    %c0_26 = arith.constant 0 : index
    %68 = vector.load %arg3[%c2_24, %c0_25, %c0_26] : memref<8x64x128xf32, #tpu.memory_space<vmem>>, vector<1x64x128xf32>
    %69 = vector.shape_cast %68 : vector<1x64x128xf32> to vector<64x128xf32>
    %70 = vector.broadcast %67 : vector<1x128xf32> to vector<64x128xf32>
    %71 = arith.mulf %70, %69 : vector<64x128xf32>
    %72 = arith.addf %66, %71 : vector<64x128xf32>
    %73 = vector.extract_strided_slice %46 {offsets = [0, 0], sizes = [1, 128], strides = [1, 1]} : vector<8x128xf32> to vector<1x128xf32>
    %c3_27 = arith.constant 3 : index
    %c0_28 = arith.constant 0 : index
    %c0_29 = arith.constant 0 : index
    %74 = vector.load %arg3[%c3_27, %c0_28, %c0_29] : memref<8x64x128xf32, #tpu.memory_space<vmem>>, vector<1x64x128xf32>
    %75 = vector.shape_cast %74 : vector<1x64x128xf32> to vector<64x128xf32>
    %76 = vector.broadcast %73 : vector<1x128xf32> to vector<64x128xf32>
    %77 = arith.mulf %76, %75 : vector<64x128xf32>
    %78 = arith.addf %72, %77 : vector<64x128xf32>
    %79 = vector.extract_strided_slice %49 {offsets = [0, 0], sizes = [1, 128], strides = [1, 1]} : vector<8x128xf32> to vector<1x128xf32>
    %c4 = arith.constant 4 : index
    %c0_30 = arith.constant 0 : index
    %c0_31 = arith.constant 0 : index
    %80 = vector.load %arg3[%c4, %c0_30, %c0_31] : memref<8x64x128xf32, #tpu.memory_space<vmem>>, vector<1x64x128xf32>
    %81 = vector.shape_cast %80 : vector<1x64x128xf32> to vector<64x128xf32>
    %82 = vector.broadcast %79 : vector<1x128xf32> to vector<64x128xf32>
    %83 = arith.mulf %82, %81 : vector<64x128xf32>
    %84 = arith.addf %78, %83 : vector<64x128xf32>
    %85 = vector.extract_strided_slice %52 {offsets = [0, 0], sizes = [1, 128], strides = [1, 1]} : vector<8x128xf32> to vector<1x128xf32>
    %c5 = arith.constant 5 : index
    %c0_32 = arith.constant 0 : index
    %c0_33 = arith.constant 0 : index
    %86 = vector.load %arg3[%c5, %c0_32, %c0_33] : memref<8x64x128xf32, #tpu.memory_space<vmem>>, vector<1x64x128xf32>
    %87 = vector.shape_cast %86 : vector<1x64x128xf32> to vector<64x128xf32>
    %88 = vector.broadcast %85 : vector<1x128xf32> to vector<64x128xf32>
    %89 = arith.mulf %88, %87 : vector<64x128xf32>
    %90 = arith.addf %84, %89 : vector<64x128xf32>
    %91 = vector.extract_strided_slice %55 {offsets = [0, 0], sizes = [1, 128], strides = [1, 1]} : vector<8x128xf32> to vector<1x128xf32>
    %c6 = arith.constant 6 : index
    %c0_34 = arith.constant 0 : index
    %c0_35 = arith.constant 0 : index
    %92 = vector.load %arg3[%c6, %c0_34, %c0_35] : memref<8x64x128xf32, #tpu.memory_space<vmem>>, vector<1x64x128xf32>
    %93 = vector.shape_cast %92 : vector<1x64x128xf32> to vector<64x128xf32>
    %94 = vector.broadcast %91 : vector<1x128xf32> to vector<64x128xf32>
    %95 = arith.mulf %94, %93 : vector<64x128xf32>
    %96 = arith.addf %90, %95 : vector<64x128xf32>
    %97 = vector.extract_strided_slice %41 {offsets = [1, 0], sizes = [1, 128], strides = [1, 1]} : vector<8x128xf32> to vector<1x128xf32>
    %c0_36 = arith.constant 0 : index
    %c0_37 = arith.constant 0 : index
    %c0_38 = arith.constant 0 : index
    %98 = vector.load %arg3[%c0_36, %c0_37, %c0_38] : memref<8x64x128xf32, #tpu.memory_space<vmem>>, vector<1x64x128xf32>
    %99 = vector.shape_cast %98 : vector<1x64x128xf32> to vector<64x128xf32>
    %100 = vector.broadcast %97 : vector<1x128xf32> to vector<64x128xf32>
    %101 = arith.mulf %100, %99 : vector<64x128xf32>
    %102 = vector.extract_strided_slice %44 {offsets = [1, 0], sizes = [1, 128], strides = [1, 1]} : vector<8x128xf32> to vector<1x128xf32>
    %c1_39 = arith.constant 1 : index
    %c0_40 = arith.constant 0 : index
    %c0_41 = arith.constant 0 : index
    %103 = vector.load %arg3[%c1_39, %c0_40, %c0_41] : memref<8x64x128xf32, #tpu.memory_space<vmem>>, vector<1x64x128xf32>
    %104 = vector.shape_cast %103 : vector<1x64x128xf32> to vector<64x128xf32>
    %105 = vector.broadcast %102 : vector<1x128xf32> to vector<64x128xf32>
    %106 = arith.mulf %105, %104 : vector<64x128xf32>
    %107 = arith.addf %101, %106 : vector<64x128xf32>
    %108 = vector.extract_strided_slice %45 {offsets = [1, 0], sizes = [1, 128], strides = [1, 1]} : vector<8x128xf32> to vector<1x128xf32>
    %c2_42 = arith.constant 2 : index
    %c0_43 = arith.constant 0 : index
    %c0_44 = arith.constant 0 : index
    %109 = vector.load %arg3[%c2_42, %c0_43, %c0_44] : memref<8x64x128xf32, #tpu.memory_space<vmem>>, vector<1x64x128xf32>
    %110 = vector.shape_cast %109 : vector<1x64x128xf32> to vector<64x128xf32>
    %111 = vector.broadcast %108 : vector<1x128xf32> to vector<64x128xf32>
    %112 = arith.mulf %111, %110 : vector<64x128xf32>
    %113 = arith.addf %107, %112 : vector<64x128xf32>
    %114 = vector.extract_strided_slice %46 {offsets = [1, 0], sizes = [1, 128], strides = [1, 1]} : vector<8x128xf32> to vector<1x128xf32>
    %c3_45 = arith.constant 3 : index
    %c0_46 = arith.constant 0 : index
    %c0_47 = arith.constant 0 : index
    %115 = vector.load %arg3[%c3_45, %c0_46, %c0_47] : memref<8x64x128xf32, #tpu.memory_space<vmem>>, vector<1x64x128xf32>
    %116 = vector.shape_cast %115 : vector<1x64x128xf32> to vector<64x128xf32>
    %117 = vector.broadcast %114 : vector<1x128xf32> to vector<64x128xf32>
    %118 = arith.mulf %117, %116 : vector<64x128xf32>
    %119 = arith.addf %113, %118 : vector<64x128xf32>
    %120 = vector.extract_strided_slice %49 {offsets = [1, 0], sizes = [1, 128], strides = [1, 1]} : vector<8x128xf32> to vector<1x128xf32>
    %c4_48 = arith.constant 4 : index
    %c0_49 = arith.constant 0 : index
    %c0_50 = arith.constant 0 : index
    %121 = vector.load %arg3[%c4_48, %c0_49, %c0_50] : memref<8x64x128xf32, #tpu.memory_space<vmem>>, vector<1x64x128xf32>
    %122 = vector.shape_cast %121 : vector<1x64x128xf32> to vector<64x128xf32>
    %123 = vector.broadcast %120 : vector<1x128xf32> to vector<64x128xf32>
    %124 = arith.mulf %123, %122 : vector<64x128xf32>
    %125 = arith.addf %119, %124 : vector<64x128xf32>
    %126 = vector.extract_strided_slice %52 {offsets = [1, 0], sizes = [1, 128], strides = [1, 1]} : vector<8x128xf32> to vector<1x128xf32>
    %c5_51 = arith.constant 5 : index
    %c0_52 = arith.constant 0 : index
    %c0_53 = arith.constant 0 : index
    %127 = vector.load %arg3[%c5_51, %c0_52, %c0_53] : memref<8x64x128xf32, #tpu.memory_space<vmem>>, vector<1x64x128xf32>
    %128 = vector.shape_cast %127 : vector<1x64x128xf32> to vector<64x128xf32>
    %129 = vector.broadcast %126 : vector<1x128xf32> to vector<64x128xf32>
    %130 = arith.mulf %129, %128 : vector<64x128xf32>
    %131 = arith.addf %125, %130 : vector<64x128xf32>
    %132 = vector.extract_strided_slice %55 {offsets = [1, 0], sizes = [1, 128], strides = [1, 1]} : vector<8x128xf32> to vector<1x128xf32>
    %c6_54 = arith.constant 6 : index
    %c0_55 = arith.constant 0 : index
    %c0_56 = arith.constant 0 : index
    %133 = vector.load %arg3[%c6_54, %c0_55, %c0_56] : memref<8x64x128xf32, #tpu.memory_space<vmem>>, vector<1x64x128xf32>
    %134 = vector.shape_cast %133 : vector<1x64x128xf32> to vector<64x128xf32>
    %135 = vector.broadcast %132 : vector<1x128xf32> to vector<64x128xf32>
    %136 = arith.mulf %135, %134 : vector<64x128xf32>
    %137 = arith.addf %131, %136 : vector<64x128xf32>
    %138 = arith.maximumf %96, %137 : vector<64x128xf32>
    %139 = vector.extract_strided_slice %41 {offsets = [2, 0], sizes = [1, 128], strides = [1, 1]} : vector<8x128xf32> to vector<1x128xf32>
    %c0_57 = arith.constant 0 : index
    %c0_58 = arith.constant 0 : index
    %c0_59 = arith.constant 0 : index
    %140 = vector.load %arg3[%c0_57, %c0_58, %c0_59] : memref<8x64x128xf32, #tpu.memory_space<vmem>>, vector<1x64x128xf32>
    %141 = vector.shape_cast %140 : vector<1x64x128xf32> to vector<64x128xf32>
    %142 = vector.broadcast %139 : vector<1x128xf32> to vector<64x128xf32>
    %143 = arith.mulf %142, %141 : vector<64x128xf32>
    %144 = vector.extract_strided_slice %44 {offsets = [2, 0], sizes = [1, 128], strides = [1, 1]} : vector<8x128xf32> to vector<1x128xf32>
    %c1_60 = arith.constant 1 : index
    %c0_61 = arith.constant 0 : index
    %c0_62 = arith.constant 0 : index
    %145 = vector.load %arg3[%c1_60, %c0_61, %c0_62] : memref<8x64x128xf32, #tpu.memory_space<vmem>>, vector<1x64x128xf32>
    %146 = vector.shape_cast %145 : vector<1x64x128xf32> to vector<64x128xf32>
    %147 = vector.broadcast %144 : vector<1x128xf32> to vector<64x128xf32>
    %148 = arith.mulf %147, %146 : vector<64x128xf32>
    %149 = arith.addf %143, %148 : vector<64x128xf32>
    %150 = vector.extract_strided_slice %45 {offsets = [2, 0], sizes = [1, 128], strides = [1, 1]} : vector<8x128xf32> to vector<1x128xf32>
    %c2_63 = arith.constant 2 : index
    %c0_64 = arith.constant 0 : index
    %c0_65 = arith.constant 0 : index
    %151 = vector.load %arg3[%c2_63, %c0_64, %c0_65] : memref<8x64x128xf32, #tpu.memory_space<vmem>>, vector<1x64x128xf32>
    %152 = vector.shape_cast %151 : vector<1x64x128xf32> to vector<64x128xf32>
    %153 = vector.broadcast %150 : vector<1x128xf32> to vector<64x128xf32>
    %154 = arith.mulf %153, %152 : vector<64x128xf32>
    %155 = arith.addf %149, %154 : vector<64x128xf32>
    %156 = vector.extract_strided_slice %46 {offsets = [2, 0], sizes = [1, 128], strides = [1, 1]} : vector<8x128xf32> to vector<1x128xf32>
    %c3_66 = arith.constant 3 : index
    %c0_67 = arith.constant 0 : index
    %c0_68 = arith.constant 0 : index
    %157 = vector.load %arg3[%c3_66, %c0_67, %c0_68] : memref<8x64x128xf32, #tpu.memory_space<vmem>>, vector<1x64x128xf32>
    %158 = vector.shape_cast %157 : vector<1x64x128xf32> to vector<64x128xf32>
    %159 = vector.broadcast %156 : vector<1x128xf32> to vector<64x128xf32>
    %160 = arith.mulf %159, %158 : vector<64x128xf32>
    %161 = arith.addf %155, %160 : vector<64x128xf32>
    %162 = vector.extract_strided_slice %49 {offsets = [2, 0], sizes = [1, 128], strides = [1, 1]} : vector<8x128xf32> to vector<1x128xf32>
    %c4_69 = arith.constant 4 : index
    %c0_70 = arith.constant 0 : index
    %c0_71 = arith.constant 0 : index
    %163 = vector.load %arg3[%c4_69, %c0_70, %c0_71] : memref<8x64x128xf32, #tpu.memory_space<vmem>>, vector<1x64x128xf32>
    %164 = vector.shape_cast %163 : vector<1x64x128xf32> to vector<64x128xf32>
    %165 = vector.broadcast %162 : vector<1x128xf32> to vector<64x128xf32>
    %166 = arith.mulf %165, %164 : vector<64x128xf32>
    %167 = arith.addf %161, %166 : vector<64x128xf32>
    %168 = vector.extract_strided_slice %52 {offsets = [2, 0], sizes = [1, 128], strides = [1, 1]} : vector<8x128xf32> to vector<1x128xf32>
    %c5_72 = arith.constant 5 : index
    %c0_73 = arith.constant 0 : index
    %c0_74 = arith.constant 0 : index
    %169 = vector.load %arg3[%c5_72, %c0_73, %c0_74] : memref<8x64x128xf32, #tpu.memory_space<vmem>>, vector<1x64x128xf32>
    %170 = vector.shape_cast %169 : vector<1x64x128xf32> to vector<64x128xf32>
    %171 = vector.broadcast %168 : vector<1x128xf32> to vector<64x128xf32>
    %172 = arith.mulf %171, %170 : vector<64x128xf32>
    %173 = arith.addf %167, %172 : vector<64x128xf32>
    %174 = vector.extract_strided_slice %55 {offsets = [2, 0], sizes = [1, 128], strides = [1, 1]} : vector<8x128xf32> to vector<1x128xf32>
    %c6_75 = arith.constant 6 : index
    %c0_76 = arith.constant 0 : index
    %c0_77 = arith.constant 0 : index
    %175 = vector.load %arg3[%c6_75, %c0_76, %c0_77] : memref<8x64x128xf32, #tpu.memory_space<vmem>>, vector<1x64x128xf32>
    %176 = vector.shape_cast %175 : vector<1x64x128xf32> to vector<64x128xf32>
    %177 = vector.broadcast %174 : vector<1x128xf32> to vector<64x128xf32>
    %178 = arith.mulf %177, %176 : vector<64x128xf32>
    %179 = arith.addf %173, %178 : vector<64x128xf32>
    %180 = arith.maximumf %138, %179 : vector<64x128xf32>
    %181 = vector.extract_strided_slice %41 {offsets = [3, 0], sizes = [1, 128], strides = [1, 1]} : vector<8x128xf32> to vector<1x128xf32>
    %c0_78 = arith.constant 0 : index
    %c0_79 = arith.constant 0 : index
    %c0_80 = arith.constant 0 : index
    %182 = vector.load %arg3[%c0_78, %c0_79, %c0_80] : memref<8x64x128xf32, #tpu.memory_space<vmem>>, vector<1x64x128xf32>
    %183 = vector.shape_cast %182 : vector<1x64x128xf32> to vector<64x128xf32>
    %184 = vector.broadcast %181 : vector<1x128xf32> to vector<64x128xf32>
    %185 = arith.mulf %184, %183 : vector<64x128xf32>
    %186 = vector.extract_strided_slice %44 {offsets = [3, 0], sizes = [1, 128], strides = [1, 1]} : vector<8x128xf32> to vector<1x128xf32>
    %c1_81 = arith.constant 1 : index
    %c0_82 = arith.constant 0 : index
    %c0_83 = arith.constant 0 : index
    %187 = vector.load %arg3[%c1_81, %c0_82, %c0_83] : memref<8x64x128xf32, #tpu.memory_space<vmem>>, vector<1x64x128xf32>
    %188 = vector.shape_cast %187 : vector<1x64x128xf32> to vector<64x128xf32>
    %189 = vector.broadcast %186 : vector<1x128xf32> to vector<64x128xf32>
    %190 = arith.mulf %189, %188 : vector<64x128xf32>
    %191 = arith.addf %185, %190 : vector<64x128xf32>
    %192 = vector.extract_strided_slice %45 {offsets = [3, 0], sizes = [1, 128], strides = [1, 1]} : vector<8x128xf32> to vector<1x128xf32>
    %c2_84 = arith.constant 2 : index
    %c0_85 = arith.constant 0 : index
    %c0_86 = arith.constant 0 : index
    %193 = vector.load %arg3[%c2_84, %c0_85, %c0_86] : memref<8x64x128xf32, #tpu.memory_space<vmem>>, vector<1x64x128xf32>
    %194 = vector.shape_cast %193 : vector<1x64x128xf32> to vector<64x128xf32>
    %195 = vector.broadcast %192 : vector<1x128xf32> to vector<64x128xf32>
    %196 = arith.mulf %195, %194 : vector<64x128xf32>
    %197 = arith.addf %191, %196 : vector<64x128xf32>
    %198 = vector.extract_strided_slice %46 {offsets = [3, 0], sizes = [1, 128], strides = [1, 1]} : vector<8x128xf32> to vector<1x128xf32>
    %c3_87 = arith.constant 3 : index
    %c0_88 = arith.constant 0 : index
    %c0_89 = arith.constant 0 : index
    %199 = vector.load %arg3[%c3_87, %c0_88, %c0_89] : memref<8x64x128xf32, #tpu.memory_space<vmem>>, vector<1x64x128xf32>
    %200 = vector.shape_cast %199 : vector<1x64x128xf32> to vector<64x128xf32>
    %201 = vector.broadcast %198 : vector<1x128xf32> to vector<64x128xf32>
    %202 = arith.mulf %201, %200 : vector<64x128xf32>
    %203 = arith.addf %197, %202 : vector<64x128xf32>
    %204 = vector.extract_strided_slice %49 {offsets = [3, 0], sizes = [1, 128], strides = [1, 1]} : vector<8x128xf32> to vector<1x128xf32>
    %c4_90 = arith.constant 4 : index
    %c0_91 = arith.constant 0 : index
    %c0_92 = arith.constant 0 : index
    %205 = vector.load %arg3[%c4_90, %c0_91, %c0_92] : memref<8x64x128xf32, #tpu.memory_space<vmem>>, vector<1x64x128xf32>
    %206 = vector.shape_cast %205 : vector<1x64x128xf32> to vector<64x128xf32>
    %207 = vector.broadcast %204 : vector<1x128xf32> to vector<64x128xf32>
    %208 = arith.mulf %207, %206 : vector<64x128xf32>
    %209 = arith.addf %203, %208 : vector<64x128xf32>
    %210 = vector.extract_strided_slice %52 {offsets = [3, 0], sizes = [1, 128], strides = [1, 1]} : vector<8x128xf32> to vector<1x128xf32>
    %c5_93 = arith.constant 5 : index
    %c0_94 = arith.constant 0 : index
    %c0_95 = arith.constant 0 : index
    %211 = vector.load %arg3[%c5_93, %c0_94, %c0_95] : memref<8x64x128xf32, #tpu.memory_space<vmem>>, vector<1x64x128xf32>
    %212 = vector.shape_cast %211 : vector<1x64x128xf32> to vector<64x128xf32>
    %213 = vector.broadcast %210 : vector<1x128xf32> to vector<64x128xf32>
    %214 = arith.mulf %213, %212 : vector<64x128xf32>
    %215 = arith.addf %209, %214 : vector<64x128xf32>
    %216 = vector.extract_strided_slice %55 {offsets = [3, 0], sizes = [1, 128], strides = [1, 1]} : vector<8x128xf32> to vector<1x128xf32>
    %c6_96 = arith.constant 6 : index
    %c0_97 = arith.constant 0 : index
    %c0_98 = arith.constant 0 : index
    %217 = vector.load %arg3[%c6_96, %c0_97, %c0_98] : memref<8x64x128xf32, #tpu.memory_space<vmem>>, vector<1x64x128xf32>
    %218 = vector.shape_cast %217 : vector<1x64x128xf32> to vector<64x128xf32>
    %219 = vector.broadcast %216 : vector<1x128xf32> to vector<64x128xf32>
    %220 = arith.mulf %219, %218 : vector<64x128xf32>
    %221 = arith.addf %215, %220 : vector<64x128xf32>
    %222 = arith.maximumf %180, %221 : vector<64x128xf32>
    %223 = vector.extract_strided_slice %41 {offsets = [4, 0], sizes = [1, 128], strides = [1, 1]} : vector<8x128xf32> to vector<1x128xf32>
    %c0_99 = arith.constant 0 : index
    %c0_100 = arith.constant 0 : index
    %c0_101 = arith.constant 0 : index
    %224 = vector.load %arg3[%c0_99, %c0_100, %c0_101] : memref<8x64x128xf32, #tpu.memory_space<vmem>>, vector<1x64x128xf32>
    %225 = vector.shape_cast %224 : vector<1x64x128xf32> to vector<64x128xf32>
    %226 = vector.broadcast %223 : vector<1x128xf32> to vector<64x128xf32>
    %227 = arith.mulf %226, %225 : vector<64x128xf32>
    %228 = vector.extract_strided_slice %44 {offsets = [4, 0], sizes = [1, 128], strides = [1, 1]} : vector<8x128xf32> to vector<1x128xf32>
    %c1_102 = arith.constant 1 : index
    %c0_103 = arith.constant 0 : index
    %c0_104 = arith.constant 0 : index
    %229 = vector.load %arg3[%c1_102, %c0_103, %c0_104] : memref<8x64x128xf32, #tpu.memory_space<vmem>>, vector<1x64x128xf32>
    %230 = vector.shape_cast %229 : vector<1x64x128xf32> to vector<64x128xf32>
    %231 = vector.broadcast %228 : vector<1x128xf32> to vector<64x128xf32>
    %232 = arith.mulf %231, %230 : vector<64x128xf32>
    %233 = arith.addf %227, %232 : vector<64x128xf32>
    %234 = vector.extract_strided_slice %45 {offsets = [4, 0], sizes = [1, 128], strides = [1, 1]} : vector<8x128xf32> to vector<1x128xf32>
    %c2_105 = arith.constant 2 : index
    %c0_106 = arith.constant 0 : index
    %c0_107 = arith.constant 0 : index
    %235 = vector.load %arg3[%c2_105, %c0_106, %c0_107] : memref<8x64x128xf32, #tpu.memory_space<vmem>>, vector<1x64x128xf32>
    %236 = vector.shape_cast %235 : vector<1x64x128xf32> to vector<64x128xf32>
    %237 = vector.broadcast %234 : vector<1x128xf32> to vector<64x128xf32>
    %238 = arith.mulf %237, %236 : vector<64x128xf32>
    %239 = arith.addf %233, %238 : vector<64x128xf32>
    %240 = vector.extract_strided_slice %46 {offsets = [4, 0], sizes = [1, 128], strides = [1, 1]} : vector<8x128xf32> to vector<1x128xf32>
    %c3_108 = arith.constant 3 : index
    %c0_109 = arith.constant 0 : index
    %c0_110 = arith.constant 0 : index
    %241 = vector.load %arg3[%c3_108, %c0_109, %c0_110] : memref<8x64x128xf32, #tpu.memory_space<vmem>>, vector<1x64x128xf32>
    %242 = vector.shape_cast %241 : vector<1x64x128xf32> to vector<64x128xf32>
    %243 = vector.broadcast %240 : vector<1x128xf32> to vector<64x128xf32>
    %244 = arith.mulf %243, %242 : vector<64x128xf32>
    %245 = arith.addf %239, %244 : vector<64x128xf32>
    %246 = vector.extract_strided_slice %49 {offsets = [4, 0], sizes = [1, 128], strides = [1, 1]} : vector<8x128xf32> to vector<1x128xf32>
    %c4_111 = arith.constant 4 : index
    %c0_112 = arith.constant 0 : index
    %c0_113 = arith.constant 0 : index
    %247 = vector.load %arg3[%c4_111, %c0_112, %c0_113] : memref<8x64x128xf32, #tpu.memory_space<vmem>>, vector<1x64x128xf32>
    %248 = vector.shape_cast %247 : vector<1x64x128xf32> to vector<64x128xf32>
    %249 = vector.broadcast %246 : vector<1x128xf32> to vector<64x128xf32>
    %250 = arith.mulf %249, %248 : vector<64x128xf32>
    %251 = arith.addf %245, %250 : vector<64x128xf32>
    %252 = vector.extract_strided_slice %52 {offsets = [4, 0], sizes = [1, 128], strides = [1, 1]} : vector<8x128xf32> to vector<1x128xf32>
    %c5_114 = arith.constant 5 : index
    %c0_115 = arith.constant 0 : index
    %c0_116 = arith.constant 0 : index
    %253 = vector.load %arg3[%c5_114, %c0_115, %c0_116] : memref<8x64x128xf32, #tpu.memory_space<vmem>>, vector<1x64x128xf32>
    %254 = vector.shape_cast %253 : vector<1x64x128xf32> to vector<64x128xf32>
    %255 = vector.broadcast %252 : vector<1x128xf32> to vector<64x128xf32>
    %256 = arith.mulf %255, %254 : vector<64x128xf32>
    %257 = arith.addf %251, %256 : vector<64x128xf32>
    %258 = vector.extract_strided_slice %55 {offsets = [4, 0], sizes = [1, 128], strides = [1, 1]} : vector<8x128xf32> to vector<1x128xf32>
    %c6_117 = arith.constant 6 : index
    %c0_118 = arith.constant 0 : index
    %c0_119 = arith.constant 0 : index
    %259 = vector.load %arg3[%c6_117, %c0_118, %c0_119] : memref<8x64x128xf32, #tpu.memory_space<vmem>>, vector<1x64x128xf32>
    %260 = vector.shape_cast %259 : vector<1x64x128xf32> to vector<64x128xf32>
    %261 = vector.broadcast %258 : vector<1x128xf32> to vector<64x128xf32>
    %262 = arith.mulf %261, %260 : vector<64x128xf32>
    %263 = arith.addf %257, %262 : vector<64x128xf32>
    %264 = arith.maximumf %222, %263 : vector<64x128xf32>
    %265 = vector.extract_strided_slice %41 {offsets = [5, 0], sizes = [1, 128], strides = [1, 1]} : vector<8x128xf32> to vector<1x128xf32>
    %c0_120 = arith.constant 0 : index
    %c0_121 = arith.constant 0 : index
    %c0_122 = arith.constant 0 : index
    %266 = vector.load %arg3[%c0_120, %c0_121, %c0_122] : memref<8x64x128xf32, #tpu.memory_space<vmem>>, vector<1x64x128xf32>
    %267 = vector.shape_cast %266 : vector<1x64x128xf32> to vector<64x128xf32>
    %268 = vector.broadcast %265 : vector<1x128xf32> to vector<64x128xf32>
    %269 = arith.mulf %268, %267 : vector<64x128xf32>
    %270 = vector.extract_strided_slice %44 {offsets = [5, 0], sizes = [1, 128], strides = [1, 1]} : vector<8x128xf32> to vector<1x128xf32>
    %c1_123 = arith.constant 1 : index
    %c0_124 = arith.constant 0 : index
    %c0_125 = arith.constant 0 : index
    %271 = vector.load %arg3[%c1_123, %c0_124, %c0_125] : memref<8x64x128xf32, #tpu.memory_space<vmem>>, vector<1x64x128xf32>
    %272 = vector.shape_cast %271 : vector<1x64x128xf32> to vector<64x128xf32>
    %273 = vector.broadcast %270 : vector<1x128xf32> to vector<64x128xf32>
    %274 = arith.mulf %273, %272 : vector<64x128xf32>
    %275 = arith.addf %269, %274 : vector<64x128xf32>
    %276 = vector.extract_strided_slice %45 {offsets = [5, 0], sizes = [1, 128], strides = [1, 1]} : vector<8x128xf32> to vector<1x128xf32>
    %c2_126 = arith.constant 2 : index
    %c0_127 = arith.constant 0 : index
    %c0_128 = arith.constant 0 : index
    %277 = vector.load %arg3[%c2_126, %c0_127, %c0_128] : memref<8x64x128xf32, #tpu.memory_space<vmem>>, vector<1x64x128xf32>
    %278 = vector.shape_cast %277 : vector<1x64x128xf32> to vector<64x128xf32>
    %279 = vector.broadcast %276 : vector<1x128xf32> to vector<64x128xf32>
    %280 = arith.mulf %279, %278 : vector<64x128xf32>
    %281 = arith.addf %275, %280 : vector<64x128xf32>
    %282 = vector.extract_strided_slice %46 {offsets = [5, 0], sizes = [1, 128], strides = [1, 1]} : vector<8x128xf32> to vector<1x128xf32>
    %c3_129 = arith.constant 3 : index
    %c0_130 = arith.constant 0 : index
    %c0_131 = arith.constant 0 : index
    %283 = vector.load %arg3[%c3_129, %c0_130, %c0_131] : memref<8x64x128xf32, #tpu.memory_space<vmem>>, vector<1x64x128xf32>
    %284 = vector.shape_cast %283 : vector<1x64x128xf32> to vector<64x128xf32>
    %285 = vector.broadcast %282 : vector<1x128xf32> to vector<64x128xf32>
    %286 = arith.mulf %285, %284 : vector<64x128xf32>
    %287 = arith.addf %281, %286 : vector<64x128xf32>
    %288 = vector.extract_strided_slice %49 {offsets = [5, 0], sizes = [1, 128], strides = [1, 1]} : vector<8x128xf32> to vector<1x128xf32>
    %c4_132 = arith.constant 4 : index
    %c0_133 = arith.constant 0 : index
    %c0_134 = arith.constant 0 : index
    %289 = vector.load %arg3[%c4_132, %c0_133, %c0_134] : memref<8x64x128xf32, #tpu.memory_space<vmem>>, vector<1x64x128xf32>
    %290 = vector.shape_cast %289 : vector<1x64x128xf32> to vector<64x128xf32>
    %291 = vector.broadcast %288 : vector<1x128xf32> to vector<64x128xf32>
    %292 = arith.mulf %291, %290 : vector<64x128xf32>
    %293 = arith.addf %287, %292 : vector<64x128xf32>
    %294 = vector.extract_strided_slice %52 {offsets = [5, 0], sizes = [1, 128], strides = [1, 1]} : vector<8x128xf32> to vector<1x128xf32>
    %c5_135 = arith.constant 5 : index
    %c0_136 = arith.constant 0 : index
    %c0_137 = arith.constant 0 : index
    %295 = vector.load %arg3[%c5_135, %c0_136, %c0_137] : memref<8x64x128xf32, #tpu.memory_space<vmem>>, vector<1x64x128xf32>
    %296 = vector.shape_cast %295 : vector<1x64x128xf32> to vector<64x128xf32>
    %297 = vector.broadcast %294 : vector<1x128xf32> to vector<64x128xf32>
    %298 = arith.mulf %297, %296 : vector<64x128xf32>
    %299 = arith.addf %293, %298 : vector<64x128xf32>
    %300 = vector.extract_strided_slice %55 {offsets = [5, 0], sizes = [1, 128], strides = [1, 1]} : vector<8x128xf32> to vector<1x128xf32>
    %c6_138 = arith.constant 6 : index
    %c0_139 = arith.constant 0 : index
    %c0_140 = arith.constant 0 : index
    %301 = vector.load %arg3[%c6_138, %c0_139, %c0_140] : memref<8x64x128xf32, #tpu.memory_space<vmem>>, vector<1x64x128xf32>
    %302 = vector.shape_cast %301 : vector<1x64x128xf32> to vector<64x128xf32>
    %303 = vector.broadcast %300 : vector<1x128xf32> to vector<64x128xf32>
    %304 = arith.mulf %303, %302 : vector<64x128xf32>
    %305 = arith.addf %299, %304 : vector<64x128xf32>
    %306 = arith.maximumf %264, %305 : vector<64x128xf32>
    %307 = vector.extract_strided_slice %41 {offsets = [6, 0], sizes = [1, 128], strides = [1, 1]} : vector<8x128xf32> to vector<1x128xf32>
    %c0_141 = arith.constant 0 : index
    %c0_142 = arith.constant 0 : index
    %c0_143 = arith.constant 0 : index
    %308 = vector.load %arg3[%c0_141, %c0_142, %c0_143] : memref<8x64x128xf32, #tpu.memory_space<vmem>>, vector<1x64x128xf32>
    %309 = vector.shape_cast %308 : vector<1x64x128xf32> to vector<64x128xf32>
    %310 = vector.broadcast %307 : vector<1x128xf32> to vector<64x128xf32>
    %311 = arith.mulf %310, %309 : vector<64x128xf32>
    %312 = vector.extract_strided_slice %44 {offsets = [6, 0], sizes = [1, 128], strides = [1, 1]} : vector<8x128xf32> to vector<1x128xf32>
    %c1_144 = arith.constant 1 : index
    %c0_145 = arith.constant 0 : index
    %c0_146 = arith.constant 0 : index
    %313 = vector.load %arg3[%c1_144, %c0_145, %c0_146] : memref<8x64x128xf32, #tpu.memory_space<vmem>>, vector<1x64x128xf32>
    %314 = vector.shape_cast %313 : vector<1x64x128xf32> to vector<64x128xf32>
    %315 = vector.broadcast %312 : vector<1x128xf32> to vector<64x128xf32>
    %316 = arith.mulf %315, %314 : vector<64x128xf32>
    %317 = arith.addf %311, %316 : vector<64x128xf32>
    %318 = vector.extract_strided_slice %45 {offsets = [6, 0], sizes = [1, 128], strides = [1, 1]} : vector<8x128xf32> to vector<1x128xf32>
    %c2_147 = arith.constant 2 : index
    %c0_148 = arith.constant 0 : index
    %c0_149 = arith.constant 0 : index
    %319 = vector.load %arg3[%c2_147, %c0_148, %c0_149] : memref<8x64x128xf32, #tpu.memory_space<vmem>>, vector<1x64x128xf32>
    %320 = vector.shape_cast %319 : vector<1x64x128xf32> to vector<64x128xf32>
    %321 = vector.broadcast %318 : vector<1x128xf32> to vector<64x128xf32>
    %322 = arith.mulf %321, %320 : vector<64x128xf32>
    %323 = arith.addf %317, %322 : vector<64x128xf32>
    %324 = vector.extract_strided_slice %46 {offsets = [6, 0], sizes = [1, 128], strides = [1, 1]} : vector<8x128xf32> to vector<1x128xf32>
    %c3_150 = arith.constant 3 : index
    %c0_151 = arith.constant 0 : index
    %c0_152 = arith.constant 0 : index
    %325 = vector.load %arg3[%c3_150, %c0_151, %c0_152] : memref<8x64x128xf32, #tpu.memory_space<vmem>>, vector<1x64x128xf32>
    %326 = vector.shape_cast %325 : vector<1x64x128xf32> to vector<64x128xf32>
    %327 = vector.broadcast %324 : vector<1x128xf32> to vector<64x128xf32>
    %328 = arith.mulf %327, %326 : vector<64x128xf32>
    %329 = arith.addf %323, %328 : vector<64x128xf32>
    %330 = vector.extract_strided_slice %49 {offsets = [6, 0], sizes = [1, 128], strides = [1, 1]} : vector<8x128xf32> to vector<1x128xf32>
    %c4_153 = arith.constant 4 : index
    %c0_154 = arith.constant 0 : index
    %c0_155 = arith.constant 0 : index
    %331 = vector.load %arg3[%c4_153, %c0_154, %c0_155] : memref<8x64x128xf32, #tpu.memory_space<vmem>>, vector<1x64x128xf32>
    %332 = vector.shape_cast %331 : vector<1x64x128xf32> to vector<64x128xf32>
    %333 = vector.broadcast %330 : vector<1x128xf32> to vector<64x128xf32>
    %334 = arith.mulf %333, %332 : vector<64x128xf32>
    %335 = arith.addf %329, %334 : vector<64x128xf32>
    %336 = vector.extract_strided_slice %52 {offsets = [6, 0], sizes = [1, 128], strides = [1, 1]} : vector<8x128xf32> to vector<1x128xf32>
    %c5_156 = arith.constant 5 : index
    %c0_157 = arith.constant 0 : index
    %c0_158 = arith.constant 0 : index
    %337 = vector.load %arg3[%c5_156, %c0_157, %c0_158] : memref<8x64x128xf32, #tpu.memory_space<vmem>>, vector<1x64x128xf32>
    %338 = vector.shape_cast %337 : vector<1x64x128xf32> to vector<64x128xf32>
    %339 = vector.broadcast %336 : vector<1x128xf32> to vector<64x128xf32>
    %340 = arith.mulf %339, %338 : vector<64x128xf32>
    %341 = arith.addf %335, %340 : vector<64x128xf32>
    %342 = vector.extract_strided_slice %55 {offsets = [6, 0], sizes = [1, 128], strides = [1, 1]} : vector<8x128xf32> to vector<1x128xf32>
    %c6_159 = arith.constant 6 : index
    %c0_160 = arith.constant 0 : index
    %c0_161 = arith.constant 0 : index
    %343 = vector.load %arg3[%c6_159, %c0_160, %c0_161] : memref<8x64x128xf32, #tpu.memory_space<vmem>>, vector<1x64x128xf32>
    %344 = vector.shape_cast %343 : vector<1x64x128xf32> to vector<64x128xf32>
    %345 = vector.broadcast %342 : vector<1x128xf32> to vector<64x128xf32>
    %346 = arith.mulf %345, %344 : vector<64x128xf32>
    %347 = arith.addf %341, %346 : vector<64x128xf32>
    %348 = arith.maximumf %306, %347 : vector<64x128xf32>
    %349 = vector.extract_strided_slice %41 {offsets = [7, 0], sizes = [1, 128], strides = [1, 1]} : vector<8x128xf32> to vector<1x128xf32>
    %c0_162 = arith.constant 0 : index
    %c0_163 = arith.constant 0 : index
    %c0_164 = arith.constant 0 : index
    %350 = vector.load %arg3[%c0_162, %c0_163, %c0_164] : memref<8x64x128xf32, #tpu.memory_space<vmem>>, vector<1x64x128xf32>
    %351 = vector.shape_cast %350 : vector<1x64x128xf32> to vector<64x128xf32>
    %352 = vector.broadcast %349 : vector<1x128xf32> to vector<64x128xf32>
    %353 = arith.mulf %352, %351 : vector<64x128xf32>
    %354 = vector.extract_strided_slice %44 {offsets = [7, 0], sizes = [1, 128], strides = [1, 1]} : vector<8x128xf32> to vector<1x128xf32>
    %c1_165 = arith.constant 1 : index
    %c0_166 = arith.constant 0 : index
    %c0_167 = arith.constant 0 : index
    %355 = vector.load %arg3[%c1_165, %c0_166, %c0_167] : memref<8x64x128xf32, #tpu.memory_space<vmem>>, vector<1x64x128xf32>
    %356 = vector.shape_cast %355 : vector<1x64x128xf32> to vector<64x128xf32>
    %357 = vector.broadcast %354 : vector<1x128xf32> to vector<64x128xf32>
    %358 = arith.mulf %357, %356 : vector<64x128xf32>
    %359 = arith.addf %353, %358 : vector<64x128xf32>
    %360 = vector.extract_strided_slice %45 {offsets = [7, 0], sizes = [1, 128], strides = [1, 1]} : vector<8x128xf32> to vector<1x128xf32>
    %c2_168 = arith.constant 2 : index
    %c0_169 = arith.constant 0 : index
    %c0_170 = arith.constant 0 : index
    %361 = vector.load %arg3[%c2_168, %c0_169, %c0_170] : memref<8x64x128xf32, #tpu.memory_space<vmem>>, vector<1x64x128xf32>
    %362 = vector.shape_cast %361 : vector<1x64x128xf32> to vector<64x128xf32>
    %363 = vector.broadcast %360 : vector<1x128xf32> to vector<64x128xf32>
    %364 = arith.mulf %363, %362 : vector<64x128xf32>
    %365 = arith.addf %359, %364 : vector<64x128xf32>
    %366 = vector.extract_strided_slice %46 {offsets = [7, 0], sizes = [1, 128], strides = [1, 1]} : vector<8x128xf32> to vector<1x128xf32>
    %c3_171 = arith.constant 3 : index
    %c0_172 = arith.constant 0 : index
    %c0_173 = arith.constant 0 : index
    %367 = vector.load %arg3[%c3_171, %c0_172, %c0_173] : memref<8x64x128xf32, #tpu.memory_space<vmem>>, vector<1x64x128xf32>
    %368 = vector.shape_cast %367 : vector<1x64x128xf32> to vector<64x128xf32>
    %369 = vector.broadcast %366 : vector<1x128xf32> to vector<64x128xf32>
    %370 = arith.mulf %369, %368 : vector<64x128xf32>
    %371 = arith.addf %365, %370 : vector<64x128xf32>
    %372 = vector.extract_strided_slice %49 {offsets = [7, 0], sizes = [1, 128], strides = [1, 1]} : vector<8x128xf32> to vector<1x128xf32>
    %c4_174 = arith.constant 4 : index
    %c0_175 = arith.constant 0 : index
    %c0_176 = arith.constant 0 : index
    %373 = vector.load %arg3[%c4_174, %c0_175, %c0_176] : memref<8x64x128xf32, #tpu.memory_space<vmem>>, vector<1x64x128xf32>
    %374 = vector.shape_cast %373 : vector<1x64x128xf32> to vector<64x128xf32>
    %375 = vector.broadcast %372 : vector<1x128xf32> to vector<64x128xf32>
    %376 = arith.mulf %375, %374 : vector<64x128xf32>
    %377 = arith.addf %371, %376 : vector<64x128xf32>
    %378 = vector.extract_strided_slice %52 {offsets = [7, 0], sizes = [1, 128], strides = [1, 1]} : vector<8x128xf32> to vector<1x128xf32>
    %c5_177 = arith.constant 5 : index
    %c0_178 = arith.constant 0 : index
    %c0_179 = arith.constant 0 : index
    %379 = vector.load %arg3[%c5_177, %c0_178, %c0_179] : memref<8x64x128xf32, #tpu.memory_space<vmem>>, vector<1x64x128xf32>
    %380 = vector.shape_cast %379 : vector<1x64x128xf32> to vector<64x128xf32>
    %381 = vector.broadcast %378 : vector<1x128xf32> to vector<64x128xf32>
    %382 = arith.mulf %381, %380 : vector<64x128xf32>
    %383 = arith.addf %377, %382 : vector<64x128xf32>
    %384 = vector.extract_strided_slice %55 {offsets = [7, 0], sizes = [1, 128], strides = [1, 1]} : vector<8x128xf32> to vector<1x128xf32>
    %c6_180 = arith.constant 6 : index
    %c0_181 = arith.constant 0 : index
    %c0_182 = arith.constant 0 : index
    %385 = vector.load %arg3[%c6_180, %c0_181, %c0_182] : memref<8x64x128xf32, #tpu.memory_space<vmem>>, vector<1x64x128xf32>
    %386 = vector.shape_cast %385 : vector<1x64x128xf32> to vector<64x128xf32>
    %387 = vector.broadcast %384 : vector<1x128xf32> to vector<64x128xf32>
    %388 = arith.mulf %387, %386 : vector<64x128xf32>
    %389 = arith.addf %383, %388 : vector<64x128xf32>
    %390 = arith.maximumf %348, %389 : vector<64x128xf32>
    %c7 = arith.constant 7 : index
    %c0_183 = arith.constant 0 : index
    %c0_184 = arith.constant 0 : index
    %391 = vector.load %arg3[%c7, %c0_183, %c0_184] : memref<8x64x128xf32, #tpu.memory_space<vmem>>, vector<1x64x128xf32>
    %392 = vector.shape_cast %391 : vector<1x64x128xf32> to vector<64x128xf32>
    %393 = arith.addf %390, %392 : vector<64x128xf32>
    %cst_185 = arith.constant 0.000000e+00 : f32
    %394 = vector.broadcast %cst_185 : f32 to vector<64x128xf32>
    %395 = arith.maximumf %393, %394 : vector<64x128xf32>
    %c0_186 = arith.constant 0 : index
    %c0_187 = arith.constant 0 : index
    %396 = vector.load %arg4[%c0_186, %c0_187] : memref<64x128xf32, #tpu.memory_space<vmem>>, vector<64x128xf32>
    tpu.vector_store %arg4[%c0_186, %c0_187], %395 {strides = array<i32>} : memref<64x128xf32, #tpu.memory_space<vmem>>, vector<64x128xf32>,
    return
  }
  func.func @transform_0(%arg0: i32) -> (i32, i32, i32) {
    %c0_i32 = arith.constant 0 : i32
    %c0_i32_0 = arith.constant 0 : i32
    %c0_i32_1 = arith.constant 0 : i32
    return %c0_i32, %c0_i32_0, %arg0 : i32, i32, i32
  }
  func.func @transform_1(%arg0: i32) -> (i32, i32) {
    %c0_i32 = arith.constant 0 : i32
    %c0_i32_0 = arith.constant 0 : i32
    return %c0_i32, %arg0 : i32, i32
  }
  func.func @transform_2(%arg0: i32) -> (i32, i32, i32) {
    %c0_i32 = arith.constant 0 : i32
    %c0_i32_0 = arith.constant 0 : i32
    %c0_i32_1 = arith.constant 0 : i32
    %c0_i32_2 = arith.constant 0 : i32
    return %c0_i32, %c0_i32_0, %c0_i32_1 : i32, i32, i32
  }
  func.func @transform_3(%arg0: i32) -> (i32, i32) {
    %c0_i32 = arith.constant 0 : i32
    %c0_i32_0 = arith.constant 0 : i32
    return %c0_i32, %arg0 : i32, i32
  }
}

</mosaic_0001>

<bundles_post_ra>
// kernel: tpu_custom_call.1
= control target key start
LH: loop header
LB: loop body
LE: loop exit
PB: predicated region body
PF: predicated region fallthrough
CT: control target
= control target key end

     0   :  { %s3468_s0 = inlined_call_operand.hbm [shape: f32[4,8,256], index: 0, kind: input, shape index: {}]   ;;  %s3469_s1 = inlined_call_operand.hbm [shape: f32[8,256], index: 1, kind: input, shape index: {}]   ;;  %s3470_s2 = inlined_call_operand.hbm [shape: f32[8,64,128], index: 2, kind: input, shape index: {}]   ;;  %s3471_s3 = inlined_call_operand.hbm [shape: f32[64,256], index: 3, kind: output, shape index: {}]  }
   0x1   :  { %3722 = sst [smem:[#allocation78_spill]] %s3468_s0 }
   0x2   :  { %3723 = sst [smem:[#allocation79_spill]] %s3470_s2 }
   0x3   :  { %8 = vsyncpa [#allocation3], 0 }
   0x4   :  { %10 = vsyncpa [#allocation3 + $0x1], 0 }
   0x5   :  { %11 = vsyncpa [#allocation6], 0 }
   0x6   :  { %13 = vsyncpa [#allocation6 + $0x1], 0 }
   0x7   :  { %14 = vsyncpa [#allocation4], 0 }
   0x8   :  { %16 = vsyncpa [#allocation4 + $0x1], 0  ;;  %s1975_s12 = smov 0   ;;  %s1977_s13 = smov 0  }
   0x9   :  { %s1979_s14 = smov 0   ;;  %s1981_s15 = smov 0  }
   0xa LB: > { %s1996_s16 = sadd.s32 4294967295, %s1942_s15   ;;  %s1640_s17 = sadd.s32 4294967294, %s1942_s15   ;;  %s1942_s15 = sphi %s1981_s15, %s4198_s15   ;;  %s1938_s14 = sphi %s1979_s14, %s4197_s14   ;;  %s1934_s13 = sphi %s1977_s13, %s4196_s13   ;;  %s1930_s12 = sphi %s1975_s12, %s4195_s12  }
   0xb   : > { %s2000_s18 = sadd.s32 1, %s1942_s15   ;;  %s29_s19 = sadd.s32 1, %s1938_s14 }
   0xc   : > { %s26_s20 = ssub.s32 %s1942_s15, %s2000_s18  ;;  %p36_p0 = scmp.ne.s32.totalorder %s1938_s14, %s1934_s13 }
   0xd   : > { %p27_p1 = scmp.eq.s32.totalorder %s26_s20, 0  ;;  %p37_p2 = scmp.eq.s32.totalorder %s1942_s15, 0 }
   0xe   : > { %p42_p3 = scmp.ne.s32.totalorder %s1934_s13, %s1930_s12  ;;  %p3476_p4 = scmp.eq.s32.totalorder %s1996_s16, 0 }
   0xf   : > { %s2012_s21 = scalar_select %p27_p1, %s1938_s14, %s29_s19  }
  0x10   : > { %p2014_p5 = por %p37_p2, %p36_p0  ;;  %p2020_p6 = por %p3476_p4, %p42_p3 }
  0x11   : > { %p113_p7 = scmp.eq.s32.totalorder %s1996_s16, 1  ;;  %p119_p8 = scmp.eq.s32.totalorder %s1640_s17, 1 }
  0x12   : > { %s3725_s23 = scalar_select %p2020_p6, 1, 0 }
  0x13   : > { %p1641_p9 = scmp.ge.s32.totalorder %s1942_s15, 1  ;;  %p126_p10 = scmp.lt.s32.totalorder %s1942_s15, 3 }
  0x14   : > { %p2027_p11 = por %p113_p7, %p36_p0  ;;  %p2031_p12 = por %p119_p8, %p42_p3 }
  0x15   : > { %p2035_p13 = pnand %p1641_p9, %p126_p10  ;;  %s1944_s27 = smov [#allocation7]  }
  0x16   : > { %s3726_s24 = scalar_select %p2027_p11, 1, 0 }
  0x17   : > { %s3727_s25 = scalar_select %p2031_p12, 1, 0 }
  0x18   : > { %s3728_s26 = scalar_select %p2035_p13, 1, 0 }
  0x19   : > { %p1671_p1 = pneg %p2035_p13  ;;  %s138_s28 = sshll.u32 %s1944_s27, 4  ;;  %s139_s28 = int_to_ptr.vmem [resolvable:$true] %s138_s28 }
  0x1a   : > { %p1687_p3 = scmp.lt.s32.totalorder %s1942_s15, 2  ;;  %s2050_s30 = sand.u32 1, %s1938_s14  }
  0x1b   : > { %p2043_p2 = pnand %p1671_p1, %p3476_p4  ;;  %s1799_s4 = scalar_lea.vmem %s139_s28, 8192 }
  0x1c   : > { %p1800_p8 = scmp.ne.s32.totalorder %s139_s28, %s1799_s4  ;;  %p1807_p12 = scmp.lt.s32.totalorder %s139_s28, %s139_s28 }
  0x1d   : > { %p1790_p7 = pneg %p2043_p2  ;;  %p1808_p11 = scmp.lt.s32.totalorder %s1799_s4, %s1799_s4 }
  0x1f   : > { %p1802_p9 = pnand %p1800_p8, %p1790_p7  ;;  %p1809_p6 = por %p1808_p11, %p1807_p12 }
  0x21   : > { %p1803_p10 = pneg %p1802_p9 }
  0x23   : > { %p1810_p13 = pnand %p1809_p6, %p1803_p10 }
  0x25   : > { %1813 = shalt.err (!%p1810_p13)
}
  0x26   : > { %s1945_s5 = smov 128   ;;  %s1946_s6 = smov 8  }
  0x27   : > { %s3730_s2 = sld [smem:[#allocation79_spill]]  ;;  %p2066_p6 = pnand %p1687_p3, %p2014_p5 }
  0x28   : > { %s1644_s10 = sshll.u32 %s2050_s30, 5  ;;  %s3475_s11 = sshll.u32 %s1942_s15, 7 }
  0x29   : > { %s3732_s0 = sld [smem:[#allocation78_spill]]  ;;  %s156_s27 = scalar_lea.vmem [#allocation2], %s1644_s10 }
  0x2a   : > { %s162_s22 = sshll.u32 %s156_s27, 4  ;;  %s153_s29 = scalar_lea.sflag [#allocation3], %s2050_s30  ;;  %s2079_s22 = int_to_ptr.vmem [resolvable:$true] %s162_s22 }
  0x2b   : > { %p1816_p11 = pneg %p2066_p6 }
  0x2d   : > { %1674 = dma.hbm_to_vmem [thread:$0]  (!%p2043_p2), %s3730_s2, 8192, %s139_s28, [#allocation6], %s1945_s5, %s1945_s5, %s1946_s6  }
  0x2e   : > { %s172_s28 = sand.u32 1, %s1942_s15  }
  0x2f   : > { %s2077_s20 = scalar_lea.hbm %s3732_s0, %s3475_s11  ;;  %s1819_s17 = scalar_lea.hbm %s3732_s0, 1024 }
  0x30   : > { %s1814_s4 = scalar_lea.hbm %s2077_s20, 512  ;;  %p1820_p1 = scmp.lt.s32.totalorder %s2077_s20, %s3732_s0 }
  0x31   : > { %p1815_p5 = scmp.ne.s32.totalorder %s2077_s20, %s1814_s4  ;;  %p1821_p2 = scmp.lt.s32.totalorder %s1819_s17, %s1814_s4 }
  0x33   : > { %p1817_p12 = pnand %p1816_p11, %p1815_p5  ;;  %p1822_p3 = por %p1821_p2, %p1820_p1 }
  0x35   : > { %p1818_p13 = pneg %p1817_p12 }
  0x37   : > { %p1823_p7 = pnand %p1822_p3, %p1818_p13 }
  0x39   : > { %1826 = shalt.err (!%p1823_p7)
}
  0x3a   : > { %s1827_s10 = scalar_lea.vmem %s2079_s22, 512  ;;  %s1947_s27 = smov [#allocation2]  }
  0x3b   : > { %p1828_p8 = scmp.ne.s32.totalorder %s2079_s22, %s1827_s10  ;;  %s1832_s7 = sshll.u32 %s1947_s27, 4  ;;  %s1833_s7 = int_to_ptr.vmem [resolvable:$false] %s1832_s7 }
  0x3c   : > { %s1834_s8 = scalar_lea.vmem %s1833_s7, 1024  ;;  %p1835_p5 = scmp.lt.s32.totalorder %s2079_s22, %s1833_s7 }
  0x3d   : > { %p1830_p9 = pnand %p1828_p8, %p1816_p11  ;;  %p1836_p12 = scmp.lt.s32.totalorder %s1834_s8, %s1827_s10 }
  0x3f   : > { %p1831_p10 = pneg %p1830_p9  ;;  %p1837_p0 = por %p1836_p12, %p1835_p5 }
  0x41   : > { %p1838_p1 = pnand %p1837_p0, %p1831_p10 }
  0x43   : > { %1841 = shalt.err (!%p1838_p1)
}
  0x44   : > { %s1948_s11 = smov 256   ;;  %s1646_s4 = sshll.u32 %s2050_s30, 3 }
  0x45   : > { %1678 = dma.hbm_to_vmem [thread:$0]  (!%p2066_p6), %s2077_s20, 512, %s2079_s22, %s153_s29, %s1948_s11, %s1945_s5, %s1946_s6  }
  0x46   : > { %s3733_s17 = sshll.u32 %s1942_s15, 7  ;;  %s176_s7 = scalar_lea.vmem [#allocation5], %s1646_s4 }
  0x47   : > { %s2117_s27 = scalar_lea.hbm %s3469_s1, %s3733_s17  ;;  %s183_s8 = sshll.u32 %s176_s7, 4  ;;  %s184_s8 = int_to_ptr.vmem [resolvable:$true] %s183_s8 }
  0x48   : > { %s173_s0 = scalar_lea.sflag [#allocation6], %s172_s28  ;;  %s1842_s2 = scalar_lea.hbm %s2117_s27, 128 }
  0x49   : > { %p1843_p0 = scmp.ne.s32.totalorder %s2117_s27, %s1842_s2  ;;  %s1847_s6 = scalar_lea.hbm %s3469_s1, 256 }
  0x4a   : > { %p1848_p3 = scmp.lt.s32.totalorder %s2117_s27, %s3469_s1  ;;  %p1849_p7 = scmp.lt.s32.totalorder %s1847_s6, %s1842_s2 }
  0x4b   : > { %p1845_p13 = pnand %p1843_p0, %p1816_p11 }
  0x4c   : > { %p1850_p8 = por %p1849_p7, %p1848_p3 }
  0x4d   : > { %p1846_p2 = pneg %p1845_p13 }
  0x4f   : > { %p1851_p9 = pnand %p1850_p8, %p1846_p2 }
  0x51   : > { %1854 = shalt.err (!%p1851_p9)
}
  0x52   : > { %s1855_s29 = scalar_lea.vmem %s184_s8, 128  ;;  %s1949_s28 = smov [#allocation5]  }
  0x53   : > { %p1856_p10 = scmp.ne.s32.totalorder %s184_s8, %s1855_s29  ;;  %s1860_s11 = sshll.u32 %s1949_s28, 4  ;;  %s1861_s11 = int_to_ptr.vmem [resolvable:$false] %s1860_s11 }
  0x54   : > { %s1862_s4 = scalar_lea.vmem %s1861_s11, 256  ;;  %p1863_p1 = scmp.lt.s32.totalorder %s184_s8, %s1861_s11 }
  0x55   : > { %p1858_p5 = pnand %p1856_p10, %p1816_p11  ;;  %p1864_p0 = scmp.lt.s32.totalorder %s1862_s4, %s1855_s29 }
  0x57   : > { %p1859_p12 = pneg %p1858_p5  ;;  %p1865_p13 = por %p1864_p0, %p1863_p1 }
  0x59   : > { %p1866_p4 = pnand %p1865_p13, %p1859_p12 }
  0x5b   : > { %1869 = shalt.err (!%p1866_p4)
}
  0x5c   : > { %1681 = dma.hbm_to_vmem [thread:$0]  (!%p2066_p6), %s2117_s27, 128, %s184_s8, %s173_s0  }
  0x5d   : > { %p3734_p2 = scmp.ne.s32.totalorder %s3728_s26, 0 }
  0x5f   : > { %192 = sbr.rel (%p3734_p2) target bundleno = 397 (0x18d), region = 32 }
  0x64   : > { %s2142_s2 = sand.u32 1, %s1934_s13   ;;  %p3735_p11 = scmp.ne.s32.totalorder %s3725_s23, 0 }
  0x65   : > { %s1649_s17 = sshll.u32 %s2142_s2, 5  ;;  %s195_s19 = scalar_lea.sflag [#allocation3], %s2142_s2 }
  0x66   : > { %s198_s10 = scalar_lea.vmem [#allocation2], %s1649_s17 }
  0x67   : > { %1913 = dma.done.wait (%p3735_p11), %s195_s19, 512  }
  0x68   : > { %1915 = vsyncadd (%p3735_p11), %s195_s19, 4294966784  ;;  %s203_s0 = sand.u32 1, %s1996_s16   ;;  %s1650_s26 = sshll.u32 %s2142_s2, 3 }
  0x69   : > { %s204_s9 = scalar_lea.sflag [#allocation6], %s203_s0  ;;  %s207_s27 = scalar_lea.vmem [#allocation5], %s1650_s26 }
  0x6a   : > { %1917 = dma.done.wait (%p3735_p11), %s204_s9, 128  }
  0x6b   : > { %1919 = vsyncadd (%p3735_p11), %s204_s9, 4294967168  ;;  %p3736_p4 = scmp.eq.s32.totalorder %s1996_s16, 0 }
  0x6d   : > { %1921 = dma.done.wait (%p3736_p4), [#allocation6], 8192   ;;  %p3737_p6 = pmov %p3736_p4 }
  0x6e   : > { %v273_v0 = vlaneseq  ;;  %v2165_v3 = vld [vmem:[%s198_s10] sm:$0xff]  ;;  %v2167_v4 = vld [vmem:[%s198_s10 + $0x8] sm:$0xff]  ;;  %v2169_v5 = vld [vmem:[%s198_s10 + $0x10] sm:$0xff]  ;;  %v1950_v24 = vmov 0.0   ;;  %s1652_s23 = sshll.u32 %s2142_s2, 6  ;;  %s1658_s7 = sshll.u32 %s1996_s16, 7 }
  0x6f   : > { %1923 = vsyncadd (%p3737_p6), [#allocation6], 4294959104  ;;  %v246_v7 = vld [vmem:[%s207_s27] sm:$0xff]  ;;  %v252_v8 = vrot.slane %v2165_v3, 4  ;;  %v259_v9 = vrot.slane %v2167_v4, 4  ;;  %v266_v10 = vrot.slane %v2169_v5, 4  ;;  %s3423_s6 = scalar_lea.hbm %s3471_s3, %s1658_s7 }
  0x70   : > { %v2160_v1 = vshrl.u32 %v273_v0, 7  ;;  %v247_v12 = vmax.f32 %v246_v7, 1.0  ;;  %v250_v13 = vmul.f32 0.4, %v246_v7  ;;  %v1655_v16 = vld [vmem:[%s198_s10 + $0x18] sm:$0xff]  ;;  %v2196_v33 = vld [vmem:[#allocation7 + $0x80] sm:$0xff] }
  0x71   : > { %v253_v17 = vadd.f32 %v252_v8, %v2165_v3  ;;  %v260_v18 = vadd.f32 %v2167_v4, %v259_v9  ;;  %v267_v19 = vadd.f32 %v2169_v5, %v266_v10  ;;  %3742 = vst [vmem:[#allocation17_spill] sm:$0xff] %v2196_v33  ;;  %v2198_v34 = vld [vmem:[#allocation7 + $0x88] sm:$0xff]  ;;  %v2202_v37 = vld [vmem:[#allocation7 + $0x90] sm:$0xff]  ;;  %v2206_v42 = vld [vmem:[#allocation7] sm:$0xff]  ;;  %s238_s8 = scalar_lea.vmem [#allocation8], %s1652_s23  ;;  %s1523_s20 = scalar_lea.sflag [#allocation4], %s2142_s2 }
  0x72   : > { %3738 = vst [vmem:[#allocation13_spill] sm:$0xff] %v2160_v1  ;;  %v2163_v2 = vsub.s32 0, %v2160_v1  ;;  %v275_v6 = vcvt.s32.f32 %v2160_v1  ;;  %v2176_v11 = vsub.s32 1, %v2160_v1  ;;  %v2180_v15 = vsub.s32 2, %v2160_v1  ;;  %3743 = vst [vmem:[#allocation18_spill] sm:$0xff] %v2198_v34  ;;  %v2208_v43 = vld [vmem:[#allocation7 + $0x8] sm:$0xff] }
  0x73   : > { %1730 = vrcp.f32 %v247_v12  ;;  %v251_v20 = vadd.f32 0.2, %v250_v13  ;;  %v254_v21 = vrot.slane %v253_v17, 2  ;;  %v261_v22 = vrot.slane %v260_v18, 2  ;;  %3744 = vst [vmem:[#allocation19_spill] sm:$0xff] %v2202_v37  ;;  %3745 = vst [vmem:[#allocation20_spill] sm:$0xff] %v2206_v42 }
  0x74   : > { %v279_v14 = vrot.slane %v246_v7, %v2163_v2  ;;  %3739 = vst [vmem:[#allocation14_spill] sm:$0xff] %v2180_v15  ;;  %v268_v23 = vrot.slane %v267_v19, 2  ;;  %3746 = vst [vmem:[#allocation21_spill] sm:$0xff] %v2208_v43  ;;  %v2210_v44 = vld [vmem:[#allocation7 + $0x10] sm:$0xff]  ;;  %v2212_v45 = vld [vmem:[#allocation7 + $0x18] sm:$0xff]  ;;  %s1535_s30 = sshll.u32 %s238_s8, 4  ;;  %s3425_s30 = int_to_ptr.vmem [resolvable:$true] %s1535_s30 }
  0x75   : > { %v286_v26 = vrot.slane %v251_v20, %v2176_v11  ;;  %v292_v27 = vrot.slane %v251_v20, %v2180_v15  ;;  %v255_v30 = vadd.f32 %v254_v21, %v253_v17  ;;  %v262_v31 = vadd.f32 %v261_v22, %v260_v18  ;;  %3747 = vst [vmem:[#allocation22_spill] sm:$0xff] %v2210_v44  ;;  %v2214_v46 = vld [vmem:[#allocation7 + $0x98] sm:$0xff]  ;;  %v2216_v47 = vld [vmem:[#allocation7 + $0xa0] sm:$0xff]  ;;  %v2218_v48 = vld [vmem:[#allocation7 + $0xa8] sm:$0xff]  ;;  %s1870_s22 = scalar_lea.vmem %s3425_s30, 1024  ;;  %p4192_p7 = scmp.ne.s32.totalorder %s3726_s24, 0 }
  0x76   : > { %vm280_vm0 = vcmp.lt.f32.partialorder %v275_v6, %v279_v14  ;;  %v269_v32 = vadd.f32 %v268_v23, %v267_v19  ;;  %3748 = vst [vmem:[#allocation23_spill] sm:$0xff] %v2212_v45  ;;  %3749 = vst [vmem:[#allocation24_spill] sm:$0xff] %v2214_v46  ;;  %v2230_v52 = vld [vmem:[#allocation7 + $0xb0] sm:$0xff]  ;;  %v2232_v53 = vld [vmem:[#allocation7 + $0xb8] sm:$0xff]  ;;  %p1871_p3 = scmp.ne.s32.totalorder %s3425_s30, %s1870_s22  ;;  %s1951_s29 = smov [#allocation8]  }
  0x77   : > { %v2185_v25 = vsel %vm280_vm0, 1.0, %v1950_v24  ;;  %v287_v35 = vsub.f32 %v2165_v3, %v286_v26  ;;  %v293_v36 = vsub.f32 %v2167_v4, %v292_v27  ;;  %v256_v39 = vrot.slane %v255_v30, 1  ;;  %3750 = vst [vmem:[#allocation25_spill] sm:$0xff] %v2216_v47  ;;  %3751 = vst [vmem:[#allocation26_spill] sm:$0xff] %v2218_v48  ;;  %v2236_v56 = vld [vmem:[#allocation7 + $0xc0] sm:$0xff]  ;;  %v2240_v61 = vld [vmem:[#allocation7 + $0x28] sm:$0xff] }
  0x78   : > { %v2191_v28 = vmul.f32 %v2185_v25, %v2169_v5  ;;  %v2194_v29 = vmul.f32 %v2185_v25, %v1655_v16  ;;  %v263_v40 = vrot.slane %v262_v31, 1  ;;  %v270_v41 = vrot.slane %v269_v32, 1  ;;  %3754 = vst [vmem:[#allocation29_spill] sm:$0xff] %v2230_v52  ;;  %3755 = vst [vmem:[#allocation30_spill] sm:$0xff] %v2232_v53  ;;  %v2238_v60 = vld [vmem:[#allocation7 + $0x20] sm:$0xff]  ;;  %v2242_v62 = vld [vmem:[#allocation7 + $0x30] sm:$0xff]  ;;  %p1872_p8 = pnand %p1871_p3, %p4192_p7 }
  0x79   : > { %v2225_v50 = vmul.f32 %v2185_v25, %v287_v35  ;;  %v2228_v51 = vmul.f32 %v2185_v25, %v293_v36  ;;  %3756 = vst [vmem:[#allocation31_spill] sm:$0xff] %v2236_v56  ;;  %v257_v57 = vadd.f32 %v256_v39, %v255_v30  ;;  %3757 = vst [vmem:[#allocation32_spill] sm:$0xff] %v2238_v60  ;;  %v2245_v0 = vld [vmem:[#allocation7 + $0x38] sm:$0xff]  ;;  %v2249_v7 = vld [vmem:[#allocation7 + $0x40] sm:$0xff]  ;;  %s1874_s28 = sshll.u32 %s1951_s29, 4  ;;  %s1875_s28 = int_to_ptr.vmem [resolvable:$false] %s1874_s28 }
  0x7a   : > { %3740 = vst [vmem:[#allocation15_spill] sm:$0xff] %v2191_v28  ;;  %3741 = vst [vmem:[#allocation16_spill] sm:$0xff] %v2194_v29  ;;  %v376_v38 = vrot.slane %v2191_v28, %v2163_v2  ;;  %v2222_v49 = vrot.slane %v2194_v29, %v2163_v2  ;;  %v264_v58 = vadd.f32 %v263_v40, %v262_v31  ;;  %v2251_v8 = vld [vmem:[#allocation7 + $0x48] sm:$0xff]  ;;  %v2257_v13 = vld [vmem:[#allocation7 + $0x50] sm:$0xff]  ;;  %p1873_p9 = pneg %p1872_p8  ;;  %s1876_s11 = scalar_lea.vmem %s1875_s28, 2048 }
  0x7b   : > { %3752 = vst [vmem:[#allocation27_spill] sm:$0xff] %v2225_v50  ;;  %3753 = vst [vmem:[#allocation28_spill] sm:$0xff] %v2228_v51  ;;  %v271_v59 = vadd.f32 %v270_v41, %v269_v32  ;;  %v326_v6 = vrot.slane %v2225_v50, %v2163_v2  ;;  %v347_v9 = vrot.slane %v2228_v51, %v2163_v2  ;;  %v2259_v14 = vld [vmem:[#allocation7 + $0x58] sm:$0xff]  ;;  %v2261_v16 = vld [vmem:[#allocation7 + $0x60] sm:$0xff]  ;;  %p1877_p10 = scmp.lt.s32.totalorder %s3425_s30, %s1875_s28  ;;  %p1878_p5 = scmp.lt.s32.totalorder %s1876_s11, %s1870_s22 }
  0x7c   : > { %v377_v54 = vmul.f32 %v376_v38, %v2196_v33  ;;  %v378_v55 = vmul.f32 %v376_v38, %v2198_v34  ;;  %3758 = vst [vmem:[#allocation33_spill] sm:$0xff] %v2240_v61  ;;  %3759 = vst [vmem:[#allocation34_spill] sm:$0xff] %v2242_v62  ;;  %v379_v63 = vmul.f32 %v376_v38, %v2202_v37  ;;  %v2274_v26 = vld [vmem:[#allocation7 + $0x68] sm:$0xff]  ;;  %v2276_v27 = vld [vmem:[#allocation7 + $0x70] sm:$0xff] }
  0x7d   : > { %3760 = vst [vmem:[#allocation35_spill] sm:$0xff] %v2245_v0  ;;  %3761 = vst [vmem:[#allocation36_spill] sm:$0xff] %v2249_v7  ;;  %v380_v10 = vmul.f32 %v376_v38, %v2214_v46  ;;  %v381_v12 = vmul.f32 %v376_v38, %v2216_v47  ;;  %v382_v17 = vmul.f32 %v376_v38, %v2218_v48  ;;  %v2278_v30 = vld [vmem:[#allocation7 + $0x78] sm:$0xff]  ;;  %p1879_p12 = por %p1878_p5, %p1877_p10 }
  0x7e   : > { %3762 = vst [vmem:[#allocation37_spill] sm:$0xff] %v2251_v8  ;;  %3763 = vst [vmem:[#allocation38_spill] sm:$0xff] %v2257_v13  ;;  %v383_v18 = vmul.f32 %v376_v38, %v2230_v52  ;;  %v384_v19 = vmul.f32 %v376_v38, %v2232_v53  ;;  %v2268_v20 = vmul.f32 %v2222_v49, %v2236_v56 }
  0x7f   : > { %3764 = vst [vmem:[#allocation39_spill] sm:$0xff] %v2259_v14  ;;  %3765 = vst [vmem:[#allocation40_spill] sm:$0xff] %v2261_v16  ;;  %v327_v21 = vmul.f32 %v326_v6, %v2206_v42  ;;  %v328_v22 = vmul.f32 %v326_v6, %v2208_v43  ;;  %v329_v23 = vmul.f32 %v326_v6, %v2210_v44  ;;  %p1880_p1 = pnand %p1879_p12, %p1873_p9 }
  0x80   : > { %v330_v24 = vmul.f32 %v326_v6, %v2212_v45  ;;  %3766 = vst [vmem:[#allocation41_spill] sm:$0xff] %v2274_v26  ;;  %3767 = vst [vmem:[#allocation42_spill] sm:$0xff] %v2276_v27  ;;  %v331_v31 = vmul.f32 %v326_v6, %v2238_v60  ;;  %v332_v32 = vmul.f32 %v326_v6, %v2240_v61  ;;  %v1731_v15 = vpop.eup %1730 }
  0x81   : > { %v333_v35 = vmul.f32 %v326_v6, %v2242_v62  ;;  %v334_v36 = vmul.f32 %v326_v6, %v2245_v0  ;;  %v348_v38 = vmul.f32 %v347_v9, %v2249_v7  ;;  %v349_v39 = vmul.f32 %v347_v9, %v2251_v8 }
  0x82   : > { %v350_v40 = vmul.f32 %v347_v9, %v2257_v13  ;;  %v351_v41 = vmul.f32 %v347_v9, %v2259_v14  ;;  %v352_v56 = vmul.f32 %v347_v9, %v2261_v16  ;;  %v353_v29 = vmul.f32 %v347_v9, %v2274_v26 }
  0x83   : > { %v354_v53 = vmul.f32 %v347_v9, %v2276_v27  ;;  %v355_v52 = vmul.f32 %v347_v9, %v2278_v30  ;;  %v258_v48 = vmul.f32 %v1731_v15, %v257_v57  ;;  %v265_v47 = vmul.f32 %v1731_v15, %v264_v58  ;;  %v2295_v9 = vld [vmem:[#allocation7 + $0xc8] sm:$0xff] }
  0x84   : > { %v272_v6 = vmul.f32 %v1731_v15, %v271_v59  ;;  %v356_v46 = vadd.f32 %v348_v38, %v327_v21  ;;  %v357_v37 = vadd.f32 %v349_v39, %v328_v22  ;;  %v358_v34 = vadd.f32 %v350_v40, %v329_v23  ;;  %v2300_v59 = vld [vmem:[#allocation7 + $0xd0] sm:$0xff]  ;;  %v2344_v21 = vld [vmem:[#allocation7 + $0x120] sm:$0xff] }
  0x85   : > { %v359_v33 = vadd.f32 %v351_v41, %v330_v24  ;;  %v360_v8 = vadd.f32 %v352_v56, %v331_v31  ;;  %v300_v13 = vrot.slane %v258_v48, %v2163_v2  ;;  %v306_v14 = vrot.slane %v265_v47, %v2163_v2  ;;  %v2302_v48 = vld [vmem:[#allocation7 + $0xd8] sm:$0xff]  ;;  %v2304_v47 = vld [vmem:[#allocation7 + $0xe0] sm:$0xff]  ;;  %3773 = vst [vmem:[#allocation48_spill] sm:$0xff] %v2344_v21 }
  0x86   : > { %v312_v16 = vrot.slane %v272_v6, %v2163_v2  ;;  %v361_v7 = vadd.f32 %v353_v29, %v332_v32  ;;  %v362_v26 = vadd.f32 %v354_v53, %v333_v35  ;;  %v363_v0 = vadd.f32 %v355_v52, %v334_v36  ;;  %v2350_v31 = vld [vmem:[#allocation7 + $0x138] sm:$0xff]  ;;  %v2362_v41 = vld [vmem:[#allocation7 + $0x140] sm:$0xff]  ;;  %v2364_v6 = vld [vmem:[#allocation7 + $0x148] sm:$0xff] }
  0x87   : > { %v385_v27 = vadd.f32 %v377_v54, %v356_v46  ;;  %v386_v62 = vadd.f32 %v378_v55, %v357_v37  ;;  %v301_v15 = vsub.f32 %v2165_v3, %v300_v13  ;;  %v307_v57 = vsub.f32 %v2167_v4, %v306_v14  ;;  %v2306_v37 = vld [vmem:[#allocation7 + $0xe8] sm:$0xff]  ;;  %v2308_v54 = vld [vmem:[#allocation7 + $0xf0] sm:$0xff]  ;;  %v2310_v3 = vld [vmem:[#allocation7 + $0xf8] sm:$0xff]  ;;  %3776 = vst [vmem:[#allocation51_spill] sm:$0xff] %v2350_v31 }
  0x88   : > { %v313_v58 = vsub.f32 %v2169_v5, %v312_v16  ;;  %v387_v56 = vadd.f32 %v379_v63, %v358_v34  ;;  %v388_v29 = vadd.f32 %v380_v10, %v359_v33  ;;  %v389_v53 = vadd.f32 %v381_v12, %v360_v8  ;;  %v2335_v12 = vld [vmem:[#allocation7 + $0x100] sm:$0xff]  ;;  %v2337_v13 = vld [vmem:[#allocation7 + $0x108] sm:$0xff]  ;;  %3777 = vst [vmem:[#allocation52_spill] sm:$0xff] %v2362_v41 }
  0x89   : > { %v390_v52 = vadd.f32 %v382_v17, %v361_v7  ;;  %v391_v46 = vadd.f32 %v383_v18, %v362_v26  ;;  %v2313_v4 = vmul.f32 %v2185_v25, %v301_v15  ;;  %v2316_v5 = vmul.f32 %v2185_v25, %v307_v57  ;;  %v2340_v18 = vld [vmem:[#allocation7 + $0x110] sm:$0xff]  ;;  %v2346_v26 = vld [vmem:[#allocation7 + $0x128] sm:$0xff]  ;;  %3778 = vst [vmem:[#allocation53_spill] sm:$0xff] %v2364_v6 }
  0x8a   : > { %v2319_v34 = vmul.f32 %v2185_v25, %v313_v58  ;;  %v392_v55 = vadd.f32 %v384_v19, %v363_v0  ;;  %v407_v33 = vmul.f32 %v2222_v49, %v2295_v9  ;;  %v408_v63 = vmul.f32 %v2222_v49, %v2300_v59  ;;  %3771 = vst [vmem:[#allocation46_spill] sm:$0xff] %v2340_v18  ;;  %v2342_v19 = vld [vmem:[#allocation7 + $0x118] sm:$0xff] }
  0x8b   : > { %3768 = vst [vmem:[#allocation43_spill] sm:$0xff] %v2313_v4  ;;  %3769 = vst [vmem:[#allocation44_spill] sm:$0xff] %v2316_v5  ;;  %v409_v7 = vmul.f32 %v2222_v49, %v2302_v48  ;;  %v410_v8 = vmul.f32 %v2222_v49, %v2304_v47  ;;  %v411_v10 = vmul.f32 %v2222_v49, %v2306_v37 }
  0x8c   : > { %3770 = vst [vmem:[#allocation45_spill] sm:$0xff] %v2319_v34  ;;  %v412_v25 = vmul.f32 %v2222_v49, %v2308_v54  ;;  %v413_v0 = vmul.f32 %v2222_v49, %v2310_v3  ;;  %v414_v14 = vadd.f32 %v2268_v20, %v385_v27  ;;  %v415_v16 = vadd.f32 %v407_v33, %v386_v62  ;;  %v2348_v49 = vld [vmem:[#allocation7 + $0x130] sm:$0xff] }
  0x8d   : > { %v416_v17 = vadd.f32 %v408_v63, %v387_v56  ;;  %3772 = vst [vmem:[#allocation47_spill] sm:$0xff] %v2342_v19  ;;  %v417_v22 = vadd.f32 %v409_v7, %v388_v29  ;;  %v418_v23 = vadd.f32 %v410_v8, %v389_v53  ;;  %v419_v24 = vadd.f32 %v411_v10, %v390_v52  ;;  %v2370_v56 = vld [vmem:[#allocation7 + $0x150] sm:$0xff]  ;;  %v2372_v29 = vld [vmem:[#allocation7 + $0x158] sm:$0xff]  ;;  %v2374_v53 = vld [vmem:[#allocation7 + $0x160] sm:$0xff] }
  0x8e   : > { %3774 = vst [vmem:[#allocation49_spill] sm:$0xff] %v2346_v26  ;;  %3775 = vst [vmem:[#allocation50_spill] sm:$0xff] %v2348_v49  ;;  %v434_v20 = vrot.slane %v2313_v4, %v2163_v2  ;;  %v420_v62 = vadd.f32 %v412_v25, %v391_v46  ;;  %v421_v27 = vadd.f32 %v413_v0, %v392_v55  ;;  %v2376_v63 = vld [vmem:[#allocation7 + $0x168] sm:$0xff]  ;;  %v2378_v7 = vld [vmem:[#allocation7 + $0x170] sm:$0xff] }
  0x8f   : > { %v463_v32 = vrot.slane %v2316_v5, %v2163_v2  ;;  %v492_v35 = vrot.slane %v2319_v34, %v2163_v2  ;;  %3779 = vst [vmem:[#allocation54_spill] sm:$0xff] %v2370_v56  ;;  %3780 = vst [vmem:[#allocation55_spill] sm:$0xff] %v2372_v29  ;;  %v2380_v8 = vld [vmem:[#allocation7 + $0x178] sm:$0xff] }
  0x90   : > { %v435_v36 = vmul.f32 %v434_v20, %v2335_v12  ;;  %v436_v38 = vmul.f32 %v434_v20, %v2337_v13  ;;  %v437_v39 = vmul.f32 %v434_v20, %v2340_v18  ;;  %v438_v40 = vmul.f32 %v434_v20, %v2342_v19  ;;  %3781 = vst [vmem:[#allocation56_spill] sm:$0xff] %v2374_v53 }
  0x91   : > { %v439_v15 = vmul.f32 %v434_v20, %v2344_v21  ;;  %v440_v57 = vmul.f32 %v434_v20, %v2346_v26  ;;  %v441_v58 = vmul.f32 %v434_v20, %v2348_v49  ;;  %v442_v2 = vmul.f32 %v434_v20, %v2350_v31  ;;  %3782 = vst [vmem:[#allocation57_spill] sm:$0xff] %v2376_v63 }
  0x92   : > { %v443_v52 = vadd.f32 %v435_v36, %v414_v14  ;;  %v444_v46 = vadd.f32 %v436_v38, %v415_v16  ;;  %v445_v55 = vadd.f32 %v437_v39, %v416_v17  ;;  %v446_v33 = vadd.f32 %v438_v40, %v417_v22  ;;  %3783 = vst [vmem:[#allocation58_spill] sm:$0xff] %v2378_v7  ;;  %v2400_v39 = vld [vmem:[#allocation7 + $0x190] sm:$0xff]  ;;  %v2402_v40 = vld [vmem:[#allocation7 + $0x198] sm:$0xff] }
  0x93   : > { %3784 = vst [vmem:[#allocation59_spill] sm:$0xff] %v2380_v8  ;;  %v447_v10 = vadd.f32 %v439_v15, %v418_v23  ;;  %v448_v25 = vadd.f32 %v440_v57, %v419_v24  ;;  %v449_v0 = vadd.f32 %v441_v58, %v420_v62  ;;  %v450_v20 = vadd.f32 %v442_v2, %v421_v27  ;;  %v2390_v23 = vld [vmem:[#allocation7 + $0x180] sm:$0xff]  ;;  %v2392_v24 = vld [vmem:[#allocation7 + $0x188] sm:$0xff] }
  0x94   : > { %v464_v31 = vmul.f32 %v463_v32, %v2362_v41  ;;  %v465_v49 = vmul.f32 %v463_v32, %v2364_v6  ;;  %v466_v26 = vmul.f32 %v463_v32, %v2370_v56  ;;  %v467_v14 = vmul.f32 %v463_v32, %v2372_v29  ;;  %3785 = vst [vmem:[#allocation60_spill] sm:$0xff] %v2390_v23  ;;  %v2404_v15 = vld [vmem:[#allocation7 + $0x1a0] sm:$0xff]  ;;  %v3816_v56 = vld [vmem:[#allocation26_spill] sm:$0xff] }
  0x95   : > { %v468_v16 = vmul.f32 %v463_v32, %v2374_v53  ;;  %v469_v17 = vmul.f32 %v463_v32, %v2376_v63  ;;  %v470_v22 = vmul.f32 %v463_v32, %v2378_v7  ;;  %v471_v36 = vmul.f32 %v463_v32, %v2380_v8  ;;  %3786 = vst [vmem:[#allocation61_spill] sm:$0xff] %v2392_v24  ;;  %v3814_v53 = vld [vmem:[#allocation24_spill] sm:$0xff]  ;;  %v3815_v29 = vld [vmem:[#allocation25_spill] sm:$0xff] }
  0x96   : > { %v2395_v62 = vsub.s32 3, %v2160_v1  ;;  %v2398_v27 = vsub.s32 4, %v2160_v1  ;;  %v472_v38 = vadd.f32 %v464_v31, %v443_v52  ;;  %3789 = vst [vmem:[#allocation64_spill] sm:$0xff] %v2400_v39  ;;  %3790 = vst [vmem:[#allocation65_spill] sm:$0xff] %v2402_v40  ;;  %v512_v32 = vrot.slane %v2225_v50, %v2176_v11  ;;  %v2414_v31 = vld [vmem:[#allocation7 + $0x1b0] sm:$0xff]  ;;  %v2416_v52 = vld [vmem:[#allocation7 + $0x1b8] sm:$0xff] }
  0x97   : > { %3791 = vst [vmem:[#allocation66_spill] sm:$0xff] %v2404_v15  ;;  %v524_v57 = vrot.slane %v2228_v51, %v2176_v11  ;;  %v544_v58 = vrot.slane %v2191_v28, %v2176_v11  ;;  %v473_v2 = vadd.f32 %v465_v49, %v444_v46  ;;  %v475_v1 = vadd.f32 %v467_v14, %v446_v33 }
  0x98   : > { %3787 = vst [vmem:[#allocation62_spill] sm:$0xff] %v2395_v62  ;;  %3788 = vst [vmem:[#allocation63_spill] sm:$0xff] %v2398_v27  ;;  %v474_v62 = vadd.f32 %v466_v26, %v445_v55  ;;  %v2412_v27 = vld [vmem:[#allocation7 + $0x1a8] sm:$0xff]  ;;  %v493_v8 = vmul.f32 %v492_v35, %v2390_v23  ;;  %v476_v7 = vadd.f32 %v468_v16, %v447_v10  ;;  %v3813_v23 = vld [vmem:[#allocation19_spill] sm:$0xff] }
  0x99   : > { %3792 = vst [vmem:[#allocation67_spill] sm:$0xff] %v2412_v27  ;;  %3793 = vst [vmem:[#allocation68_spill] sm:$0xff] %v2414_v31  ;;  %v2419_v63 = vadd.f32 %v469_v17, %v448_v25  ;;  %v2421_v50 = vadd.f32 %v470_v22, %v449_v0  ;;  %v2423_v51 = vadd.f32 %v471_v36, %v450_v20  ;;  %v3802_v36 = vld [vmem:[#allocation34_spill] sm:$0xff] }
  0x9a   : > { %3794 = vst [vmem:[#allocation69_spill] sm:$0xff] %v2416_v52  ;;  %v494_v28 = vmul.f32 %v492_v35, %v2392_v24  ;;  %v495_v26 = vmul.f32 %v492_v35, %v2400_v39  ;;  %v496_v49 = vmul.f32 %v492_v35, %v2402_v40  ;;  %v497_v46 = vmul.f32 %v492_v35, %v2404_v15  ;;  %v3811_v39 = vld [vmem:[#allocation17_spill] sm:$0xff]  ;;  %v3812_v24 = vld [vmem:[#allocation18_spill] sm:$0xff] }
  0x9b   : > { %3795 = vst [vmem:[#allocation70_spill] sm:$0xff] %v2419_v63  ;;  %3796 = vst [vmem:[#allocation71_spill] sm:$0xff] %v2421_v50  ;;  %v2430_v55 = vmul.f32 %v492_v35, %v2412_v27  ;;  %v2433_v33 = vmul.f32 %v492_v35, %v2414_v31  ;;  %v2436_v10 = vmul.f32 %v492_v35, %v2416_v52  ;;  %v3804_v35 = vld [vmem:[#allocation36_spill] sm:$0xff]  ;;  %v3809_v52 = vld [vmem:[#allocation41_spill] sm:$0xff] }
  0x9c   : > { %3797 = vst [vmem:[#allocation72_spill] sm:$0xff] %v2423_v51  ;;  %v2438_v25 = vadd.f32 %v493_v8, %v472_v38  ;;  %v513_v0 = vmul.f32 %v512_v32, %v2206_v42  ;;  %v514_v20 = vmul.f32 %v512_v32, %v2208_v43  ;;  %v515_v14 = vmul.f32 %v512_v32, %v2210_v44  ;;  %v3805_v8 = vld [vmem:[#allocation37_spill] sm:$0xff]  ;;  %v3808_v63 = vld [vmem:[#allocation40_spill] sm:$0xff]  ;;  %v3810_v31 = vld [vmem:[#allocation42_spill] sm:$0xff] }
  0x9d   : > { %3798 = vst [vmem:[#allocation73_spill] sm:$0xff] %v2430_v55  ;;  %3799 = vst [vmem:[#allocation74_spill] sm:$0xff] %v2433_v33  ;;  %v516_v16 = vmul.f32 %v512_v32, %v2212_v45  ;;  %v517_v17 = vmul.f32 %v512_v32, %v2238_v60  ;;  %v518_v22 = vmul.f32 %v512_v32, %v2240_v61  ;;  %v3803_v33 = vld [vmem:[#allocation35_spill] sm:$0xff] }
  0x9e   : > { %3800 = vst [vmem:[#allocation75_spill] sm:$0xff] %v2436_v10  ;;  %3801 = vst [vmem:[#allocation76_spill] sm:$0xff] %v2438_v25  ;;  %v519_v51 = vmul.f32 %v512_v32, %v3802_v36  ;;  %v520_v50 = vmul.f32 %v512_v32, %v3803_v33  ;;  %v525_v10 = vmul.f32 %v524_v57, %v3804_v35  ;;  %v3806_v25 = vld [vmem:[#allocation38_spill] sm:$0xff]  ;;  %v3807_v55 = vld [vmem:[#allocation39_spill] sm:$0xff] }
  0x9f   : > { %v526_v38 = vmul.f32 %v524_v57, %v3805_v8  ;;  %v527_v42 = vmul.f32 %v524_v57, %v3806_v25  ;;  %v528_v43 = vmul.f32 %v524_v57, %v3807_v55  ;;  %v529_v44 = vmul.f32 %v524_v57, %v3808_v63 }
  0xa0   : > { %v530_v45 = vmul.f32 %v524_v57, %v3809_v52  ;;  %v531_v60 = vmul.f32 %v524_v57, %v3810_v31  ;;  %v532_v61 = vmul.f32 %v524_v57, %v2278_v30  ;;  %v533_v27 = vadd.f32 %v525_v10, %v513_v0  ;;  %v3817_v10 = vld [vmem:[#allocation29_spill] sm:$0xff] }
  0xa1   : > { %v534_v36 = vadd.f32 %v526_v38, %v514_v20  ;;  %v535_v15 = vadd.f32 %v527_v42, %v515_v14  ;;  %v536_v32 = vadd.f32 %v528_v43, %v516_v16  ;;  %v537_v33 = vadd.f32 %v529_v44, %v517_v17  ;;  %v3818_v42 = vld [vmem:[#allocation30_spill] sm:$0xff]  ;;  %v3823_v38 = vld [vmem:[#allocation16_spill] sm:$0xff] }
  0xa2   : > { %v538_v35 = vadd.f32 %v530_v45, %v518_v22  ;;  %v539_v40 = vadd.f32 %v531_v60, %v519_v51  ;;  %v540_v8 = vadd.f32 %v532_v61, %v520_v50  ;;  %v545_v25 = vmul.f32 %v544_v58, %v3811_v39 }
  0xa3   : > { %v546_v55 = vmul.f32 %v544_v58, %v3812_v24  ;;  %v547_v63 = vmul.f32 %v544_v58, %v3813_v23  ;;  %v548_v52 = vmul.f32 %v544_v58, %v3814_v53  ;;  %v549_v31 = vmul.f32 %v544_v58, %v3815_v29 }
  0xa4   : > { %v550_v57 = vmul.f32 %v544_v58, %v3816_v56  ;;  %v551_v0 = vmul.f32 %v544_v58, %v3817_v10  ;;  %v552_v43 = vmul.f32 %v544_v58, %v3818_v42  ;;  %v2464_v44 = vadd.f32 %v494_v28, %v473_v2 }
  0xa5   : > { %v2466_v45 = vadd.f32 %v495_v26, %v474_v62  ;;  %v2468_v50 = vadd.f32 %v496_v49, %v475_v1  ;;  %v2470_v51 = vadd.f32 %v497_v46, %v476_v7  ;;  %v553_v60 = vadd.f32 %v545_v25, %v533_v27  ;;  %v3824_v62 = vld [vmem:[#allocation31_spill] sm:$0xff] }
  0xa6   : > { %3819 = vst [vmem:[#allocation17_spill] sm:$0xff] %v2464_v44  ;;  %v554_v61 = vadd.f32 %v546_v55, %v534_v36  ;;  %v555_v20 = vadd.f32 %v547_v63, %v535_v15  ;;  %v556_v14 = vadd.f32 %v548_v52, %v536_v32  ;;  %v557_v16 = vadd.f32 %v549_v31, %v537_v33  ;;  %v3892_v44 = vld [vmem:[#allocation57_spill] sm:$0xff] }
  0xa7   : > { %3820 = vst [vmem:[#allocation18_spill] sm:$0xff] %v2466_v45  ;;  %3821 = vst [vmem:[#allocation19_spill] sm:$0xff] %v2468_v50  ;;  %v558_v17 = vadd.f32 %v550_v57, %v538_v35  ;;  %v559_v22 = vadd.f32 %v551_v0, %v539_v40  ;;  %v564_v10 = vrot.slane %v3823_v38, %v2176_v11  ;;  %v3890_v50 = vld [vmem:[#allocation55_spill] sm:$0xff]  ;;  %v3891_v45 = vld [vmem:[#allocation56_spill] sm:$0xff] }
  0xa8   : > { %3822 = vst [vmem:[#allocation24_spill] sm:$0xff] %v2470_v51  ;;  %v560_v56 = vadd.f32 %v552_v43, %v540_v8  ;;  %v584_v28 = vrot.slane %v2313_v4, %v2176_v11  ;;  %v604_v1 = vrot.slane %v2316_v5, %v2176_v11  ;;  %v624_v7 = vrot.slane %v2319_v34, %v2176_v11  ;;  %v3825_v43 = vld [vmem:[#allocation49_spill] sm:$0xff]  ;;  %v3889_v51 = vld [vmem:[#allocation54_spill] sm:$0xff] }
  0xa9   : > { %v565_v27 = vmul.f32 %v564_v10, %v3824_v62  ;;  %v566_v63 = vmul.f32 %v564_v10, %v2295_v9  ;;  %v567_v15 = vmul.f32 %v564_v10, %v2300_v59  ;;  %v568_v40 = vmul.f32 %v564_v10, %v2302_v48 }
  0xaa   : > { %v569_v58 = vmul.f32 %v564_v10, %v2304_v47  ;;  %v570_v2 = vmul.f32 %v564_v10, %v2306_v37  ;;  %v571_v31 = vmul.f32 %v564_v10, %v2308_v54  ;;  %v572_v52 = vmul.f32 %v564_v10, %v2310_v3 }
  0xab   : > { %v573_v26 = vadd.f32 %v565_v27, %v553_v60  ;;  %v574_v49 = vadd.f32 %v566_v63, %v554_v61  ;;  %v575_v46 = vadd.f32 %v567_v15, %v555_v20  ;;  %v576_v11 = vadd.f32 %v568_v40, %v556_v14  ;;  %v3826_v60 = vld [vmem:[#allocation50_spill] sm:$0xff]  ;;  %v3827_v20 = vld [vmem:[#allocation51_spill] sm:$0xff] }
  0xac   : > { %v577_v55 = vadd.f32 %v569_v58, %v557_v16  ;;  %v578_v33 = vadd.f32 %v570_v2, %v558_v17  ;;  %v579_v25 = vadd.f32 %v571_v31, %v559_v22  ;;  %v580_v36 = vadd.f32 %v572_v52, %v560_v56  ;;  %v3828_v31 = vld [vmem:[#allocation54_spill] sm:$0xff] }
  0xad   : > { %v585_v35 = vmul.f32 %v584_v28, %v2335_v12  ;;  %v586_v8 = vmul.f32 %v584_v28, %v2337_v13  ;;  %v587_v32 = vmul.f32 %v584_v28, %v2340_v18  ;;  %v588_v57 = vmul.f32 %v584_v28, %v2342_v19  ;;  %v3830_v19 = vld [vmem:[#allocation56_spill] sm:$0xff]  ;;  %v3831_v18 = vld [vmem:[#allocation57_spill] sm:$0xff] }
  0xae   : > { %v589_v0 = vmul.f32 %v584_v28, %v2344_v21  ;;  %v590_v10 = vmul.f32 %v584_v28, %v3825_v43  ;;  %v591_v61 = vmul.f32 %v584_v28, %v3826_v60  ;;  %v592_v14 = vmul.f32 %v584_v28, %v3827_v20  ;;  %v3829_v21 = vld [vmem:[#allocation55_spill] sm:$0xff]  ;;  %v3879_v20 = vld [vmem:[#allocation26_spill] sm:$0xff] }
  0xaf   : > { %v593_v16 = vadd.f32 %v585_v35, %v573_v26  ;;  %v594_v17 = vadd.f32 %v586_v8, %v574_v49  ;;  %v595_v22 = vadd.f32 %v587_v32, %v575_v46  ;;  %v596_v56 = vadd.f32 %v588_v57, %v576_v11  ;;  %v3832_v26 = vld [vmem:[#allocation58_spill] sm:$0xff]  ;;  %v3833_v46 = vld [vmem:[#allocation59_spill] sm:$0xff] }
  0xb0   : > { %v597_v27 = vadd.f32 %v589_v0, %v577_v55  ;;  %v598_v63 = vadd.f32 %v590_v10, %v578_v33  ;;  %v599_v15 = vadd.f32 %v591_v61, %v579_v25  ;;  %v600_v40 = vadd.f32 %v592_v14, %v580_v36  ;;  %v3834_v0 = vld [vmem:[#allocation60_spill] sm:$0xff]  ;;  %v3835_v61 = vld [vmem:[#allocation61_spill] sm:$0xff] }
  0xb1   : > { %v605_v58 = vmul.f32 %v604_v1, %v2362_v41  ;;  %v606_v2 = vmul.f32 %v604_v1, %v2364_v6  ;;  %v607_v52 = vmul.f32 %v604_v1, %v3828_v31  ;;  %v608_v43 = vmul.f32 %v604_v1, %v3829_v21  ;;  %v3836_v21 = vld [vmem:[#allocation64_spill] sm:$0xff]  ;;  %v3837_v31 = vld [vmem:[#allocation65_spill] sm:$0xff]  ;;  %v3838_v6 = vld [vmem:[#allocation66_spill] sm:$0xff] }
  0xb2   : > { %v609_v60 = vmul.f32 %v604_v1, %v3830_v19  ;;  %v610_v28 = vmul.f32 %v604_v1, %v3831_v18  ;;  %v611_v49 = vmul.f32 %v604_v1, %v3832_v26  ;;  %v612_v11 = vmul.f32 %v604_v1, %v3833_v46  ;;  %v3839_v41 = vld [vmem:[#allocation67_spill] sm:$0xff] }
  0xb3   : > { %v613_v55 = vadd.f32 %v605_v58, %v593_v16  ;;  %v614_v33 = vadd.f32 %v606_v2, %v594_v17  ;;  %v615_v25 = vadd.f32 %v607_v52, %v595_v22  ;;  %v616_v36 = vadd.f32 %v608_v43, %v596_v56  ;;  %v3840_v16 = vld [vmem:[#allocation68_spill] sm:$0xff]  ;;  %v3841_v22 = vld [vmem:[#allocation69_spill] sm:$0xff]  ;;  %v3849_v2 = vld [vmem:[#allocation14_spill] sm:$0xff] }
  0xb4   : > { %v617_v35 = vadd.f32 %v609_v60, %v597_v27  ;;  %v618_v8 = vadd.f32 %v610_v28, %v598_v63  ;;  %v619_v32 = vadd.f32 %v611_v49, %v599_v15  ;;  %v620_v57 = vadd.f32 %v612_v11, %v600_v40  ;;  %v3842_v60 = vld [vmem:[#allocation70_spill] sm:$0xff]  ;;  %v3843_v56 = vld [vmem:[#allocation73_spill] sm:$0xff]  ;;  %v3845_v63 = vld [vmem:[#allocation71_spill] sm:$0xff] }
  0xb5   : > { %v625_v10 = vmul.f32 %v624_v7, %v3834_v0  ;;  %v626_v14 = vmul.f32 %v624_v7, %v3835_v61  ;;  %v627_v19 = vmul.f32 %v624_v7, %v3836_v21  ;;  %v628_v18 = vmul.f32 %v624_v7, %v3837_v31  ;;  %v3846_v15 = vld [vmem:[#allocation74_spill] sm:$0xff]  ;;  %v3850_v52 = vld [vmem:[#allocation27_spill] sm:$0xff]  ;;  %v3851_v49 = vld [vmem:[#allocation72_spill] sm:$0xff] }
  0xb6   : > { %v629_v26 = vmul.f32 %v624_v7, %v3838_v6  ;;  %v630_v1 = vmul.f32 %v624_v7, %v3839_v41  ;;  %v631_v17 = vmul.f32 %v624_v7, %v3840_v16  ;;  %v632_v43 = vmul.f32 %v624_v7, %v3841_v22  ;;  %v3852_v11 = vld [vmem:[#allocation75_spill] sm:$0xff]  ;;  %v3854_v16 = vld [vmem:[#allocation28_spill] sm:$0xff]  ;;  %v3877_v31 = vld [vmem:[#allocation41_spill] sm:$0xff] }
  0xb7   : > { %v2514_v27 = vadd.f32 %v3843_v56, %v3842_v60  ;;  %v2518_v40 = vadd.f32 %v3846_v15, %v3845_v63  ;;  %v2520_v58 = vadd.f32 %v625_v10, %v613_v55  ;;  %v652_v28 = vrot.slane %v3850_v52, %v3849_v2  ;;  %v3855_v22 = vld [vmem:[#allocation15_spill] sm:$0xff]  ;;  %v3876_v6 = vld [vmem:[#allocation40_spill] sm:$0xff]  ;;  %v3878_v21 = vld [vmem:[#allocation42_spill] sm:$0xff] }
  0xb8   : > { %v2526_v41 = vadd.f32 %v3852_v11, %v3851_v49  ;;  %v664_v7 = vrot.slane %v3854_v16, %v3849_v2  ;;  %v684_v60 = vrot.slane %v3855_v22, %v3849_v2  ;;  %v704_v56 = vrot.slane %v3823_v38, %v3849_v2  ;;  %v3865_v38 = vld [vmem:[#allocation21_spill] sm:$0xff]  ;;  %v3875_v16 = vld [vmem:[#allocation39_spill] sm:$0xff] }
  0xb9   : > { %3844 = vst [vmem:[#allocation25_spill] sm:$0xff] %v2514_v27  ;;  %3847 = vst [vmem:[#allocation30_spill] sm:$0xff] %v2518_v40  ;;  %v2534_v63 = vadd.f32 %v626_v14, %v614_v33  ;;  %v2536_v55 = vadd.f32 %v627_v19, %v615_v25  ;;  %v2538_v10 = vadd.f32 %v628_v18, %v616_v36  ;;  %v3866_v14 = vld [vmem:[#allocation22_spill] sm:$0xff]  ;;  %v3867_v25 = vld [vmem:[#allocation23_spill] sm:$0xff] }
  0xba   : > { %3848 = vst [vmem:[#allocation31_spill] sm:$0xff] %v2520_v58  ;;  %3853 = vst [vmem:[#allocation70_spill] sm:$0xff] %v2526_v41  ;;  %v2540_v15 = vadd.f32 %v629_v26, %v617_v35  ;;  %v2542_v52 = vadd.f32 %v630_v1, %v618_v8  ;;  %v2544_v49 = vadd.f32 %v631_v17, %v619_v32  ;;  %v3864_v41 = vld [vmem:[#allocation20_spill] sm:$0xff]  ;;  %v3869_v35 = vld [vmem:[#allocation33_spill] sm:$0xff] }
  0xbb   : > { %3856 = vst [vmem:[#allocation73_spill] sm:$0xff] %v2534_v63  ;;  %3857 = vst [vmem:[#allocation71_spill] sm:$0xff] %v2536_v55  ;;  %v2546_v11 = vadd.f32 %v632_v43, %v620_v57  ;;  %v653_v40 = vmul.f32 %v652_v28, %v3864_v41  ;;  %v654_v33 = vmul.f32 %v652_v28, %v3865_v38  ;;  %v3868_v36 = vld [vmem:[#allocation32_spill] sm:$0xff]  ;;  %v3870_v1 = vld [vmem:[#allocation34_spill] sm:$0xff] }
  0xbc   : > { %3858 = vst [vmem:[#allocation74_spill] sm:$0xff] %v2538_v10  ;;  %3859 = vst [vmem:[#allocation14_spill] sm:$0xff] %v2540_v15  ;;  %v655_v19 = vmul.f32 %v652_v28, %v3866_v14  ;;  %v656_v18 = vmul.f32 %v652_v28, %v3867_v25  ;;  %v657_v26 = vmul.f32 %v652_v28, %v3868_v36  ;;  %v3871_v17 = vld [vmem:[#allocation35_spill] sm:$0xff]  ;;  %v3872_v43 = vld [vmem:[#allocation36_spill] sm:$0xff] }
  0xbd   : > { %3860 = vst [vmem:[#allocation72_spill] sm:$0xff] %v2542_v52  ;;  %3861 = vst [vmem:[#allocation75_spill] sm:$0xff] %v2544_v49  ;;  %v658_v8 = vmul.f32 %v652_v28, %v3869_v35  ;;  %v659_v32 = vmul.f32 %v652_v28, %v3870_v1  ;;  %v660_v57 = vmul.f32 %v652_v28, %v3871_v17  ;;  %v3873_v49 = vld [vmem:[#allocation37_spill] sm:$0xff]  ;;  %v3874_v58 = vld [vmem:[#allocation38_spill] sm:$0xff] }
  0xbe   : > { %3862 = vst [vmem:[#allocation77_spill] sm:$0xff] %v2546_v11  ;;  %v665_v11 = vmul.f32 %v664_v7, %v3872_v43  ;;  %v666_v22 = vmul.f32 %v664_v7, %v3873_v49  ;;  %v667_v41 = vmul.f32 %v664_v7, %v3874_v58  ;;  %v668_v38 = vmul.f32 %v664_v7, %v3875_v16  ;;  %v3888_v27 = vld [vmem:[#allocation53_spill] sm:$0xff] }
  0xbf   : > { %v669_v14 = vmul.f32 %v664_v7, %v3876_v6  ;;  %v670_v25 = vmul.f32 %v664_v7, %v3877_v31  ;;  %v671_v36 = vmul.f32 %v664_v7, %v3878_v21  ;;  %v672_v35 = vmul.f32 %v664_v7, %v2278_v30 }
  0xc0   : > { %v673_v61 = vadd.f32 %v665_v11, %v653_v40  ;;  %v674_v1 = vadd.f32 %v666_v22, %v654_v33  ;;  %v675_v0 = vadd.f32 %v667_v41, %v655_v19  ;;  %v676_v28 = vadd.f32 %v668_v38, %v656_v18  ;;  %v3880_v40 = vld [vmem:[#allocation29_spill] sm:$0xff] }
  0xc1   : > { %v677_v17 = vadd.f32 %v669_v14, %v657_v26  ;;  %v678_v43 = vadd.f32 %v670_v25, %v658_v8  ;;  %v679_v46 = vadd.f32 %v671_v36, %v659_v32  ;;  %v680_v49 = vadd.f32 %v672_v35, %v660_v57 }
  0xc2   : > { %v685_v58 = vmul.f32 %v684_v60, %v3811_v39  ;;  %v686_v16 = vmul.f32 %v684_v60, %v3812_v24  ;;  %v687_v6 = vmul.f32 %v684_v60, %v3813_v23  ;;  %v688_v31 = vmul.f32 %v684_v60, %v3814_v53 }
  0xc3   : > { %v689_v21 = vmul.f32 %v684_v60, %v3815_v29  ;;  %v690_v7 = vmul.f32 %v684_v60, %v3879_v20  ;;  %v691_v22 = vmul.f32 %v684_v60, %v3880_v40  ;;  %v692_v41 = vmul.f32 %v684_v60, %v3818_v42 }
  0xc4   : > { %v693_v38 = vadd.f32 %v685_v58, %v673_v61  ;;  %v694_v11 = vadd.f32 %v686_v16, %v674_v1  ;;  %v695_v33 = vadd.f32 %v687_v6, %v675_v0  ;;  %v696_v14 = vadd.f32 %v688_v31, %v676_v28 }
  0xc5   : > { %v697_v19 = vadd.f32 %v689_v21, %v677_v17  ;;  %v698_v25 = vadd.f32 %v690_v7, %v678_v43  ;;  %v699_v18 = vadd.f32 %v691_v22, %v679_v46  ;;  %v700_v36 = vadd.f32 %v692_v41, %v680_v49 }
  0xc6   : > { %v705_v26 = vmul.f32 %v704_v56, %v3824_v62  ;;  %v706_v35 = vmul.f32 %v704_v56, %v2295_v9  ;;  %v707_v8 = vmul.f32 %v704_v56, %v2300_v59  ;;  %v708_v32 = vmul.f32 %v704_v56, %v2302_v48 }
  0xc7   : > { %v709_v57 = vmul.f32 %v704_v56, %v2304_v47  ;;  %v710_v60 = vmul.f32 %v704_v56, %v2306_v37  ;;  %v711_v61 = vmul.f32 %v704_v56, %v2308_v54  ;;  %v712_v6 = vmul.f32 %v704_v56, %v2310_v3 }
  0xc8   : > { %v713_v58 = vadd.f32 %v705_v26, %v693_v38  ;;  %v714_v49 = vadd.f32 %v706_v35, %v694_v11  ;;  %v715_v1 = vadd.f32 %v707_v8, %v695_v33  ;;  %v716_v17 = vadd.f32 %v708_v32, %v696_v14  ;;  %v3881_v11 = vld [vmem:[#allocation46_spill] sm:$0xff]  ;;  %v3882_v14 = vld [vmem:[#allocation47_spill] sm:$0xff]  ;;  %v3884_v35 = vld [vmem:[#allocation49_spill] sm:$0xff] }
  0xc9   : > { %v717_v56 = vadd.f32 %v709_v57, %v697_v19  ;;  %v718_v43 = vadd.f32 %v710_v60, %v698_v25  ;;  %v724_v28 = vrot.slane %v2313_v4, %v3849_v2  ;;  %v719_v7 = vadd.f32 %v711_v61, %v699_v18  ;;  %v3883_v25 = vld [vmem:[#allocation48_spill] sm:$0xff]  ;;  %v3885_v18 = vld [vmem:[#allocation50_spill] sm:$0xff]  ;;  %v3886_v32 = vld [vmem:[#allocation51_spill] sm:$0xff] }
  0xca   : > { %v720_v22 = vadd.f32 %v712_v6, %v700_v36  ;;  %v744_v41 = vrot.slane %v2316_v5, %v3849_v2  ;;  %v764_v0 = vrot.slane %v2319_v34, %v3849_v2  ;;  %v3887_v5 = vld [vmem:[#allocation52_spill] sm:$0xff] }
  0xcb   : > { %v725_v46 = vmul.f32 %v724_v28, %v2335_v12  ;;  %v726_v38 = vmul.f32 %v724_v28, %v2337_v13  ;;  %v727_v33 = vmul.f32 %v724_v28, %v3881_v11  ;;  %v728_v19 = vmul.f32 %v724_v28, %v3882_v14 }
  0xcc   : > { %v729_v26 = vmul.f32 %v724_v28, %v3883_v25  ;;  %v730_v8 = vmul.f32 %v724_v28, %v3884_v35  ;;  %v731_v36 = vmul.f32 %v724_v28, %v3885_v18  ;;  %v732_v57 = vmul.f32 %v724_v28, %v3886_v32 }
  0xcd   : > { %v733_v60 = vadd.f32 %v725_v46, %v713_v58  ;;  %v734_v61 = vadd.f32 %v726_v38, %v714_v49  ;;  %v735_v6 = vadd.f32 %v727_v33, %v715_v1  ;;  %v736_v2 = vadd.f32 %v728_v19, %v716_v17  ;;  %v3893_v46 = vld [vmem:[#allocation58_spill] sm:$0xff]  ;;  %v3894_v49 = vld [vmem:[#allocation59_spill] sm:$0xff] }
  0xce   : > { %v737_v16 = vadd.f32 %v729_v26, %v717_v56  ;;  %v738_v31 = vadd.f32 %v730_v8, %v718_v43  ;;  %v739_v21 = vadd.f32 %v731_v36, %v719_v7  ;;  %v740_v34 = vadd.f32 %v732_v57, %v720_v22  ;;  %v3895_v26 = vld [vmem:[#allocation60_spill] sm:$0xff]  ;;  %v3896_v36 = vld [vmem:[#allocation61_spill] sm:$0xff] }
  0xcf   : > { %v745_v52 = vmul.f32 %v744_v41, %v3887_v5  ;;  %v746_v15 = vmul.f32 %v744_v41, %v3888_v27  ;;  %v747_v10 = vmul.f32 %v744_v41, %v3889_v51  ;;  %v748_v55 = vmul.f32 %v744_v41, %v3890_v50  ;;  %v3897_v50 = vld [vmem:[#allocation64_spill] sm:$0xff]  ;;  %v3898_v51 = vld [vmem:[#allocation65_spill] sm:$0xff]  ;;  %v3899_v27 = vld [vmem:[#allocation66_spill] sm:$0xff] }
  0xd0   : > { %v749_v63 = vmul.f32 %v744_v41, %v3891_v45  ;;  %v750_v28 = vmul.f32 %v744_v41, %v3892_v44  ;;  %v751_v58 = vmul.f32 %v744_v41, %v3893_v46  ;;  %v752_v1 = vmul.f32 %v744_v41, %v3894_v49  ;;  %v3900_v5 = vld [vmem:[#allocation67_spill] sm:$0xff]  ;;  %v3931_v49 = vld [vmem:[#allocation42_spill] sm:$0xff] }
  0xd1   : > { %v753_v17 = vadd.f32 %v745_v52, %v733_v60  ;;  %v754_v56 = vadd.f32 %v746_v15, %v734_v61  ;;  %v755_v43 = vadd.f32 %v747_v10, %v735_v6  ;;  %v756_v7 = vadd.f32 %v748_v55, %v736_v2  ;;  %v3901_v52 = vld [vmem:[#allocation68_spill] sm:$0xff]  ;;  %v3902_v10 = vld [vmem:[#allocation69_spill] sm:$0xff]  ;;  %v3907_v6 = vld [vmem:[#allocation62_spill] sm:$0xff] }
  0xd2   : > { %v757_v22 = vadd.f32 %v749_v63, %v737_v16  ;;  %v758_v38 = vadd.f32 %v750_v28, %v738_v31  ;;  %v759_v33 = vadd.f32 %v751_v58, %v739_v21  ;;  %v760_v19 = vadd.f32 %v752_v1, %v740_v34  ;;  %v3908_v2 = vld [vmem:[#allocation27_spill] sm:$0xff]  ;;  %v3909_v58 = vld [vmem:[#allocation28_spill] sm:$0xff] }
  0xd3   : > { %v765_v8 = vmul.f32 %v764_v0, %v3895_v26  ;;  %v766_v57 = vmul.f32 %v764_v0, %v3896_v36  ;;  %v767_v45 = vmul.f32 %v764_v0, %v3897_v50  ;;  %v768_v44 = vmul.f32 %v764_v0, %v3898_v51  ;;  %v3913_v34 = vld [vmem:[#allocation76_spill] sm:$0xff]  ;;  %v3930_v26 = vld [vmem:[#allocation41_spill] sm:$0xff] }
  0xd4   : > { %v769_v46 = vmul.f32 %v764_v0, %v3899_v27  ;;  %v770_v41 = vmul.f32 %v764_v0, %v3900_v5  ;;  %v771_v15 = vmul.f32 %v764_v0, %v3901_v52  ;;  %v772_v55 = vmul.f32 %v764_v0, %v3902_v10  ;;  %v3910_v27 = vld [vmem:[#allocation15_spill] sm:$0xff]  ;;  %v3911_v52 = vld [vmem:[#allocation16_spill] sm:$0xff] }
  0xd5   : > { %v773_v61 = vadd.f32 %v765_v8, %v753_v17  ;;  %v792_v28 = vrot.slane %v3908_v2, %v3907_v6  ;;  %v804_v1 = vrot.slane %v3909_v58, %v3907_v6  ;;  %v824_v5 = vrot.slane %v3910_v27, %v3907_v6  ;;  %v3925_v50 = vld [vmem:[#allocation36_spill] sm:$0xff] }
  0xd6   : > { %v844_v51 = vrot.slane %v3911_v52, %v3907_v6  ;;  %v2636_v0 = vrot.slane %v2313_v4, %v3907_v6  ;;  %v2638_v21 = vadd.f32 %v766_v57, %v754_v56  ;;  %v2640_v60 = vadd.f32 %v767_v45, %v755_v43  ;;  %v3914_v52 = vld [vmem:[#allocation31_spill] sm:$0xff]  ;;  %v3917_v4 = vld [vmem:[#allocation20_spill] sm:$0xff]  ;;  %v3918_v57 = vld [vmem:[#allocation21_spill] sm:$0xff] }
  0xd7   : > { %v2642_v17 = vadd.f32 %v768_v44, %v756_v7  ;;  %v2644_v8 = vadd.f32 %v769_v46, %v757_v22  ;;  %v2646_v2 = vadd.f32 %v770_v41, %v758_v38  ;;  %v2648_v58 = vadd.f32 %v771_v15, %v759_v33  ;;  %v3919_v43 = vld [vmem:[#allocation22_spill] sm:$0xff]  ;;  %v3920_v7 = vld [vmem:[#allocation23_spill] sm:$0xff]  ;;  %v3921_v22 = vld [vmem:[#allocation32_spill] sm:$0xff] }
  0xd8   : > { %v2650_v27 = vadd.f32 %v772_v55, %v760_v19  ;;  %v3915_v16 = vmax.f32 %v3913_v34, %v3914_v52  ;;  %v793_v56 = vmul.f32 %v792_v28, %v3917_v4  ;;  %v794_v45 = vmul.f32 %v792_v28, %v3918_v57  ;;  %v3922_v41 = vld [vmem:[#allocation33_spill] sm:$0xff]  ;;  %v3923_v15 = vld [vmem:[#allocation34_spill] sm:$0xff]  ;;  %v3924_v55 = vld [vmem:[#allocation35_spill] sm:$0xff] }
  0xd9   : > { %v795_v44 = vmul.f32 %v792_v28, %v3919_v43  ;;  %v796_v46 = vmul.f32 %v792_v28, %v3920_v7  ;;  %v797_v38 = vmul.f32 %v792_v28, %v3921_v22  ;;  %v798_v33 = vmul.f32 %v792_v28, %v3922_v41  ;;  %v3926_v34 = vld [vmem:[#allocation37_spill] sm:$0xff]  ;;  %v3929_v36 = vld [vmem:[#allocation40_spill] sm:$0xff] }
  0xda   : > { %3912 = vst [vmem:[#allocation26_spill] sm:$0xff] %v2650_v27  ;;  %v2655_v10 = vmax.f32 %v3915_v16, %v773_v61  ;;  %v799_v19 = vmul.f32 %v792_v28, %v3923_v15  ;;  %v800_v27 = vmul.f32 %v792_v28, %v3924_v55  ;;  %v805_v52 = vmul.f32 %v804_v1, %v3925_v50  ;;  %v3927_v61 = vld [vmem:[#allocation38_spill] sm:$0xff] }
  0xdb   : > { %v806_v16 = vmul.f32 %v804_v1, %v3926_v34  ;;  %v807_v4 = vmul.f32 %v804_v1, %v3927_v61  ;;  %v809_v43 = vmul.f32 %v804_v1, %v3929_v36  ;;  %v810_v7 = vmul.f32 %v804_v1, %v3930_v26 }
  0xdc   : > { %3916 = vst [vmem:[#allocation29_spill] sm:$0xff] %v2655_v10  ;;  %v3928_v10 = vld [vmem:[#allocation39_spill] sm:$0xff]  ;;  %v811_v22 = vmul.f32 %v804_v1, %v3931_v49  ;;  %v812_v41 = vmul.f32 %v804_v1, %v2278_v30  ;;  %v813_v6 = vadd.f32 %v805_v52, %v793_v56  ;;  %v825_v61 = vmul.f32 %v824_v5, %v3811_v39 }
  0xdd   : > { %v808_v57 = vmul.f32 %v804_v1, %v3928_v10  ;;  %v814_v15 = vadd.f32 %v806_v16, %v794_v45  ;;  %v815_v63 = vadd.f32 %v807_v4, %v795_v44  ;;  %v817_v55 = vadd.f32 %v809_v43, %v797_v38 }
  0xde   : > { %v818_v50 = vadd.f32 %v810_v7, %v798_v33  ;;  %v819_v31 = vadd.f32 %v811_v22, %v799_v19  ;;  %v820_v34 = vadd.f32 %v812_v41, %v800_v27  ;;  %v826_v10 = vmul.f32 %v824_v5, %v3812_v24 }
  0xdf   : > { %v816_v28 = vadd.f32 %v808_v57, %v796_v46  ;;  %v827_v36 = vmul.f32 %v824_v5, %v3813_v23  ;;  %v828_v26 = vmul.f32 %v824_v5, %v3814_v53  ;;  %v829_v49 = vmul.f32 %v824_v5, %v3815_v29 }
  0xe0   : > { %v830_v30 = vmul.f32 %v824_v5, %v3879_v20  ;;  %v831_v1 = vmul.f32 %v824_v5, %v3880_v40  ;;  %v832_v56 = vmul.f32 %v824_v5, %v3818_v42  ;;  %v833_v45 = vadd.f32 %v825_v61, %v813_v6 }
  0xe1   : > { %v834_v44 = vadd.f32 %v826_v10, %v814_v15  ;;  %v835_v46 = vadd.f32 %v827_v36, %v815_v63  ;;  %v836_v27 = vadd.f32 %v828_v26, %v816_v28  ;;  %v837_v38 = vadd.f32 %v829_v49, %v817_v55  ;;  %v3935_v36 = vld [vmem:[#allocation18_spill] sm:$0xff]  ;;  %v3936_v26 = vld [vmem:[#allocation71_spill] sm:$0xff] }
  0xe2   : > { %v838_v39 = vadd.f32 %v830_v30, %v818_v50  ;;  %v839_v33 = vadd.f32 %v831_v1, %v819_v31  ;;  %v840_v24 = vadd.f32 %v832_v56, %v820_v34  ;;  %v845_v23 = vmul.f32 %v844_v51, %v3824_v62  ;;  %v3932_v50 = vld [vmem:[#allocation17_spill] sm:$0xff]  ;;  %v3938_v1 = vld [vmem:[#allocation19_spill] sm:$0xff]  ;;  %v3939_v56 = vld [vmem:[#allocation74_spill] sm:$0xff] }
  0xe3   : > { %v846_v53 = vmul.f32 %v844_v51, %v2295_v9  ;;  %v847_v29 = vmul.f32 %v844_v51, %v2300_v59  ;;  %v848_v20 = vmul.f32 %v844_v51, %v2302_v48  ;;  %v849_v40 = vmul.f32 %v844_v51, %v2304_v47  ;;  %v3933_v34 = vld [vmem:[#allocation73_spill] sm:$0xff] }
  0xe4   : > { %v850_v5 = vmul.f32 %v844_v51, %v2306_v37  ;;  %v851_v42 = vmul.f32 %v844_v51, %v2308_v54  ;;  %v852_v63 = vmul.f32 %v844_v51, %v2310_v3  ;;  %v853_v6 = vadd.f32 %v845_v23, %v833_v45  ;;  %v3950_v23 = vld [vmem:[#allocation75_spill] sm:$0xff] }
  0xe5   : > { %v854_v19 = vadd.f32 %v846_v53, %v834_v44  ;;  %v855_v31 = vadd.f32 %v847_v29, %v835_v46  ;;  %v856_v52 = vadd.f32 %v848_v20, %v836_v27  ;;  %v857_v16 = vadd.f32 %v849_v40, %v837_v38  ;;  %v3942_v46 = vld [vmem:[#allocation14_spill] sm:$0xff] }
  0xe6   : > { %v858_v62 = vadd.f32 %v850_v5, %v838_v39  ;;  %v859_v4 = vadd.f32 %v851_v42, %v839_v33  ;;  %v860_v57 = vadd.f32 %v852_v63, %v840_v24  ;;  %v865_v43 = vmul.f32 %v2636_v0, %v2335_v12  ;;  %v3946_v39 = vld [vmem:[#allocation72_spill] sm:$0xff]  ;;  %v3953_v63 = vld [vmem:[#allocation62_spill] sm:$0xff] }
  0xe7   : > { %v866_v7 = vmul.f32 %v2636_v0, %v2337_v13  ;;  %v867_v22 = vmul.f32 %v2636_v0, %v3881_v11  ;;  %v868_v51 = vmul.f32 %v2636_v0, %v3882_v14  ;;  %v869_v41 = vmul.f32 %v2636_v0, %v3883_v25 }
  0xe8   : > { %v870_v15 = vmul.f32 %v2636_v0, %v3884_v35  ;;  %v871_v28 = vmul.f32 %v2636_v0, %v3885_v18  ;;  %v872_v55 = vmul.f32 %v2636_v0, %v3886_v32  ;;  %v3934_v61 = vmax.f32 %v3932_v50, %v3933_v34  ;;  %v3941_v0 = vld [vmem:[#allocation24_spill] sm:$0xff] }
  0xe9   : > { %v3937_v49 = vmax.f32 %v3935_v36, %v3936_v26  ;;  %v3940_v45 = vmax.f32 %v3938_v1, %v3939_v56  ;;  %v3943_v27 = vmax.f32 %v3941_v0, %v3942_v46  ;;  %v874_v20 = vadd.f32 %v866_v7, %v854_v19  ;;  %v3957_v56 = vld [vmem:[#allocation53_spill] sm:$0xff]  ;;  %v3962_v7 = vld [vmem:[#allocation58_spill] sm:$0xff] }
  0xea   : > { %v2709_v10 = vmax.f32 %v3934_v61, %v2638_v21  ;;  %v3945_v21 = vld [vmem:[#allocation25_spill] sm:$0xff]  ;;  %v875_v40 = vadd.f32 %v867_v22, %v855_v31  ;;  %v876_v5 = vadd.f32 %v868_v51, %v856_v52  ;;  %v877_v42 = vadd.f32 %v869_v41, %v857_v16  ;;  %v3960_v31 = vld [vmem:[#allocation56_spill] sm:$0xff] }
  0xeb   : > { %v2715_v30 = vmax.f32 %v3937_v49, %v2640_v60  ;;  %v2721_v44 = vmax.f32 %v3940_v45, %v2642_v17  ;;  %v2727_v38 = vmax.f32 %v3943_v27, %v2644_v8  ;;  %v3947_v33 = vmax.f32 %v3945_v21, %v3946_v39  ;;  %v3949_v60 = vld [vmem:[#allocation30_spill] sm:$0xff]  ;;  %v3954_v8 = vld [vmem:[#allocation44_spill] sm:$0xff]  ;;  %v3961_v16 = vld [vmem:[#allocation57_spill] sm:$0xff] }
  0xec   : > { %v3951_v53 = vmax.f32 %v3949_v60, %v3950_v23  ;;  %v873_v17 = vadd.f32 %v865_v43, %v853_v6  ;;  %v884_v50 = vrot.slane %v3954_v8, %v3953_v63  ;;  %v878_v34 = vadd.f32 %v870_v15, %v858_v62  ;;  %v3956_v49 = vld [vmem:[#allocation52_spill] sm:$0xff]  ;;  %v3959_v6 = vld [vmem:[#allocation55_spill] sm:$0xff] }
  0xed   : > { %3944 = vst [vmem:[#allocation46_spill] sm:$0xff] %v2727_v38  ;;  %v2733_v24 = vmax.f32 %v3947_v33, %v2646_v2  ;;  %v879_v61 = vadd.f32 %v871_v28, %v859_v4  ;;  %v880_v36 = vadd.f32 %v872_v55, %v860_v57  ;;  %v3955_v2 = vld [vmem:[#allocation45_spill] sm:$0xff]  ;;  %v3963_v62 = vld [vmem:[#allocation59_spill] sm:$0xff]  ;;  %v3964_v21 = vld [vmem:[#allocation60_spill] sm:$0xff] }
  0xee   : > { %v2739_v29 = vmax.f32 %v3951_v53, %v2648_v58  ;;  %v904_v26 = vrot.slane %v3955_v2, %v3953_v63  ;;  %v885_v1 = vmul.f32 %v884_v50, %v3956_v49  ;;  %v886_v45 = vmul.f32 %v884_v50, %v3957_v56  ;;  %v3958_v58 = vld [vmem:[#allocation54_spill] sm:$0xff]  ;;  %v3965_v33 = vld [vmem:[#allocation61_spill] sm:$0xff]  ;;  %v3966_v23 = vld [vmem:[#allocation64_spill] sm:$0xff] }
  0xef   : > { %3948 = vst [vmem:[#allocation47_spill] sm:$0xff] %v2733_v24  ;;  %v887_v0 = vmul.f32 %v884_v50, %v3958_v58  ;;  %v888_v19 = vmul.f32 %v884_v50, %v3959_v6  ;;  %v889_v52 = vmul.f32 %v884_v50, %v3960_v31  ;;  %v890_v43 = vmul.f32 %v884_v50, %v3961_v16  ;;  %v3967_v63 = vld [vmem:[#allocation65_spill] sm:$0xff]  ;;  %v3969_v38 = vld [vmem:[#allocation67_spill] sm:$0xff] }
  0xf0   : > { %3952 = vst [vmem:[#allocation48_spill] sm:$0xff] %v2739_v29  ;;  %v891_v22 = vmul.f32 %v884_v50, %v3962_v7  ;;  %v892_v4 = vmul.f32 %v884_v50, %v3963_v62  ;;  %v893_v57 = vadd.f32 %v885_v1, %v873_v17  ;;  %v894_v51 = vadd.f32 %v886_v45, %v874_v20  ;;  %v3968_v29 = vld [vmem:[#allocation66_spill] sm:$0xff]  ;;  %v3970_v17 = vld [vmem:[#allocation68_spill] sm:$0xff] }
  0xf1   : > { %v895_v41 = vadd.f32 %v887_v0, %v875_v40  ;;  %v896_v15 = vadd.f32 %v888_v19, %v876_v5  ;;  %v897_v28 = vadd.f32 %v889_v52, %v877_v42  ;;  %v898_v55 = vadd.f32 %v890_v43, %v878_v34  ;;  %v3971_v40 = vld [vmem:[#allocation69_spill] sm:$0xff]  ;;  %v3972_v42 = vld [vmem:[#allocation26_spill] sm:$0xff]  ;;  %v3978_v0 = vld [vmem:[#allocation63_spill] sm:$0xff] }
  0xf2   : > { %v899_v46 = vadd.f32 %v891_v22, %v879_v61  ;;  %v900_v27 = vadd.f32 %v892_v4, %v880_v36  ;;  %v905_v39 = vmul.f32 %v904_v26, %v3964_v21  ;;  %v906_v60 = vmul.f32 %v904_v26, %v3965_v33  ;;  %v3973_v34 = vld [vmem:[#allocation70_spill] sm:$0xff]  ;;  %v3974_v61 = vld [vmem:[#allocation77_spill] sm:$0xff]  ;;  %v3979_v19 = vld [vmem:[#allocation27_spill] sm:$0xff] }
  0xf3   : > { %v907_v53 = vmul.f32 %v904_v26, %v3966_v23  ;;  %v908_v2 = vmul.f32 %v904_v26, %v3967_v63  ;;  %v909_v24 = vmul.f32 %v904_v26, %v3968_v29  ;;  %v910_v50 = vmul.f32 %v904_v26, %v3969_v38  ;;  %v3980_v43 = vld [vmem:[#allocation28_spill] sm:$0xff]  ;;  %v3981_v4 = vld [vmem:[#allocation15_spill] sm:$0xff] }
  0xf4   : > { %v911_v20 = vmul.f32 %v904_v26, %v3970_v17  ;;  %v912_v5 = vmul.f32 %v904_v26, %v3971_v40  ;;  %v3975_v36 = vmax.f32 %v3973_v34, %v3974_v61  ;;  %v2767_v45 = vadd.f32 %v905_v39, %v893_v57  ;;  %v3982_v26 = vld [vmem:[#allocation16_spill] sm:$0xff]  ;;  %v3983_v34 = vld [vmem:[#allocation43_spill] sm:$0xff]  ;;  %v2805_v17 = vld [vmem:[#allocation7] sm:$0xff] }
  0xf5   : > { %v932_v52 = vrot.slane %v3979_v19, %v3978_v0  ;;  %v944_v22 = vrot.slane %v3980_v43, %v3978_v0  ;;  %v2775_v38 = vrot.slane %v3981_v4, %v3978_v0  ;;  %v2779_v40 = vrot.slane %v3982_v26, %v3978_v0  ;;  %3989 = vst [vmem:[#allocation21_spill] sm:$0xff] %v2805_v17 }
  0xf6   : > { %v2765_v1 = vmax.f32 %v3975_v36, %v3972_v42  ;;  %3977 = vst [vmem:[#allocation50_spill] sm:$0xff] %v2767_v45  ;;  %v2783_v42 = vrot.slane %v3983_v34, %v3978_v0  ;;  %v2787_v57 = vrot.slane %v3954_v8, %v3978_v0  ;;  %v2789_v39 = vadd.f32 %v906_v60, %v894_v51  ;;  %v2808_v60 = vld [vmem:[#allocation7 + $0x8] sm:$0xff]  ;;  %v2838_v8 = vld [vmem:[#allocation7 + $0x58] sm:$0xff]  ;;  %v2841_v45 = vld [vmem:[#allocation7 + $0x60] sm:$0xff] }
  0xf7   : > { %v2791_v61 = vadd.f32 %v907_v53, %v895_v41  ;;  %v2793_v36 = vadd.f32 %v908_v2, %v896_v15  ;;  %v2795_v4 = vadd.f32 %v909_v24, %v897_v28  ;;  %v2797_v43 = vadd.f32 %v910_v50, %v898_v55  ;;  %3990 = vst [vmem:[#allocation22_spill] sm:$0xff] %v2808_v60  ;;  %v2811_v41 = vld [vmem:[#allocation7 + $0x10] sm:$0xff]  ;;  %v2814_v15 = vld [vmem:[#allocation7 + $0x18] sm:$0xff]  ;;  %v2817_v55 = vld [vmem:[#allocation7 + $0x20] sm:$0xff] }
  0xf8   : > { %3976 = vst [vmem:[#allocation49_spill] sm:$0xff] %v2765_v1  ;;  %v2799_v26 = vadd.f32 %v911_v20, %v899_v46  ;;  %v2801_v19 = vadd.f32 %v912_v5, %v900_v27  ;;  %v933_v51 = vmul.f32 %v2805_v17, %v932_v52  ;;  %v934_v2 = vmul.f32 %v2808_v60, %v932_v52  ;;  %v2820_v27 = vld [vmem:[#allocation7 + $0x28] sm:$0xff]  ;;  %v2823_v50 = vld [vmem:[#allocation7 + $0x30] sm:$0xff]  ;;  %v2826_v5 = vld [vmem:[#allocation7 + $0x38] sm:$0xff] }
  0xf9   : > { %3984 = vst [vmem:[#allocation51_spill] sm:$0xff] %v2795_v4  ;;  %3985 = vst [vmem:[#allocation76_spill] sm:$0xff] %v2797_v43  ;;  %v935_v24 = vmul.f32 %v2811_v41, %v932_v52  ;;  %v936_v28 = vmul.f32 %v2814_v15, %v932_v52  ;;  %v937_v46 = vmul.f32 %v2817_v55, %v932_v52  ;;  %v2832_v60 = vld [vmem:[#allocation7 + $0x48] sm:$0xff]  ;;  %v2835_v17 = vld [vmem:[#allocation7 + $0x50] sm:$0xff] }
  0xfa   : > { %3986 = vst [vmem:[#allocation31_spill] sm:$0xff] %v2799_v26  ;;  %3987 = vst [vmem:[#allocation20_spill] sm:$0xff] %v2801_v19  ;;  %v938_v53 = vmul.f32 %v2820_v27, %v932_v52  ;;  %v939_v20 = vmul.f32 %v2823_v50, %v932_v52  ;;  %v940_v1 = vmul.f32 %v2826_v5, %v932_v52  ;;  %v2847_v34 = vld [vmem:[#allocation7 + $0x70] sm:$0xff]  ;;  %v2850_v19 = vld [vmem:[#allocation7 + $0x78] sm:$0xff] }
  0xfb   : > { %3991 = vst [vmem:[#allocation23_spill] sm:$0xff] %v2811_v41  ;;  %3992 = vst [vmem:[#allocation32_spill] sm:$0xff] %v2814_v15  ;;  %v2829_v41 = vld [vmem:[#allocation7 + $0x40] sm:$0xff]  ;;  %v949_v52 = vmul.f32 %v2841_v45, %v944_v22  ;;  %v2857_v43 = vld [vmem:[#allocation7 + $0x88] sm:$0xff] }
  0xfc   : > { %3993 = vst [vmem:[#allocation33_spill] sm:$0xff] %v2817_v55  ;;  %3994 = vst [vmem:[#allocation34_spill] sm:$0xff] %v2820_v27  ;;  %v945_v15 = vmul.f32 %v2829_v41, %v944_v22  ;;  %v946_v55 = vmul.f32 %v2832_v60, %v944_v22  ;;  %v947_v27 = vmul.f32 %v2835_v17, %v944_v22  ;;  %v2853_v26 = vld [vmem:[#allocation7 + $0x80] sm:$0xff]  ;;  %v2861_v4 = vld [vmem:[#allocation7 + $0x90] sm:$0xff] }
  0xfd   : > { %3995 = vst [vmem:[#allocation35_spill] sm:$0xff] %v2823_v50  ;;  %3996 = vst [vmem:[#allocation36_spill] sm:$0xff] %v2826_v5  ;;  %v948_v50 = vmul.f32 %v2838_v8, %v944_v22  ;;  %v2844_v5 = vld [vmem:[#allocation7 + $0x68] sm:$0xff]  ;;  %v957_v33 = vadd.f32 %v949_v52, %v937_v46 }
  0xfe   : > { %3997 = vst [vmem:[#allocation37_spill] sm:$0xff] %v2829_v41  ;;  %3998 = vst [vmem:[#allocation38_spill] sm:$0xff] %v2832_v60  ;;  %v950_v41 = vmul.f32 %v2844_v5, %v944_v22  ;;  %v951_v60 = vmul.f32 %v2847_v34, %v944_v22  ;;  %v953_v29 = vadd.f32 %v945_v15, %v933_v51  ;;  %v2865_v51 = vld [vmem:[#allocation7 + $0x98] sm:$0xff] }
  0xff   : > { %3999 = vst [vmem:[#allocation39_spill] sm:$0xff] %v2835_v17  ;;  %4000 = vst [vmem:[#allocation40_spill] sm:$0xff] %v2838_v8  ;;  %v952_v17 = vmul.f32 %v2850_v19, %v944_v22  ;;  %v954_v63 = vadd.f32 %v946_v55, %v934_v2  ;;  %v955_v23 = vadd.f32 %v947_v27, %v935_v24  ;;  %v2873_v2 = vld [vmem:[#allocation7 + $0xa8] sm:$0xff]  ;;  %v2877_v24 = vld [vmem:[#allocation7 + $0xb0] sm:$0xff] }
 0x100   : > { %4001 = vst [vmem:[#allocation41_spill] sm:$0xff] %v2841_v45  ;;  %4002 = vst [vmem:[#allocation42_spill] sm:$0xff] %v2844_v5  ;;  %v956_v8 = vadd.f32 %v948_v50, %v936_v28  ;;  %v958_v21 = vadd.f32 %v950_v41, %v938_v53  ;;  %v959_v0 = vadd.f32 %v951_v60, %v939_v20  ;;  %v2881_v28 = vld [vmem:[#allocation7 + $0xb8] sm:$0xff] }
 0x101   : > { %4003 = vst [vmem:[#allocation17_spill] sm:$0xff] %v2847_v34  ;;  %v960_v45 = vadd.f32 %v952_v17, %v940_v1  ;;  %v965_v5 = vmul.f32 %v2853_v26, %v2775_v38  ;;  %4004 = vst [vmem:[#allocation73_spill] sm:$0xff] %v2857_v43  ;;  %v966_v34 = vmul.f32 %v2857_v43, %v2775_v38  ;;  %v2869_v1 = vld [vmem:[#allocation7 + $0xa0] sm:$0xff] }
 0x102   : > { %4005 = vst [vmem:[#allocation18_spill] sm:$0xff] %v2861_v4  ;;  %v967_v22 = vmul.f32 %v2861_v4, %v2775_v38  ;;  %4006 = vst [vmem:[#allocation71_spill] sm:$0xff] %v2865_v51  ;;  %v968_v17 = vmul.f32 %v2865_v51, %v2775_v38  ;;  %v969_v60 = vmul.f32 %v2869_v1, %v2775_v38  ;;  %v2885_v4 = vld [vmem:[#allocation7 + $0xc0] sm:$0xff] }
 0x103   : > { %4007 = vst [vmem:[#allocation19_spill] sm:$0xff] %v2869_v1  ;;  %4008 = vst [vmem:[#allocation74_spill] sm:$0xff] %v2873_v2  ;;  %v970_v41 = vmul.f32 %v2873_v2, %v2775_v38  ;;  %v971_v15 = vmul.f32 %v2877_v24, %v2775_v38  ;;  %v972_v55 = vmul.f32 %v2881_v28, %v2775_v38 }
 0x104   : > { %4009 = vst [vmem:[#allocation24_spill] sm:$0xff] %v2877_v24  ;;  %v973_v46 = vadd.f32 %v965_v5, %v953_v29  ;;  %v974_v27 = vadd.f32 %v966_v34, %v954_v63  ;;  %v975_v53 = vadd.f32 %v967_v22, %v955_v23  ;;  %v976_v50 = vadd.f32 %v968_v17, %v956_v8 }
 0x105   : > { %v977_v20 = vadd.f32 %v969_v60, %v957_v33  ;;  %v978_v52 = vadd.f32 %v970_v41, %v958_v21  ;;  %v979_v1 = vadd.f32 %v971_v15, %v959_v0  ;;  %v980_v51 = vadd.f32 %v972_v55, %v960_v45  ;;  %v4012_v55 = vld [vmem:[#allocation76_spill] sm:$0xff] }
 0x106   : > { %v985_v2 = vmul.f32 %v2885_v4, %v2779_v40  ;;  %v986_v24 = vmul.f32 %v2779_v40, %v2295_v9  ;;  %v987_v43 = vmul.f32 %v2779_v40, %v2300_v59  ;;  %v988_v38 = vmul.f32 %v2779_v40, %v2302_v48 }
 0x107   : > { %v989_v29 = vmul.f32 %v2779_v40, %v2304_v47  ;;  %v990_v8 = vmul.f32 %v2779_v40, %v2306_v37  ;;  %v991_v21 = vmul.f32 %v2779_v40, %v2308_v54  ;;  %v992_v33 = vmul.f32 %v2779_v40, %v2310_v3 }
 0x108   : > { %v993_v23 = vadd.f32 %v985_v2, %v973_v46  ;;  %v994_v9 = vadd.f32 %v986_v24, %v974_v27  ;;  %v995_v63 = vadd.f32 %v987_v43, %v975_v53  ;;  %v996_v45 = vadd.f32 %v988_v38, %v976_v50  ;;  %v4010_v24 = vld [vmem:[#allocation51_spill] sm:$0xff] }
 0x109   : > { %v997_v59 = vadd.f32 %v989_v29, %v977_v20  ;;  %v998_v0 = vadd.f32 %v990_v8, %v978_v52  ;;  %v999_v34 = vadd.f32 %v991_v21, %v979_v1  ;;  %v1000_v48 = vadd.f32 %v992_v33, %v980_v51  ;;  %v4014_v27 = vld [vmem:[#allocation31_spill] sm:$0xff]  ;;  %v4017_v52 = vld [vmem:[#allocation45_spill] sm:$0xff]  ;;  %v4019_v8 = vld [vmem:[#allocation60_spill] sm:$0xff] }
 0x10a   : > { %v1005_v47 = vmul.f32 %v2783_v42, %v2335_v12  ;;  %v1006_v37 = vmul.f32 %v2783_v42, %v2337_v13  ;;  %v1007_v54 = vmul.f32 %v2783_v42, %v3881_v11  ;;  %v1008_v3 = vmul.f32 %v2783_v42, %v3882_v14  ;;  %v4020_v33 = vld [vmem:[#allocation61_spill] sm:$0xff] }
 0x10b   : > { %v1009_v40 = vmul.f32 %v2783_v42, %v3883_v25  ;;  %v1010_v43 = vmul.f32 %v2783_v42, %v3884_v35  ;;  %v1011_v5 = vmul.f32 %v2783_v42, %v3885_v18  ;;  %v1012_v12 = vmul.f32 %v2783_v42, %v3886_v32 }
 0x10c   : > { %v1013_v22 = vadd.f32 %v1005_v47, %v993_v23  ;;  %v1014_v13 = vadd.f32 %v1006_v37, %v994_v9  ;;  %v1015_v51 = vadd.f32 %v1007_v54, %v995_v63  ;;  %v1016_v17 = vadd.f32 %v1008_v3, %v996_v45  ;;  %v4021_v9 = vld [vmem:[#allocation64_spill] sm:$0xff]  ;;  %v4022_v45 = vld [vmem:[#allocation65_spill] sm:$0xff] }
 0x10d   : > { %v1017_v11 = vadd.f32 %v1009_v40, %v997_v59  ;;  %v1018_v1 = vadd.f32 %v1010_v43, %v998_v0  ;;  %v1019_v60 = vadd.f32 %v1011_v5, %v999_v34  ;;  %v1020_v14 = vadd.f32 %v1012_v12, %v1000_v48  ;;  %v4023_v0 = vld [vmem:[#allocation66_spill] sm:$0xff]  ;;  %v4024_v48 = vld [vmem:[#allocation67_spill] sm:$0xff]  ;;  %v4025_v37 = vld [vmem:[#allocation68_spill] sm:$0xff] }
 0x10e   : > { %v1025_v25 = vmul.f32 %v2787_v57, %v3956_v49  ;;  %v1026_v35 = vmul.f32 %v2787_v57, %v3957_v56  ;;  %v1027_v18 = vmul.f32 %v2787_v57, %v3958_v58  ;;  %v1028_v32 = vmul.f32 %v2787_v57, %v3959_v6  ;;  %v4026_v3 = vld [vmem:[#allocation69_spill] sm:$0xff] }
 0x10f   : > { %v1029_v42 = vmul.f32 %v2787_v57, %v3960_v31  ;;  %v1030_v2 = vmul.f32 %v2787_v57, %v3961_v16  ;;  %v1031_v41 = vmul.f32 %v2787_v57, %v3962_v7  ;;  %v1032_v49 = vmul.f32 %v2787_v57, %v3963_v62  ;;  %v4011_v31 = vld [vmem:[#allocation46_spill] sm:$0xff]  ;;  %v4013_v16 = vld [vmem:[#allocation47_spill] sm:$0xff]  ;;  %v4015_v7 = vld [vmem:[#allocation48_spill] sm:$0xff] }
 0x110   : > { %v922_v56 = vmax.f32 %v2709_v10, %v2789_v39  ;;  %v923_v58 = vmax.f32 %v2715_v30, %v2791_v61  ;;  %v924_v6 = vmax.f32 %v2721_v44, %v2793_v36  ;;  %v925_v15 = vmax.f32 %v4011_v31, %v4010_v24  ;;  %v4016_v39 = vld [vmem:[#allocation63_spill] sm:$0xff]  ;;  %v4018_v36 = vld [vmem:[#allocation13_spill] sm:$0xff] }
 0x111   : > { %v926_v46 = vmax.f32 %v4013_v16, %v4012_v55  ;;  %v1033_v50 = vadd.f32 %v1025_v25, %v1013_v22  ;;  %v1034_v62 = vadd.f32 %v1026_v35, %v1014_v13  ;;  %v1035_v57 = vadd.f32 %v1027_v18, %v1015_v51  ;;  %v4027_v13 = vld [vmem:[#allocation20_spill] sm:$0xff]  ;;  %v4028_v51 = vld [vmem:[#allocation49_spill] sm:$0xff]  ;;  %v4031_v18 = vld [vmem:[#allocation50_spill] sm:$0xff] }
 0x112   : > { %v1036_v20 = vadd.f32 %v1028_v32, %v1016_v17  ;;  %v1037_v10 = vadd.f32 %v1029_v42, %v1017_v11  ;;  %v1044_v30 = vrot.slane %v4017_v52, %v4016_v39  ;;  %v1038_v61 = vadd.f32 %v1030_v2, %v1018_v1  ;;  %v4030_v35 = vld [vmem:[#allocation29_spill] sm:$0xff]  ;;  %v4037_v55 = vld [vmem:[#allocation27_spill] sm:$0xff] }
 0x113   : > { %v1039_v38 = vadd.f32 %v1031_v41, %v1019_v60  ;;  %v1040_v44 = vadd.f32 %v1032_v49, %v1020_v14  ;;  %v1071_v29 = vsub.s32 5, %v4018_v36  ;;  %v2961_v60 = vsub.s32 6, %v4018_v36 }
 0x114   : > { %v1045_v21 = vmul.f32 %v1044_v30, %v4019_v8  ;;  %v1046_v23 = vmul.f32 %v1044_v30, %v4020_v33  ;;  %v1047_v63 = vmul.f32 %v1044_v30, %v4021_v9  ;;  %v1048_v59 = vmul.f32 %v1044_v30, %v4022_v45 }
 0x115   : > { %v1049_v34 = vmul.f32 %v1044_v30, %v4023_v0  ;;  %v1050_v47 = vmul.f32 %v1044_v30, %v4024_v48  ;;  %v1051_v54 = vmul.f32 %v1044_v30, %v4025_v37  ;;  %v1052_v40 = vmul.f32 %v1044_v30, %v4026_v3  ;;  %4029 = vst [vmem:[#allocation14_spill] sm:$0xff] %v2961_v60  ;;  %v4041_v30 = vld [vmem:[#allocation43_spill] sm:$0xff]  ;;  %v4051_v37 = vld [vmem:[#allocation37_spill] sm:$0xff]  ;;  %v4052_v3 = vld [vmem:[#allocation38_spill] sm:$0xff] }
 0x116   : > { %v1053_v43 = vadd.f32 %v1045_v21, %v1033_v50  ;;  %v1054_v5 = vadd.f32 %v1046_v23, %v1034_v62  ;;  %v1055_v12 = vadd.f32 %v1047_v63, %v1035_v57  ;;  %v1056_v22 = vadd.f32 %v1048_v59, %v1036_v20  ;;  %v4038_v50 = vld [vmem:[#allocation28_spill] sm:$0xff]  ;;  %v4039_v57 = vld [vmem:[#allocation15_spill] sm:$0xff]  ;;  %v4047_v63 = vld [vmem:[#allocation33_spill] sm:$0xff] }
 0x117   : > { %v1057_v11 = vadd.f32 %v1049_v34, %v1037_v10  ;;  %v1058_v1 = vadd.f32 %v1050_v47, %v1038_v61  ;;  %v2963_v14 = vadd.f32 %v1051_v54, %v1039_v38  ;;  %v2965_v25 = vadd.f32 %v1052_v40, %v1040_v44  ;;  %v4040_v10 = vld [vmem:[#allocation16_spill] sm:$0xff]  ;;  %v4044_v44 = vld [vmem:[#allocation22_spill] sm:$0xff]  ;;  %v4045_v21 = vld [vmem:[#allocation23_spill] sm:$0xff] }
 0x118   : > { %v4032_v32 = vmax.f32 %v4030_v35, %v4031_v18  ;;  %v2972_v2 = vmax.f32 %v922_v56, %v1054_v5  ;;  %v2974_v41 = vmax.f32 %v923_v58, %v1055_v12  ;;  %v2976_v49 = vmax.f32 %v924_v6, %v1056_v22  ;;  %v4042_v56 = vld [vmem:[#allocation44_spill] sm:$0xff]  ;;  %v4048_v59 = vld [vmem:[#allocation34_spill] sm:$0xff]  ;;  %v4049_v34 = vld [vmem:[#allocation35_spill] sm:$0xff] }
 0x119   : > { %v2978_v24 = vmax.f32 %v925_v15, %v1057_v11  ;;  %v2980_v31 = vmax.f32 %v926_v46, %v1058_v1  ;;  %v1072_v16 = vrot.slane %v4037_v55, %v1071_v29  ;;  %v1084_v62 = vrot.slane %v4038_v50, %v1071_v29  ;;  %v4043_v46 = vld [vmem:[#allocation21_spill] sm:$0xff]  ;;  %v4046_v23 = vld [vmem:[#allocation32_spill] sm:$0xff]  ;;  %v4056_v35 = vld [vmem:[#allocation42_spill] sm:$0xff] }
 0x11a   : > { %v2970_v42 = vmax.f32 %v4032_v32, %v1053_v43  ;;  %4033 = vst [vmem:[#allocation25_spill] sm:$0xff] %v2974_v41  ;;  %4034 = vst [vmem:[#allocation72_spill] sm:$0xff] %v2976_v49  ;;  %v1104_v20 = vrot.slane %v4039_v57, %v1071_v29  ;;  %v1124_v39 = vrot.slane %v4040_v10, %v1071_v29  ;;  %v4053_v43 = vld [vmem:[#allocation39_spill] sm:$0xff]  ;;  %v4054_v12 = vld [vmem:[#allocation40_spill] sm:$0xff] }
 0x11b   : > { %4035 = vst [vmem:[#allocation30_spill] sm:$0xff] %v2978_v24  ;;  %4036 = vst [vmem:[#allocation75_spill] sm:$0xff] %v2980_v31  ;;  %v2987_v61 = vrot.slane %v4041_v30, %v1071_v29  ;;  %v2990_v58 = vrot.slane %v4042_v56, %v1071_v29  ;;  %v2993_v6 = vrot.slane %v4017_v52, %v1071_v29  ;;  %v4050_v29 = vld [vmem:[#allocation36_spill] sm:$0xff]  ;;  %v4055_v11 = vld [vmem:[#allocation41_spill] sm:$0xff] }
 0x11c   : > { %v2997_v15 = vrot.slane %v4037_v55, %v2961_v60  ;;  %v1073_v38 = vmul.f32 %v4043_v46, %v1072_v16  ;;  %v1074_v8 = vmul.f32 %v4044_v44, %v1072_v16  ;;  %v1075_v33 = vmul.f32 %v4045_v21, %v1072_v16  ;;  %v4057_v32 = vld [vmem:[#allocation17_spill] sm:$0xff]  ;;  %v4059_v50 = vld [vmem:[#allocation18_spill] sm:$0xff]  ;;  %v4060_v60 = vld [vmem:[#allocation71_spill] sm:$0xff] }
 0x11d   : > { %v1076_v9 = vmul.f32 %v4046_v23, %v1072_v16  ;;  %v1077_v45 = vmul.f32 %v4047_v63, %v1072_v16  ;;  %v1078_v0 = vmul.f32 %v4048_v59, %v1072_v16  ;;  %v1079_v48 = vmul.f32 %v4049_v34, %v1072_v16  ;;  %v4058_v57 = vld [vmem:[#allocation73_spill] sm:$0xff]  ;;  %v4062_v34 = vld [vmem:[#allocation74_spill] sm:$0xff] }
 0x11e   : > { %v1080_v47 = vmul.f32 %v4050_v29, %v1072_v16  ;;  %v1085_v54 = vmul.f32 %v4051_v37, %v1084_v62  ;;  %v1086_v40 = vmul.f32 %v4052_v3, %v1084_v62  ;;  %v1087_v5 = vmul.f32 %v4053_v43, %v1084_v62  ;;  %v4061_v29 = vld [vmem:[#allocation19_spill] sm:$0xff]  ;;  %v4109_v24 = vld [vmem:[#allocation17_spill] sm:$0xff] }
 0x11f   : > { %v1088_v22 = vmul.f32 %v4054_v12, %v1084_v62  ;;  %v1089_v1 = vmul.f32 %v4055_v11, %v1084_v62  ;;  %v1090_v18 = vmul.f32 %v4056_v35, %v1084_v62  ;;  %v1091_v17 = vmul.f32 %v4057_v32, %v1084_v62 }
 0x120   : > { %v1092_v53 = vmul.f32 %v2850_v19, %v1084_v62  ;;  %v1093_v55 = vadd.f32 %v1085_v54, %v1073_v38  ;;  %v1094_v52 = vadd.f32 %v1086_v40, %v1074_v8  ;;  %v1095_v56 = vadd.f32 %v1087_v5, %v1075_v33  ;;  %v4063_v38 = vld [vmem:[#allocation24_spill] sm:$0xff]  ;;  %v3024_v5 = vld [vmem:[#allocation7 + $0xc8] sm:$0xff] }
 0x121   : > { %v1096_v16 = vadd.f32 %v1088_v22, %v1076_v9  ;;  %v1097_v30 = vadd.f32 %v1089_v1, %v1077_v45  ;;  %v1098_v37 = vadd.f32 %v1090_v18, %v1078_v0  ;;  %v1099_v10 = vadd.f32 %v1091_v17, %v1079_v48  ;;  %4064 = vst [vmem:[#allocation62_spill] sm:$0xff] %v3024_v5  ;;  %v3027_v1 = vld [vmem:[#allocation7 + $0xd0] sm:$0xff] }
 0x122   : > { %v1100_v3 = vadd.f32 %v1092_v53, %v1080_v47  ;;  %v1105_v43 = vmul.f32 %v2853_v26, %v1104_v20  ;;  %v1106_v12 = vmul.f32 %v4058_v57, %v1104_v20  ;;  %v1107_v11 = vmul.f32 %v4059_v50, %v1104_v20  ;;  %4065 = vst [vmem:[#allocation52_spill] sm:$0xff] %v3027_v1 }
 0x123   : > { %v1108_v35 = vmul.f32 %v4060_v60, %v1104_v20  ;;  %v1109_v32 = vmul.f32 %v4061_v29, %v1104_v20  ;;  %v1110_v62 = vmul.f32 %v4062_v34, %v1104_v20  ;;  %v1111_v8 = vmul.f32 %v4063_v38, %v1104_v20  ;;  %v3030_v38 = vld [vmem:[#allocation7 + $0xd8] sm:$0xff] }
 0x124   : > { %v1112_v33 = vmul.f32 %v2881_v28, %v1104_v20  ;;  %v1113_v9 = vadd.f32 %v1105_v43, %v1093_v55  ;;  %v1114_v45 = vadd.f32 %v1106_v12, %v1094_v52  ;;  %v1115_v17 = vadd.f32 %v1107_v11, %v1095_v56  ;;  %4066 = vst [vmem:[#allocation53_spill] sm:$0xff] %v3030_v38  ;;  %v3033_v55 = vld [vmem:[#allocation7 + $0xe0] sm:$0xff]  ;;  %v3039_v56 = vld [vmem:[#allocation7 + $0xf0] sm:$0xff] }
 0x125   : > { %v1116_v53 = vadd.f32 %v1108_v35, %v1096_v16  ;;  %v1117_v0 = vadd.f32 %v1109_v32, %v1097_v30  ;;  %v1118_v48 = vadd.f32 %v1110_v62, %v1098_v37  ;;  %v1119_v47 = vadd.f32 %v1111_v8, %v1099_v10  ;;  %4067 = vst [vmem:[#allocation54_spill] sm:$0xff] %v3033_v55  ;;  %v3036_v10 = vld [vmem:[#allocation7 + $0xe8] sm:$0xff] }
 0x126   : > { %v1120_v54 = vadd.f32 %v1112_v33, %v1100_v3  ;;  %v1125_v40 = vmul.f32 %v2885_v4, %v1124_v39  ;;  %v1126_v22 = vmul.f32 %v3024_v5, %v1124_v39  ;;  %v1127_v18 = vmul.f32 %v3027_v1, %v1124_v39  ;;  %4068 = vst [vmem:[#allocation55_spill] sm:$0xff] %v3036_v10  ;;  %v3042_v3 = vld [vmem:[#allocation7 + $0xf8] sm:$0xff]  ;;  %v3053_v1 = vld [vmem:[#allocation7 + $0x110] sm:$0xff] }
 0x127   : > { %v1128_v52 = vmul.f32 %v3030_v38, %v1124_v39  ;;  %v1129_v20 = vmul.f32 %v3033_v55, %v1124_v39  ;;  %v1130_v30 = vmul.f32 %v3036_v10, %v1124_v39  ;;  %4069 = vst [vmem:[#allocation56_spill] sm:$0xff] %v3039_v56  ;;  %v1131_v37 = vmul.f32 %v3039_v56, %v1124_v39  ;;  %v3045_v55 = vld [vmem:[#allocation7 + $0x100] sm:$0xff]  ;;  %v3049_v38 = vld [vmem:[#allocation7 + $0x108] sm:$0xff] }
 0x128   : > { %v1132_v43 = vmul.f32 %v3042_v3, %v1124_v39  ;;  %v1133_v12 = vadd.f32 %v1125_v40, %v1113_v9  ;;  %v1134_v11 = vadd.f32 %v1126_v22, %v1114_v45  ;;  %v1135_v35 = vadd.f32 %v1127_v18, %v1115_v17  ;;  %4070 = vst [vmem:[#allocation57_spill] sm:$0xff] %v3045_v55  ;;  %v3057_v9 = vld [vmem:[#allocation7 + $0x118] sm:$0xff]  ;;  %v3061_v17 = vld [vmem:[#allocation7 + $0x120] sm:$0xff] }
 0x129   : > { %v1136_v32 = vadd.f32 %v1128_v52, %v1116_v53  ;;  %v1137_v16 = vadd.f32 %v1129_v20, %v1117_v0  ;;  %v1138_v62 = vadd.f32 %v1130_v30, %v1118_v48  ;;  %v1139_v8 = vadd.f32 %v1131_v37, %v1119_v47  ;;  %4071 = vst [vmem:[#allocation58_spill] sm:$0xff] %v3049_v38  ;;  %v3065_v0 = vld [vmem:[#allocation7 + $0x128] sm:$0xff]  ;;  %v3069_v47 = vld [vmem:[#allocation7 + $0x130] sm:$0xff]  ;;  %v3073_v40 = vld [vmem:[#allocation7 + $0x138] sm:$0xff] }
 0x12a   : > { %v1140_v33 = vadd.f32 %v1132_v43, %v1120_v54  ;;  %v1145_v10 = vmul.f32 %v3045_v55, %v2987_v61  ;;  %v1146_v56 = vmul.f32 %v3049_v38, %v2987_v61  ;;  %4072 = vst [vmem:[#allocation59_spill] sm:$0xff] %v3053_v1  ;;  %v1147_v39 = vmul.f32 %v3053_v1, %v2987_v61  ;;  %v3077_v1 = vld [vmem:[#allocation7 + $0x140] sm:$0xff]  ;;  %v3081_v38 = vld [vmem:[#allocation7 + $0x148] sm:$0xff]  ;;  %v3085_v55 = vld [vmem:[#allocation7 + $0x150] sm:$0xff] }
 0x12b   : > { %4073 = vst [vmem:[#allocation26_spill] sm:$0xff] %v3057_v9  ;;  %v1148_v45 = vmul.f32 %v3057_v9, %v2987_v61  ;;  %4074 = vst [vmem:[#allocation70_spill] sm:$0xff] %v3061_v17  ;;  %v1149_v53 = vmul.f32 %v3061_v17, %v2987_v61  ;;  %v1150_v48 = vmul.f32 %v3065_v0, %v2987_v61 }
 0x12c   : > { %4075 = vst [vmem:[#allocation77_spill] sm:$0xff] %v3065_v0  ;;  %4076 = vst [vmem:[#allocation51_spill] sm:$0xff] %v3069_v47  ;;  %v1151_v54 = vmul.f32 %v3069_v47, %v2987_v61  ;;  %v1152_v22 = vmul.f32 %v3073_v40, %v2987_v61  ;;  %v1153_v18 = vadd.f32 %v1145_v10, %v1133_v12  ;;  %v3089_v10 = vld [vmem:[#allocation7 + $0x158] sm:$0xff]  ;;  %v3093_v12 = vld [vmem:[#allocation7 + $0x160] sm:$0xff] }
 0x12d   : > { %v1154_v52 = vadd.f32 %v1146_v56, %v1134_v11  ;;  %v1155_v20 = vadd.f32 %v1147_v39, %v1135_v35  ;;  %v1156_v30 = vadd.f32 %v1148_v45, %v1136_v32  ;;  %v1157_v37 = vadd.f32 %v1149_v53, %v1137_v16  ;;  %4077 = vst [vmem:[#allocation46_spill] sm:$0xff] %v3077_v1  ;;  %v3097_v35 = vld [vmem:[#allocation7 + $0x168] sm:$0xff]  ;;  %v3101_v16 = vld [vmem:[#allocation7 + $0x170] sm:$0xff] }
 0x12e   : > { %v1158_v43 = vadd.f32 %v1150_v48, %v1138_v62  ;;  %v1159_v17 = vadd.f32 %v1151_v54, %v1139_v8  ;;  %v1160_v9 = vadd.f32 %v1152_v22, %v1140_v33  ;;  %v1165_v0 = vmul.f32 %v3077_v1, %v2990_v58  ;;  %4078 = vst [vmem:[#allocation76_spill] sm:$0xff] %v3081_v38  ;;  %v3105_v8 = vld [vmem:[#allocation7 + $0x178] sm:$0xff]  ;;  %v3117_v1 = vld [vmem:[#allocation7 + $0x190] sm:$0xff] }
 0x12f   : > { %v1166_v47 = vmul.f32 %v3081_v38, %v2990_v58  ;;  %4079 = vst [vmem:[#allocation47_spill] sm:$0xff] %v3085_v55  ;;  %v1167_v61 = vmul.f32 %v3085_v55, %v2990_v58  ;;  %4080 = vst [vmem:[#allocation31_spill] sm:$0xff] %v3089_v10  ;;  %v1168_v56 = vmul.f32 %v3089_v10, %v2990_v58  ;;  %v3109_v55 = vld [vmem:[#allocation7 + $0x180] sm:$0xff]  ;;  %v3113_v38 = vld [vmem:[#allocation7 + $0x188] sm:$0xff] }
 0x130   : > { %4081 = vst [vmem:[#allocation48_spill] sm:$0xff] %v3093_v12  ;;  %v1169_v11 = vmul.f32 %v3093_v12, %v2990_v58  ;;  %4082 = vst [vmem:[#allocation63_spill] sm:$0xff] %v3097_v35  ;;  %v1170_v32 = vmul.f32 %v3097_v35, %v2990_v58  ;;  %v1171_v62 = vmul.f32 %v3101_v16, %v2990_v58 }
 0x131   : > { %4083 = vst [vmem:[#allocation13_spill] sm:$0xff] %v3101_v16  ;;  %v1172_v33 = vmul.f32 %v3105_v8, %v2990_v58  ;;  %v1173_v39 = vadd.f32 %v1165_v0, %v1153_v18  ;;  %v1174_v45 = vadd.f32 %v1166_v47, %v1154_v52  ;;  %v1175_v53 = vadd.f32 %v1167_v61, %v1155_v20  ;;  %v3121_v0 = vld [vmem:[#allocation7 + $0x198] sm:$0xff]  ;;  %v3129_v18 = vld [vmem:[#allocation7 + $0x1a8] sm:$0xff]  ;;  %v3133_v20 = vld [vmem:[#allocation7 + $0x1b0] sm:$0xff] }
 0x132   : > { %v1176_v48 = vadd.f32 %v1168_v56, %v1156_v30  ;;  %v1177_v54 = vadd.f32 %v1169_v11, %v1157_v37  ;;  %v1178_v22 = vadd.f32 %v1170_v32, %v1158_v43  ;;  %v1179_v12 = vadd.f32 %v1171_v62, %v1159_v17  ;;  %v3125_v17 = vld [vmem:[#allocation7 + $0x1a0] sm:$0xff]  ;;  %4084 = vst [vmem:[#allocation60_spill] sm:$0xff] %v3129_v18  ;;  %v3137_v37 = vld [vmem:[#allocation7 + $0x1b8] sm:$0xff] }
 0x133   : > { %v1180_v10 = vadd.f32 %v1172_v33, %v1160_v9  ;;  %v1185_v35 = vmul.f32 %v3109_v55, %v2993_v6  ;;  %v1186_v16 = vmul.f32 %v3113_v38, %v2993_v6  ;;  %v1187_v58 = vmul.f32 %v3117_v1, %v2993_v6  ;;  %4085 = vst [vmem:[#allocation61_spill] sm:$0xff] %v3133_v20 }
 0x134   : > { %v1188_v9 = vmul.f32 %v3121_v0, %v2993_v6  ;;  %v1189_v47 = vmul.f32 %v3125_v17, %v2993_v6  ;;  %v1190_v52 = vmul.f32 %v3129_v18, %v2993_v6  ;;  %v1191_v30 = vmul.f32 %v3133_v20, %v2993_v6 }
 0x135   : > { %v1192_v43 = vmul.f32 %v3137_v37, %v2993_v6  ;;  %v3141_v61 = vadd.f32 %v1185_v35, %v1173_v39  ;;  %v3143_v56 = vadd.f32 %v1186_v16, %v1174_v45  ;;  %v3145_v11 = vadd.f32 %v1187_v58, %v1175_v53 }
 0x136   : > { %v3147_v32 = vadd.f32 %v1188_v9, %v1176_v48  ;;  %v4088_v62 = vmax.f32 %v4015_v7, %v4014_v27  ;;  %v3155_v20 = vadd.f32 %v1189_v47, %v1177_v54  ;;  %v3157_v18 = vadd.f32 %v1190_v52, %v1178_v22  ;;  %v4092_v22 = vld [vmem:[#allocation35_spill] sm:$0xff]  ;;  %v4093_v9 = vld [vmem:[#allocation36_spill] sm:$0xff]  ;;  %v4094_v52 = vld [vmem:[#allocation14_spill] sm:$0xff] }
 0x137   : > { %4086 = vst [vmem:[#allocation64_spill] sm:$0xff] %v3145_v11  ;;  %v3160_v6 = vsub.s32 7, %v4018_v36  ;;  %v4091_v35 = vmax.f32 %v4028_v51, %v4027_v13  ;;  %v3168_v39 = vadd.f32 %v1191_v30, %v1179_v12  ;;  %v3170_v45 = vadd.f32 %v1192_v43, %v1180_v10  ;;  %v4095_v30 = vld [vmem:[#allocation28_spill] sm:$0xff] }
 0x138   : > { %4087 = vst [vmem:[#allocation65_spill] sm:$0xff] %v3147_v32  ;;  %v3153_v33 = vmax.f32 %v4088_v62, %v2963_v14  ;;  %4089 = vst [vmem:[#allocation66_spill] sm:$0xff] %v3155_v20  ;;  %v1214_v10 = vmul.f32 %v4044_v44, %v2997_v15  ;;  %v1215_v12 = vmul.f32 %v4045_v21, %v2997_v15  ;;  %v4096_v62 = vld [vmem:[#allocation15_spill] sm:$0xff]  ;;  %v4097_v51 = vld [vmem:[#allocation16_spill] sm:$0xff] }
 0x139   : > { %4090 = vst [vmem:[#allocation67_spill] sm:$0xff] %v3157_v18  ;;  %v3166_v16 = vmax.f32 %v4091_v35, %v2965_v25  ;;  %v1213_v25 = vmul.f32 %v4043_v46, %v2997_v15  ;;  %v1216_v53 = vmul.f32 %v4046_v23, %v2997_v15  ;;  %v1217_v48 = vmul.f32 %v4047_v63, %v2997_v15  ;;  %v4098_v14 = vld [vmem:[#allocation43_spill] sm:$0xff]  ;;  %v4099_v7 = vld [vmem:[#allocation44_spill] sm:$0xff]  ;;  %v4100_v18 = vld [vmem:[#allocation45_spill] sm:$0xff] }
 0x13a   : > { %v1218_v54 = vmul.f32 %v4048_v59, %v2997_v15  ;;  %v1219_v58 = vmul.f32 %v4092_v22, %v2997_v15  ;;  %v1220_v47 = vmul.f32 %v4093_v9, %v2997_v15  ;;  %v1224_v43 = vrot.slane %v4095_v30, %v4094_v52  ;;  %v4101_v15 = vld [vmem:[#allocation27_spill] sm:$0xff]  ;;  %v4103_v22 = vld [vmem:[#allocation37_spill] sm:$0xff]  ;;  %v4104_v59 = vld [vmem:[#allocation38_spill] sm:$0xff] }
 0x13b   : > { %v1244_v35 = vrot.slane %v4096_v62, %v4094_v52  ;;  %v1264_v13 = vrot.slane %v4097_v51, %v4094_v52  ;;  %v1284_v36 = vrot.slane %v4098_v14, %v4094_v52  ;;  %v3210_v27 = vrot.slane %v4099_v7, %v4094_v52  ;;  %v4105_v51 = vld [vmem:[#allocation39_spill] sm:$0xff]  ;;  %v4106_v21 = vld [vmem:[#allocation40_spill] sm:$0xff]  ;;  %v4107_v44 = vld [vmem:[#allocation41_spill] sm:$0xff] }
 0x13c   : > { %v3214_v31 = vrot.slane %v4100_v18, %v4094_v52  ;;  %v3218_v9 = vrot.slane %v4101_v15, %v3160_v6  ;;  %v1225_v62 = vmul.f32 %v4103_v22, %v1224_v43  ;;  %v1226_v63 = vmul.f32 %v4104_v59, %v1224_v43  ;;  %v4108_v7 = vld [vmem:[#allocation42_spill] sm:$0xff] }
 0x13d   : > { %v1227_v23 = vmul.f32 %v4105_v51, %v1224_v43  ;;  %v1228_v14 = vmul.f32 %v4106_v21, %v1224_v43  ;;  %v1229_v46 = vmul.f32 %v4107_v44, %v1224_v43  ;;  %v1230_v20 = vmul.f32 %v4108_v7, %v1224_v43 }
 0x13e   : > { %4102 = vst [vmem:[#allocation68_spill] sm:$0xff] %v3218_v9  ;;  %v1231_v32 = vmul.f32 %v4109_v24, %v1224_v43  ;;  %v1232_v52 = vmul.f32 %v2850_v19, %v1224_v43  ;;  %v1233_v18 = vadd.f32 %v1225_v62, %v1213_v25  ;;  %v1234_v49 = vadd.f32 %v1226_v63, %v1214_v10  ;;  %v4110_v25 = vld [vmem:[#allocation24_spill] sm:$0xff] }
 0x13f   : > { %v1235_v15 = vadd.f32 %v1227_v23, %v1215_v12  ;;  %v1236_v9 = vadd.f32 %v1228_v14, %v1216_v53  ;;  %v1237_v11 = vadd.f32 %v1229_v46, %v1217_v48  ;;  %v1238_v22 = vadd.f32 %v1230_v20, %v1218_v54 }
 0x140   : > { %v1239_v41 = vadd.f32 %v1231_v32, %v1219_v58  ;;  %v1240_v59 = vadd.f32 %v1232_v52, %v1220_v47  ;;  %v1245_v51 = vmul.f32 %v2853_v26, %v1244_v35  ;;  %v1246_v21 = vmul.f32 %v4058_v57, %v1244_v35  ;;  %v4111_v47 = vld [vmem:[#allocation52_spill] sm:$0xff]  ;;  %v4112_v52 = vld [vmem:[#allocation53_spill] sm:$0xff] }
 0x141   : > { %v1247_v44 = vmul.f32 %v4059_v50, %v1244_v35  ;;  %v1248_v7 = vmul.f32 %v4060_v60, %v1244_v35  ;;  %v1249_v24 = vmul.f32 %v4061_v29, %v1244_v35  ;;  %v1250_v43 = vmul.f32 %v4062_v34, %v1244_v35  ;;  %v4113_v29 = vld [vmem:[#allocation54_spill] sm:$0xff]  ;;  %v4114_v60 = vld [vmem:[#allocation55_spill] sm:$0xff] }
 0x142   : > { %v1251_v63 = vmul.f32 %v4110_v25, %v1244_v35  ;;  %v1252_v23 = vmul.f32 %v2881_v28, %v1244_v35  ;;  %v1253_v46 = vadd.f32 %v1245_v51, %v1233_v18  ;;  %v1254_v20 = vadd.f32 %v1246_v21, %v1234_v49  ;;  %v4115_v18 = vld [vmem:[#allocation56_spill] sm:$0xff] }
 0x143   : > { %v1255_v32 = vadd.f32 %v1247_v44, %v1235_v15  ;;  %v1256_v14 = vadd.f32 %v1248_v7, %v1236_v9  ;;  %v1257_v10 = vadd.f32 %v1249_v24, %v1237_v11  ;;  %v1258_v12 = vadd.f32 %v1250_v43, %v1238_v22  ;;  %v4116_v9 = vld [vmem:[#allocation57_spill] sm:$0xff]  ;;  %v4117_v43 = vld [vmem:[#allocation58_spill] sm:$0xff] }
 0x144   : > { %v1259_v53 = vadd.f32 %v1251_v63, %v1239_v41  ;;  %v1260_v48 = vadd.f32 %v1252_v23, %v1240_v59  ;;  %v1265_v54 = vmul.f32 %v2885_v4, %v1264_v13  ;;  %v1266_v58 = vmul.f32 %v3024_v5, %v1264_v13  ;;  %v4118_v23 = vld [vmem:[#allocation59_spill] sm:$0xff]  ;;  %v4121_v5 = vld [vmem:[#allocation77_spill] sm:$0xff] }
 0x145   : > { %v1267_v62 = vmul.f32 %v4111_v47, %v1264_v13  ;;  %v1268_v34 = vmul.f32 %v4112_v52, %v1264_v13  ;;  %v1269_v25 = vmul.f32 %v4113_v29, %v1264_v13  ;;  %v1270_v35 = vmul.f32 %v4114_v60, %v1264_v13  ;;  %v4119_v52 = vld [vmem:[#allocation26_spill] sm:$0xff] }
 0x146   : > { %v1271_v49 = vmul.f32 %v4115_v18, %v1264_v13  ;;  %v1272_v44 = vmul.f32 %v3042_v3, %v1264_v13  ;;  %v1273_v24 = vadd.f32 %v1265_v54, %v1253_v46  ;;  %v1274_v21 = vadd.f32 %v1266_v58, %v1254_v20  ;;  %v4120_v47 = vld [vmem:[#allocation70_spill] sm:$0xff]  ;;  %v4122_v46 = vld [vmem:[#allocation51_spill] sm:$0xff] }
 0x147   : > { %v1275_v41 = vadd.f32 %v1267_v62, %v1255_v32  ;;  %v1276_v59 = vadd.f32 %v1268_v34, %v1256_v14  ;;  %v1277_v11 = vadd.f32 %v1269_v25, %v1257_v10  ;;  %v1278_v7 = vadd.f32 %v1270_v35, %v1258_v12  ;;  %v4123_v58 = vld [vmem:[#allocation46_spill] sm:$0xff]  ;;  %v4124_v35 = vld [vmem:[#allocation76_spill] sm:$0xff] }
 0x148   : > { %v1279_v51 = vadd.f32 %v1271_v49, %v1259_v53  ;;  %v1280_v22 = vadd.f32 %v1272_v44, %v1260_v48  ;;  %v1285_v15 = vmul.f32 %v4116_v9, %v1284_v36  ;;  %v1286_v63 = vmul.f32 %v4117_v43, %v1284_v36  ;;  %v4125_v44 = vld [vmem:[#allocation47_spill] sm:$0xff] }
 0x149   : > { %v1287_v29 = vmul.f32 %v4118_v23, %v1284_v36  ;;  %v1288_v60 = vmul.f32 %v4119_v52, %v1284_v36  ;;  %v1289_v18 = vmul.f32 %v4120_v47, %v1284_v36  ;;  %v1290_v13 = vmul.f32 %v4121_v5, %v1284_v36 }
 0x14a   : > { %v1291_v20 = vmul.f32 %v4122_v46, %v1284_v36  ;;  %v1292_v34 = vmul.f32 %v3073_v40, %v1284_v36  ;;  %v1293_v25 = vadd.f32 %v1285_v15, %v1273_v24  ;;  %v1294_v32 = vadd.f32 %v1286_v63, %v1274_v21  ;;  %v4126_v46 = vld [vmem:[#allocation31_spill] sm:$0xff]  ;;  %v4127_v24 = vld [vmem:[#allocation48_spill] sm:$0xff]  ;;  %v4129_v21 = vld [vmem:[#allocation13_spill] sm:$0xff] }
 0x14b   : > { %v1295_v14 = vadd.f32 %v1287_v29, %v1275_v41  ;;  %v1296_v10 = vadd.f32 %v1288_v60, %v1276_v59  ;;  %v1297_v12 = vadd.f32 %v1289_v18, %v1277_v11  ;;  %v1298_v53 = vadd.f32 %v1290_v13, %v1278_v7  ;;  %v4128_v60 = vld [vmem:[#allocation63_spill] sm:$0xff] }
 0x14c   : > { %v1299_v48 = vadd.f32 %v1291_v20, %v1279_v51  ;;  %v1300_v54 = vadd.f32 %v1292_v34, %v1280_v22  ;;  %v1305_v62 = vmul.f32 %v4123_v58, %v3210_v27  ;;  %v1306_v49 = vmul.f32 %v4124_v35, %v3210_v27 }
 0x14d   : > { %v1307_v5 = vmul.f32 %v4125_v44, %v3210_v27  ;;  %v1308_v36 = vmul.f32 %v4126_v46, %v3210_v27  ;;  %v1309_v29 = vmul.f32 %v4127_v24, %v3210_v27  ;;  %v1310_v18 = vmul.f32 %v4128_v60, %v3210_v27 }
 0x14e   : > { %v1311_v41 = vmul.f32 %v4129_v21, %v3210_v27  ;;  %v1312_v59 = vmul.f32 %v3105_v8, %v3210_v27  ;;  %v1313_v11 = vadd.f32 %v1305_v62, %v1293_v25  ;;  %v1314_v7 = vadd.f32 %v1306_v49, %v1294_v32  ;;  %v4130_v25 = vld [vmem:[#allocation60_spill] sm:$0xff] }
 0x14f   : > { %v1315_v51 = vadd.f32 %v1307_v5, %v1295_v14  ;;  %v1316_v22 = vadd.f32 %v1308_v36, %v1296_v10  ;;  %v1317_v15 = vadd.f32 %v1309_v29, %v1297_v12  ;;  %v1318_v63 = vadd.f32 %v1310_v18, %v1298_v53  ;;  %v4131_v14 = vld [vmem:[#allocation61_spill] sm:$0xff] }
 0x150   : > { %v1319_v13 = vadd.f32 %v1311_v41, %v1299_v48  ;;  %v1320_v20 = vadd.f32 %v1312_v59, %v1300_v54  ;;  %v1325_v34 = vmul.f32 %v3109_v55, %v3214_v31  ;;  %v1326_v60 = vmul.f32 %v3113_v38, %v3214_v31 }
 0x151   : > { %v1327_v21 = vmul.f32 %v3117_v1, %v3214_v31  ;;  %v1328_v27 = vmul.f32 %v3121_v0, %v3214_v31  ;;  %v1329_v5 = vmul.f32 %v3125_v17, %v3214_v31  ;;  %v1330_v32 = vmul.f32 %v4130_v25, %v3214_v31 }
 0x152   : > { %v1331_v10 = vmul.f32 %v4131_v14, %v3214_v31  ;;  %v1332_v12 = vmul.f32 %v3137_v37, %v3214_v31  ;;  %v1333_v53 = vadd.f32 %v1325_v34, %v1313_v11  ;;  %v1334_v48 = vadd.f32 %v1326_v60, %v1314_v7  ;;  %v4140_v7 = vld [vmem:[#allocation72_spill] sm:$0xff] }
 0x153   : > { %v1335_v54 = vadd.f32 %v1327_v21, %v1315_v51  ;;  %v1336_v62 = vadd.f32 %v1328_v27, %v1316_v22  ;;  %v1207_v49 = vmax.f32 %v3153_v33, %v3168_v39  ;;  %v1208_v36 = vmax.f32 %v3166_v16, %v3170_v45  ;;  %v4136_v33 = vld [vmem:[#allocation25_spill] sm:$0xff]  ;;  %v4137_v39 = vld [vmem:[#allocation64_spill] sm:$0xff]  ;;  %v4151_v27 = vld [vmem:[#allocation23_spill] sm:$0xff] }
 0x154   : > { %v1337_v29 = vadd.f32 %v1329_v5, %v1317_v15  ;;  %v1364_v18 = vrot.slane %v4095_v30, %v3160_v6  ;;  %v1338_v41 = vadd.f32 %v1330_v32, %v1318_v63  ;;  %v1339_v59 = vadd.f32 %v1331_v10, %v1319_v13  ;;  %v4141_v30 = vld [vmem:[#allocation65_spill] sm:$0xff]  ;;  %v4144_v15 = vld [vmem:[#allocation30_spill] sm:$0xff]  ;;  %v4148_v13 = vld [vmem:[#allocation68_spill] sm:$0xff] }
 0x155   : > { %v1340_v14 = vadd.f32 %v1332_v12, %v1320_v20  ;;  %v4132_v31 = vmax.f32 %v2970_v42, %v3141_v61  ;;  %v4134_v60 = vmax.f32 %v2972_v2, %v3143_v56  ;;  %v4138_v16 = vmax.f32 %v4136_v33, %v4137_v39  ;;  %v4145_v63 = vld [vmem:[#allocation66_spill] sm:$0xff]  ;;  %v4149_v20 = vld [vmem:[#allocation21_spill] sm:$0xff]  ;;  %v4152_v32 = vld [vmem:[#allocation32_spill] sm:$0xff] }
 0x156   : > { %v4142_v51 = vmax.f32 %v4140_v7, %v4141_v30  ;;  %v4146_v42 = vmax.f32 %v4144_v15, %v4145_v63  ;;  %v1353_v2 = vmul.f32 %v4149_v20, %v4148_v13  ;;  %v4150_v56 = vld [vmem:[#allocation22_spill] sm:$0xff]  ;;  %v1355_v5 = vmul.f32 %v4151_v27, %v4148_v13  ;;  %v4153_v12 = vld [vmem:[#allocation33_spill] sm:$0xff]  ;;  %v4159_v30 = vld [vmem:[#allocation39_spill] sm:$0xff] }
 0x157   : > { %v3293_v11 = vmax.f32 %v4132_v31, %v1333_v53  ;;  %v3298_v21 = vmax.f32 %v4134_v60, %v1334_v48  ;;  %v3303_v45 = vmax.f32 %v4138_v16, %v1335_v54  ;;  %v1354_v34 = vmul.f32 %v4150_v56, %v4148_v13  ;;  %v4154_v48 = vld [vmem:[#allocation34_spill] sm:$0xff]  ;;  %v4156_v31 = vld [vmem:[#allocation36_spill] sm:$0xff]  ;;  %v4157_v33 = vld [vmem:[#allocation37_spill] sm:$0xff] }
 0x158   : > { %v3308_v22 = vmax.f32 %v4142_v51, %v1336_v62  ;;  %v3313_v61 = vmax.f32 %v4146_v42, %v1337_v29  ;;  %v1356_v10 = vmul.f32 %v4152_v32, %v4148_v13  ;;  %v1357_v53 = vmul.f32 %v4153_v12, %v4148_v13  ;;  %v4155_v62 = vld [vmem:[#allocation35_spill] sm:$0xff]  ;;  %v4158_v16 = vld [vmem:[#allocation38_spill] sm:$0xff]  ;;  %v4160_v15 = vld [vmem:[#allocation40_spill] sm:$0xff] }
 0x159   : > { %4133 = vst [vmem:[#allocation69_spill] sm:$0xff] %v3293_v11  ;;  %4135 = vst [vmem:[#allocation20_spill] sm:$0xff] %v3298_v21  ;;  %v1358_v54 = vmul.f32 %v4154_v48, %v4148_v13  ;;  %v1359_v29 = vmul.f32 %v4155_v62, %v4148_v13  ;;  %v1360_v60 = vmul.f32 %v4156_v31, %v4148_v13  ;;  %v4161_v42 = vld [vmem:[#allocation41_spill] sm:$0xff]  ;;  %v4162_v56 = vld [vmem:[#allocation42_spill] sm:$0xff] }
 0x15a   : > { %4139 = vst [vmem:[#allocation49_spill] sm:$0xff] %v3303_v45  ;;  %4143 = vst [vmem:[#allocation29_spill] sm:$0xff] %v3308_v22  ;;  %v1365_v39 = vmul.f32 %v4157_v33, %v1364_v18  ;;  %v1366_v7 = vmul.f32 %v4158_v16, %v1364_v18  ;;  %v1367_v51 = vmul.f32 %v4159_v30, %v1364_v18  ;;  %v4163_v32 = vld [vmem:[#allocation17_spill] sm:$0xff]  ;;  %v4164_v62 = vld [vmem:[#allocation75_spill] sm:$0xff] }
 0x15b   : > { %4147 = vst [vmem:[#allocation50_spill] sm:$0xff] %v3313_v61  ;;  %v1368_v63 = vmul.f32 %v4160_v15, %v1364_v18  ;;  %v1369_v20 = vmul.f32 %v4161_v42, %v1364_v18  ;;  %v1370_v27 = vmul.f32 %v4162_v56, %v1364_v18  ;;  %v1371_v12 = vmul.f32 %v4163_v32, %v1364_v18  ;;  %v4165_v61 = vld [vmem:[#allocation67_spill] sm:$0xff] }
 0x15c   : > { %v1372_v48 = vmul.f32 %v2850_v19, %v1364_v18  ;;  %v4166_v22 = vmax.f32 %v4164_v62, %v4165_v61  ;;  %v3344_v31 = vmax.f32 %v1207_v49, %v1339_v59  ;;  %v3346_v33 = vmax.f32 %v1208_v36, %v1340_v14  ;;  %v4167_v32 = vld [vmem:[#allocation15_spill] sm:$0xff]  ;;  %v4168_v18 = vld [vmem:[#allocation16_spill] sm:$0xff]  ;;  %v4171_v59 = vld [vmem:[#allocation45_spill] sm:$0xff] }
 0x15d   : > { %v1373_v16 = vadd.f32 %v1365_v39, %v1353_v2  ;;  %v1374_v30 = vadd.f32 %v1366_v7, %v1354_v34  ;;  %v1375_v15 = vadd.f32 %v1367_v51, %v1355_v5  ;;  %v1376_v45 = vadd.f32 %v1368_v63, %v1356_v10  ;;  %v4170_v14 = vld [vmem:[#allocation44_spill] sm:$0xff]  ;;  %v4172_v10 = vld [vmem:[#allocation71_spill] sm:$0xff] }
 0x15e   : > { %v3342_v13 = vmax.f32 %v4166_v22, %v1338_v41  ;;  %v1377_v42 = vadd.f32 %v1369_v20, %v1357_v53  ;;  %v1378_v21 = vadd.f32 %v1370_v27, %v1358_v54  ;;  %v1379_v56 = vadd.f32 %v1371_v12, %v1359_v29  ;;  %v4169_v41 = vld [vmem:[#allocation43_spill] sm:$0xff]  ;;  %v4175_v7 = vld [vmem:[#allocation24_spill] sm:$0xff] }
 0x15f   : > { %v1380_v11 = vadd.f32 %v1372_v48, %v1360_v60  ;;  %v1384_v19 = vrot.slane %v4167_v32, %v3160_v6  ;;  %v1404_v61 = vrot.slane %v4168_v18, %v3160_v6  ;;  %v1424_v49 = vrot.slane %v4169_v41, %v3160_v6  ;;  %v4173_v54 = vld [vmem:[#allocation19_spill] sm:$0xff]  ;;  %v4174_v60 = vld [vmem:[#allocation74_spill] sm:$0xff]  ;;  %v4177_v41 = vld [vmem:[#allocation52_spill] sm:$0xff] }
 0x160   : > { %v1444_v36 = vrot.slane %v4170_v14, %v3160_v6  ;;  %v3358_v22 = vrot.slane %v4171_v59, %v3160_v6  ;;  %v4176_v32 = vld [vmem:[#allocation62_spill] sm:$0xff]  ;;  %v4178_v59 = vld [vmem:[#allocation53_spill] sm:$0xff] }
 0x161   : > { %v1385_v2 = vmul.f32 %v2853_v26, %v1384_v19  ;;  %v1386_v34 = vmul.f32 %v4058_v57, %v1384_v19  ;;  %v1387_v5 = vmul.f32 %v4059_v50, %v1384_v19  ;;  %v1388_v53 = vmul.f32 %v4172_v10, %v1384_v19 }
 0x162   : > { %v1389_v29 = vmul.f32 %v4173_v54, %v1384_v19  ;;  %v1390_v39 = vmul.f32 %v4174_v60, %v1384_v19  ;;  %v1391_v51 = vmul.f32 %v4175_v7, %v1384_v19  ;;  %v1392_v63 = vmul.f32 %v2881_v28, %v1384_v19  ;;  %v4179_v54 = vld [vmem:[#allocation54_spill] sm:$0xff]  ;;  %v4180_v7 = vld [vmem:[#allocation55_spill] sm:$0xff] }
 0x163   : > { %v1393_v20 = vadd.f32 %v1385_v2, %v1373_v16  ;;  %v1394_v27 = vadd.f32 %v1386_v34, %v1374_v30  ;;  %v1395_v6 = vadd.f32 %v1387_v5, %v1375_v15  ;;  %v1396_v12 = vadd.f32 %v1388_v53, %v1376_v45  ;;  %v4181_v16 = vld [vmem:[#allocation56_spill] sm:$0xff] }
 0x164   : > { %v1397_v48 = vadd.f32 %v1389_v29, %v1377_v42  ;;  %v1398_v26 = vadd.f32 %v1390_v39, %v1378_v21  ;;  %v1399_v62 = vadd.f32 %v1391_v51, %v1379_v56  ;;  %v1400_v57 = vadd.f32 %v1392_v63, %v1380_v11  ;;  %v4182_v51 = vld [vmem:[#allocation77_spill] sm:$0xff] }
 0x165   : > { %v1405_v50 = vmul.f32 %v2885_v4, %v1404_v61  ;;  %v1406_v18 = vmul.f32 %v4176_v32, %v1404_v61  ;;  %v1407_v14 = vmul.f32 %v4177_v41, %v1404_v61  ;;  %v1408_v10 = vmul.f32 %v4178_v59, %v1404_v61  ;;  %v4185_v32 = vld [vmem:[#allocation13_spill] sm:$0xff] }
 0x166   : > { %v1409_v60 = vmul.f32 %v4179_v54, %v1404_v61  ;;  %v1410_v28 = vmul.f32 %v4180_v7, %v1404_v61  ;;  %v1411_v30 = vmul.f32 %v4181_v16, %v1404_v61  ;;  %v1412_v45 = vmul.f32 %v3042_v3, %v1404_v61  ;;  %v4183_v61 = vld [vmem:[#allocation51_spill] sm:$0xff]  ;;  %v4186_v16 = vld [vmem:[#allocation61_spill] sm:$0xff] }
 0x167   : > { %v1413_v15 = vadd.f32 %v1405_v50, %v1393_v20  ;;  %v1414_v21 = vadd.f32 %v1406_v18, %v1394_v27  ;;  %v1415_v42 = vadd.f32 %v1407_v14, %v1395_v6  ;;  %v1416_v11 = vadd.f32 %v1408_v10, %v1396_v12 }
 0x168   : > { %v1417_v56 = vadd.f32 %v1409_v60, %v1397_v48  ;;  %v1418_v4 = vadd.f32 %v1410_v28, %v1398_v26  ;;  %v1419_v19 = vadd.f32 %v1411_v30, %v1399_v62  ;;  %v1420_v2 = vadd.f32 %v1412_v45, %v1400_v57 }
 0x169   : > { %v1425_v34 = vmul.f32 %v4116_v9, %v1424_v49  ;;  %v1426_v5 = vmul.f32 %v4117_v43, %v1424_v49  ;;  %v1427_v53 = vmul.f32 %v4118_v23, %v1424_v49  ;;  %v1428_v29 = vmul.f32 %v4119_v52, %v1424_v49 }
 0x16a   : > { %v1429_v39 = vmul.f32 %v4120_v47, %v1424_v49  ;;  %v1430_v3 = vmul.f32 %v4182_v51, %v1424_v49  ;;  %v1431_v63 = vmul.f32 %v4183_v61, %v1424_v49  ;;  %v1432_v20 = vmul.f32 %v3073_v40, %v1424_v49  ;;  %v4184_v40 = vld [vmem:[#allocation63_spill] sm:$0xff]  ;;  %v1495_v51 = vld [vmem:[#allocation7 + $0x1e8] sm:$0xff]  ;;  %v1497_v61 = vld [vmem:[#allocation7 + $0x1f8] sm:$0xff] }
 0x16b   : > { %v1433_v27 = vadd.f32 %v1425_v34, %v1413_v15  ;;  %v1434_v6 = vadd.f32 %v1426_v5, %v1414_v21  ;;  %v1435_v12 = vadd.f32 %v1427_v53, %v1415_v42  ;;  %v1436_v48 = vadd.f32 %v1428_v29, %v1416_v11  ;;  %v1491_v42 = vld [vmem:[#allocation7 + $0x1c8] sm:$0xff]  ;;  %v4188_v5 = vld [vmem:[#allocation20_spill] sm:$0xff]  ;;  %v4190_v29 = vld [vmem:[#allocation29_spill] sm:$0xff] }
 0x16c   : > { %v1437_v26 = vadd.f32 %v1429_v39, %v1417_v56  ;;  %v1438_v9 = vadd.f32 %v1430_v3, %v1418_v4  ;;  %v1439_v43 = vadd.f32 %v1431_v63, %v1419_v19  ;;  %v1440_v62 = vadd.f32 %v1432_v20, %v1420_v2  ;;  %v1492_v4 = vld [vmem:[#allocation7 + $0x1d0] sm:$0xff]  ;;  %v1494_v19 = vld [vmem:[#allocation7 + $0x1e0] sm:$0xff]  ;;  %v4191_v63 = vld [vmem:[#allocation50_spill] sm:$0xff] }
 0x16d   : > { %v1445_v23 = vmul.f32 %v4123_v58, %v1444_v36  ;;  %v1446_v52 = vmul.f32 %v4124_v35, %v1444_v36  ;;  %v1447_v47 = vmul.f32 %v4125_v44, %v1444_v36  ;;  %v1448_v57 = vmul.f32 %v4126_v46, %v1444_v36  ;;  %v4187_v2 = vld [vmem:[#allocation69_spill] sm:$0xff]  ;;  %v1496_v3 = vld [vmem:[#allocation7 + $0x1f0] sm:$0xff] }
 0x16e   : > { %v1449_v50 = vmul.f32 %v4127_v24, %v1444_v36  ;;  %v1450_v49 = vmul.f32 %v4184_v40, %v1444_v36  ;;  %v1451_v18 = vmul.f32 %v4185_v32, %v1444_v36  ;;  %v1452_v41 = vmul.f32 %v3105_v8, %v1444_v36 }
 0x16f   : > { %v1453_v14 = vadd.f32 %v1445_v23, %v1433_v27  ;;  %v1454_v59 = vadd.f32 %v1446_v52, %v1434_v6  ;;  %v1455_v10 = vadd.f32 %v1447_v47, %v1435_v12  ;;  %v1456_v54 = vadd.f32 %v1448_v57, %v1436_v48 }
 0x170   : > { %v1457_v58 = vadd.f32 %v1449_v50, %v1437_v26  ;;  %v1458_v60 = vadd.f32 %v1450_v49, %v1438_v9  ;;  %v1459_v35 = vadd.f32 %v1451_v18, %v1439_v43  ;;  %v1460_v7 = vadd.f32 %v1452_v41, %v1440_v62 }
 0x171   : > { %v1465_v46 = vmul.f32 %v3109_v55, %v3358_v22  ;;  %v1466_v44 = vmul.f32 %v3113_v38, %v3358_v22  ;;  %v1467_v24 = vmul.f32 %v3117_v1, %v3358_v22  ;;  %v1468_v8 = vmul.f32 %v3121_v0, %v3358_v22  ;;  %v1490_v1 = vld [vmem:[#allocation7 + $0x1c0] sm:$0xff] }
 0x172   : > { %v1469_v36 = vmul.f32 %v3125_v17, %v3358_v22  ;;  %v1470_v28 = vmul.f32 %v4130_v25, %v3358_v22  ;;  %v1471_v30 = vmul.f32 %v4186_v16, %v3358_v22  ;;  %v1472_v55 = vmul.f32 %v3137_v37, %v3358_v22  ;;  %v1493_v25 = vld [vmem:[#allocation7 + $0x1d8] sm:$0xff]  ;;  %v4189_v37 = vld [vmem:[#allocation49_spill] sm:$0xff] }
 0x173   : > { %v1473_v45 = vadd.f32 %v1465_v46, %v1453_v14  ;;  %v1474_v38 = vadd.f32 %v1466_v44, %v1454_v59  ;;  %v1475_v15 = vadd.f32 %v1467_v24, %v1455_v10  ;;  %v1476_v21 = vadd.f32 %v1468_v8, %v1456_v54 }
 0x174   : > { %v1477_v0 = vadd.f32 %v1469_v36, %v1457_v58  ;;  %v1478_v11 = vadd.f32 %v1470_v28, %v1458_v60  ;;  %v1479_v56 = vadd.f32 %v1471_v30, %v1459_v35  ;;  %v1480_v17 = vadd.f32 %v1472_v55, %v1460_v7 }
 0x175   : > { %v1481_v34 = vmax.f32 %v4187_v2, %v1473_v45  ;;  %v1482_v53 = vmax.f32 %v4188_v5, %v1474_v38  ;;  %v1483_v22 = vmax.f32 %v4189_v37, %v1475_v15  ;;  %v1484_v39 = vmax.f32 %v4190_v29, %v1476_v21 }
 0x176   : > { %v1485_v20 = vmax.f32 %v4191_v63, %v1477_v0  ;;  %v1486_v27 = vmax.f32 %v3342_v13, %v1478_v11  ;;  %v1487_v6 = vmax.f32 %v3344_v31, %v1479_v56  ;;  %v1488_v12 = vmax.f32 %v3346_v33, %v1480_v17 }
 0x177   : > { %v1498_v48 = vadd.f32 %v1490_v1, %v1481_v34  ;;  %v1499_v26 = vadd.f32 %v1491_v42, %v1482_v53  ;;  %v1500_v9 = vadd.f32 %v1492_v4, %v1483_v22  ;;  %v1501_v43 = vadd.f32 %v1493_v25, %v1484_v39 }
 0x178   : > { %v1502_v62 = vadd.f32 %v1494_v19, %v1485_v20  ;;  %v1503_v23 = vadd.f32 %v1495_v51, %v1486_v27  ;;  %v1504_v52 = vadd.f32 %v1496_v3, %v1487_v6  ;;  %v1505_v47 = vadd.f32 %v1497_v61, %v1488_v12 }
 0x179   : > { %v1506_v13 = vmax.f32 %v1498_v48, 0.0  ;;  %v1507_v31 = vmax.f32 %v1499_v26, 0.0  ;;  %v1508_v33 = vmax.f32 %v1500_v9, 0.0  ;;  %v1509_v57 = vmax.f32 %v1501_v43, 0.0 }
 0x17a   : > { %v1510_v50 = vmax.f32 %v1502_v62, 0.0  ;;  %v1511_v40 = vmax.f32 %v1503_v23, 0.0  ;;  %v1512_v49 = vmax.f32 %v1504_v52, 0.0  ;;  %v1513_v32 = vmax.f32 %v1505_v47, 0.0 }
 0x17b   : > { %1514 = vst [vmem:[%s238_s8] sm:$0xff] %v1506_v13  ;;  %1515 = vst [vmem:[%s238_s8 + $0x8] sm:$0xff] %v1507_v31 }
 0x17c   : > { %1516 = vst [vmem:[%s238_s8 + $0x10] sm:$0xff] %v1508_v33  ;;  %1517 = vst [vmem:[%s238_s8 + $0x18] sm:$0xff] %v1509_v57 }
 0x17d   : > { %1518 = vst [vmem:[%s238_s8 + $0x20] sm:$0xff] %v1510_v50  ;;  %1519 = vst [vmem:[%s238_s8 + $0x28] sm:$0xff] %v1511_v40 }
 0x17e   : > { %1520 = vst [vmem:[%s238_s8 + $0x30] sm:$0xff] %v1512_v49  ;;  %1521 = vst [vmem:[%s238_s8 + $0x38] sm:$0xff] %v1513_v32 }
 0x17f   : > { %1883 = shalt.err (!%p1880_p1)
}
 0x180   : > { %s1884_s4 = scalar_lea.hbm %s3423_s6, 1024  ;;  %s1888_s10 = scalar_lea.hbm %s3471_s3, 2048 }
 0x181   : > { %p1885_p0 = scmp.ne.s32.totalorder %s3423_s6, %s1884_s4  ;;  %p1889_p11 = scmp.lt.s32.totalorder %s3423_s6, %s3471_s3 }
 0x182   : > { %p1890_p4 = scmp.lt.s32.totalorder %s1888_s10, %s1884_s4 }
 0x183   : > { %p1886_p13 = pnand %p1885_p0, %p4192_p7 }
 0x184   : > { %p1891_p6 = por %p1890_p4, %p1889_p11 }
 0x185   : > { %p1887_p2 = pneg %p1886_p13 }
 0x187   : > { %p1892_p3 = pnand %p1891_p6, %p1887_p2 }
 0x189   : > { %1895 = shalt.err (!%p1892_p3)
}
 0x18a   : > { %s1952_s9 = smov 128   ;;  %s1953_s27 = smov 256  }
 0x18b   : > { %s1954_s23 = smov 8  }
 0x18c   : > { %1669 = dma.vmem_to_hbm [thread:$0]  (%p4192_p7), %s3425_s30, 1024, %s3423_s6, %s1523_s20, %s1952_s9, %s1953_s27, %s1954_s23  }
 0x18d PF: > { %s1550_s7 = sand.u32 1, %s1930_s12   ;;  %p4193_p8 = scmp.ne.s32.totalorder %s3727_s25, 0 }
 0x18e   : > { %p4194_p9 = scmp.ge.s32.totalorder %s1942_s15, 2  ;;  %s1551_s8 = scalar_lea.sflag [#allocation4], %s1550_s7 }
 0x190   : > { %p1683_p10 = pnand %p4194_p9, %p4193_p8 }
 0x192   : > { %p1684_p5 = pneg %p1683_p10 }
 0x194   : > { %1925 = dma.done.wait (%p1684_p5), %s1551_s8, 1024  }
 0x195   : > { %1927 = vsyncadd (%p1684_p5), %s1551_s8, 4294966272  ;;  %p19_p12 = scmp.ge.s32.totalorder %s2000_s18, 4   ;;  %s4195_s12 = smov %s1934_s13 }
 0x196   : > { %s4196_s13 = smov %s1938_s14  ;;  %s4197_s14 = smov %s2012_s21 }
 0x197   : > { %s4198_s15 = smov %s2000_s18  ;;  %21 = sbr.rel (!%p19_p12) target bundleno = 10 (0xa), region = 104 }
 0x19c   :  { %1556 = vsyncpa [#allocation3], 1 }
 0x19d   :  { %1558 = vsyncpa [#allocation3 + $0x1], 1 }
 0x19e   :  { %1559 = vsyncpa [#allocation6], 1 }
 0x19f   :  { %1561 = vsyncpa [#allocation6 + $0x1], 1 }
 0x1a0   :  { %1562 = vsyncpa [#allocation4], 1 }
 0x1a1   :  { %1564 = vsyncpa [#allocation4 + $0x1], 1 }

</bundles_post_ra>
